<compile_context>
chip_gen: v5e
topology: v5e:2x2
jax: 0.10.0
libtpu: 0.0.40
codegen_flags: <defaults>
</compile_context>

<pallas_src>
import functools

import jax
import jax.numpy as jnp
from jax.experimental import pallas as pl
from jax.experimental.pallas import tpu as pltpu


def _basic_block_kernel(x_ref, w1_ref, b1_ref, w2_ref, b2_ref, o_ref,
                        xpad_ref, y1pad_ref, *, H, W, BH):
    """Fused BasicBlock forward for one image (NHWC tile).

    VMEM refs:
      x_ref   : (1, H, W, Cin)     unpadded input tile
      w1_ref  : (9, Cin,  Cmid)    conv1 weight per tap, BN1 scale folded in
      b1_ref  : (1, Cmid)          folded BN1 bias
      w2_ref  : (9, Cmid, Cout)    conv2 weight per tap, BN2 scale folded in
      b2_ref  : (1, Cout)          folded BN2 bias
      o_ref   : (1, H, W, Cout)    output tile
    VMEM scratch (f32):
      xpad_ref  : (H+2, W+2, Cin)  zero-padded input
      y1pad_ref : (H+2, W+2, Cmid) zero-padded conv1 activation
    """
    Cin = x_ref.shape[-1]
    Cmid = w1_ref.shape[-1]
    Cout = o_ref.shape[-1]

    # ---- pad=1 in VMEM (no HBM pad pass). Scratches are fully rewritten on
    # every grid step, so the "parallel" batch axis is megacore-safe. ----
    xpad_ref[...] = jnp.zeros(xpad_ref.shape, xpad_ref.dtype)
    y1pad_ref[...] = jnp.zeros(y1pad_ref.shape, y1pad_ref.dtype)
    xpad_ref[1:H + 1, 1:W + 1, :] = x_ref[0].astype(jnp.float32)

    def conv3x3(src_ref, w_ref, c_in, r0):
        # 3x3 conv for output rows [r0, r0+BH): 9 tap matmuls accumulated in
        # a register-resident f32 accumulator; taps stream straight from the
        # padded VMEM scratch into the MXU.
        acc = jnp.zeros((BH * W, w_ref.shape[-1]), jnp.float32)
        for dh in range(3):
            for dw in range(3):
                patch = src_ref[r0 + dh:r0 + dh + BH, dw:dw + W, :]
                patch = patch.reshape(BH * W, c_in)
                acc = acc + jnp.dot(patch, w_ref[dh * 3 + dw],
                                    preferred_element_type=jnp.float32)
        return acc

    # ---- conv1 + bn1 + relu  ->  y1pad interior (stays in VMEM) ----
    for r0 in range(0, H, BH):
        y1 = conv3x3(xpad_ref, w1_ref, Cin, r0)             # (BH*W, Cmid)
        y1 = jnp.maximum(y1 + b1_ref[...], 0.0)
        y1pad_ref[1 + r0:1 + r0 + BH, 1:W + 1, :] = y1.reshape(BH, W, Cmid)

    # ---- conv2 + bn2 + residual + relu  ->  output ----
    for r0 in range(0, H, BH):
        y2 = conv3x3(y1pad_ref, w2_ref, Cmid, r0)           # (BH*W, Cout)
        # Residual: reuse the VMEM-resident padded input (== x, already f32).
        res = xpad_ref[1 + r0:1 + r0 + BH, 1:W + 1, :].reshape(BH * W, Cin)
        y2 = jnp.maximum(y2 + b2_ref[...] + res, 0.0)
        o_ref[0, r0:r0 + BH, :, :] = y2.reshape(BH, W, Cout).astype(o_ref.dtype)


def _pick_row_block(H, W, max_rows=512):
    """Largest divisor bh of H with bh*W <= max_rows, so the matmul M-tile /
    f32 accumulator stays register-resident even for large feature maps."""
    best = 1
    for bh in range(1, H + 1):
        if H % bh == 0 and bh * W <= max_rows:
            best = bh
    return best


def _vmem_limit_bytes(H, W, Cin, Cmid, Cout, BH):
    """Rough tiling-padded VMEM budget (double-buffered I/O blocks, weights,
    pad scratches, working set); explicit so large feature maps do not trip
    the small default scoped-VMEM limit (esp. 16 MiB on v5e)."""
    def tile_bytes(shape, itemsize=4):
        s = list(shape)
        s[-1] = -(-s[-1] // 128) * 128
        if len(s) >= 2:
            s[-2] = -(-s[-2] // 8) * 8
        n = 1
        for d in s:
            n *= d
        return n * itemsize

    est = (2 * tile_bytes((1, H, W, Cin))              # input block (x2 buffers)
           + 2 * tile_bytes((1, H, W, Cout))           # output block (x2 buffers)
           + 2 * (tile_bytes((9, Cin, Cmid)) + tile_bytes((1, Cmid))
                  + tile_bytes((9, Cmid, Cout)) + tile_bytes((1, Cout)))
           + tile_bytes((H + 2, W + 2, Cin))           # xpad scratch
           + tile_bytes((H + 2, W + 2, Cmid))          # y1pad scratch
           + 6 * tile_bytes((BH * W, max(Cin, Cmid, Cout))))  # working set
    return int(min(max(2 * est, 16 * 2**20), 48 * 2**20))


def _fused_basic_block(x_nhwc, w1_tap, b1_mat, w2_tap, b2_mat):
    """x_nhwc: (N,H,W,Cin); w*_tap: (9,Cin,Cout) scale-folded; b*: (1,Cout)."""
    N, H, W, Cin = x_nhwc.shape
    Cmid = w1_tap.shape[-1]
    Cout = w2_tap.shape[-1]
    BH = _pick_row_block(H, W)

    kernel = functools.partial(_basic_block_kernel, H=H, W=W, BH=BH)

    grid_spec = pltpu.PrefetchScalarGridSpec(
        num_scalar_prefetch=0,
        grid=(N,),
        in_specs=[
            pl.BlockSpec((1, H, W, Cin), lambda n: (n, 0, 0, 0)),
            pl.BlockSpec((9, Cin, Cmid), lambda n: (0, 0, 0)),
            pl.BlockSpec((1, Cmid), lambda n: (0, 0)),
            pl.BlockSpec((9, Cmid, Cout), lambda n: (0, 0, 0)),
            pl.BlockSpec((1, Cout), lambda n: (0, 0)),
        ],
        out_specs=pl.BlockSpec((1, H, W, Cout), lambda n: (n, 0, 0, 0)),
        scratch_shapes=[
            pltpu.VMEM((H + 2, W + 2, Cin), jnp.float32),
            pltpu.VMEM((H + 2, W + 2, Cmid), jnp.float32),
        ],
    )

    return pl.pallas_call(
        kernel,
        out_shape=jax.ShapeDtypeStruct((N, H, W, Cout), x_nhwc.dtype),
        grid_spec=grid_spec,
        compiler_params=pltpu.CompilerParams(
            dimension_semantics=("parallel",),
            vmem_limit_bytes=_vmem_limit_bytes(H, W, Cin, Cmid, Cout, BH),
        ),
    )(x_nhwc, w1_tap, b1_mat, w2_tap, b2_mat)


def _fold_bn(gamma, beta, mean, var, eps=1e-5):
    scale = gamma / jnp.sqrt(var + eps)
    bias = beta - mean * scale
    return scale, bias


def basic_block_forward(x_nchw, params):
    """BasicBlock forward. Input/output are NCHW (PyTorch convention)."""
    N, Cin, H, W = x_nchw.shape
    Cmid = params["w1"].shape[-1]
    Cout = params["w2"].shape[-1]
    # stride=1 / downsample=None path: the residual add needs matching shapes.
    assert Cin == Cout, "BasicBlock residual add requires inplanes == planes"

    s1, b1 = _fold_bn(params["bn1_gamma"], params["bn1_beta"],
                      params["bn1_mean"], params["bn1_var"])
    s2, b2 = _fold_bn(params["bn2_gamma"], params["bn2_beta"],
                      params["bn2_mean"], params["bn2_var"])

    # Fold the BN scale into per-tap conv weights (free wrapper-side math;
    # removes a per-element multiply from the kernel epilogue).
    w1_tap = params["w1"].reshape(9, Cin, Cmid).astype(jnp.float32) * s1[None, None, :]
    w2_tap = params["w2"].reshape(9, Cmid, Cout).astype(jnp.float32) * s2[None, None, :]
    b1_mat = b1.reshape(1, Cmid).astype(jnp.float32)
    b2_mat = b2.reshape(1, Cout).astype(jnp.float32)

    # NCHW -> NHWC so channels sit on the lane axis inside the kernel.
    x_nhwc = jnp.transpose(x_nchw, (0, 2, 3, 1))
    out_nhwc = _fused_basic_block(x_nhwc, w1_tap, b1_mat, w2_tap, b2_mat)
    return jnp.transpose(out_nhwc, (0, 3, 1, 2))


def _reference_forward(x_nchw, params):
    """Pure-JAX reference (lax.conv) for a correctness check."""
    x = jnp.transpose(x_nchw, (0, 2, 3, 1))
    dn = ("NHWC", "HWIO", "NHWC")

    def conv(inp, w):
        return jax.lax.conv_general_dilated(inp, w, (1, 1), "SAME",
                                            dimension_numbers=dn)

    s1, b1 = _fold_bn(params["bn1_gamma"], params["bn1_beta"],
                      params["bn1_mean"], params["bn1_var"])
    s2, b2 = _fold_bn(params["bn2_gamma"], params["bn2_beta"],
                      params["bn2_mean"], params["bn2_var"])

    out = jnp.maximum(conv(x, params["w1"]) * s1 + b1, 0.0)
    out = conv(out, params["w2"]) * s2 + b2 + x
    out = jnp.maximum(out, 0.0)
    return jnp.transpose(out, (0, 3, 1, 2))


def make_params(key, inplanes, planes):
    k1, k2, k3, k4 = jax.random.split(key, 4)
    # Conv weights in HWIO layout (kh, kw, in, out); deterministic init.
    w1 = jax.random.normal(k1, (3, 3, inplanes, planes), jnp.float32) * 0.1
    w2 = jax.random.normal(k2, (3, 3, planes, planes), jnp.float32) * 0.1
    return {
        "w1": w1,
        "w2": w2,
        # BatchNorm (eval-mode running stats); deterministic, non-trivial.
        "bn1_gamma": 1.0 + 0.1 * jax.random.normal(k3, (planes,), jnp.float32),
        "bn1_beta": jnp.full((planes,), 0.05, jnp.float32),
        "bn1_mean": jnp.full((planes,), 0.02, jnp.float32),
        "bn1_var": jnp.full((planes,), 1.1, jnp.float32),
        "bn2_gamma": 1.0 + 0.1 * jax.random.normal(k4, (planes,), jnp.float32),
        "bn2_beta": jnp.full((planes,), -0.03, jnp.float32),
        "bn2_mean": jnp.full((planes,), -0.01, jnp.float32),
        "bn2_var": jnp.full((planes,), 0.9, jnp.float32),
    }


if __name__ == "__main__":
    key = jax.random.PRNGKey(0)
    kx, kp = jax.random.split(key)

    N, C, H, W = 2, 4, 16, 16              # inplanes == planes, stride=1
    x = jax.random.normal(kx, (N, C, H, W), jnp.float32)
    params = make_params(kp, inplanes=C, planes=C)

    out = basic_block_forward(x, params)
    out = jax.block_until_ready(out)

    ref = _reference_forward(x, params)
    assert out.shape == (N, C, H, W)
    assert jnp.max(jnp.abs(out - ref)) < 1e-4

    print("KERNEL_OK")
</pallas_src>

<mosaic_0001>
module attributes {stable_mosaic.version = 11 : i64} {
  func.func @_basic_block_kernel(%arg0: i32, %arg1: memref<1x16x16x4xf32, #tpu.memory_space<vmem>>, %arg2: memref<9x4x4xf32, #tpu.memory_space<vmem>>, %arg3: memref<1x4xf32, #tpu.memory_space<vmem>>, %arg4: memref<9x4x4xf32, #tpu.memory_space<vmem>>, %arg5: memref<1x4xf32, #tpu.memory_space<vmem>>, %arg6: memref<1x16x16x4xf32, #tpu.memory_space<vmem>>, %arg7: memref<18x18x4xf32, #tpu.memory_space<vmem>>, %arg8: memref<18x18x4xf32, #tpu.memory_space<vmem>>) attributes {dimension_semantics = [#tpu.dimension_semantics<parallel>], iteration_bounds = array<i64: 2>, scalar_prefetch = 0 : i64, scratch_operands = 2 : i64, tpu.core_type = #tpu.core_type<tc>, window_params = [{transform_indices = @transform_0, window_bounds = array<i64: 1, 16, 16, 4>}, {pipeline_mode = #tpu.pipeline_mode<synchronous>, transform_indices = @transform_1, window_bounds = array<i64: 9, 4, 4>}, {pipeline_mode = #tpu.pipeline_mode<synchronous>, transform_indices = @transform_2, window_bounds = array<i64: 1, 4>}, {pipeline_mode = #tpu.pipeline_mode<synchronous>, transform_indices = @transform_3, window_bounds = array<i64: 9, 4, 4>}, {pipeline_mode = #tpu.pipeline_mode<synchronous>, transform_indices = @transform_4, window_bounds = array<i64: 1, 4>}, {transform_indices = @transform_5, window_bounds = array<i64: 1, 16, 16, 4>}]} {
    %cst = arith.constant 0.000000e+00 : f32
    %0 = vector.broadcast %cst : f32 to vector<18x18x4xf32>
    %c0 = arith.constant 0 : index
    %c0_0 = arith.constant 0 : index
    %c0_1 = arith.constant 0 : index
    %1 = vector.load %arg7[%c0, %c0_0, %c0_1] : memref<18x18x4xf32, #tpu.memory_space<vmem>>, vector<18x18x4xf32>
    tpu.vector_store %arg7[%c0, %c0_0, %c0_1], %0 {strides = array<i32>} : memref<18x18x4xf32, #tpu.memory_space<vmem>>, vector<18x18x4xf32>,
    %cst_2 = arith.constant 0.000000e+00 : f32
    %2 = vector.broadcast %cst_2 : f32 to vector<18x18x4xf32>
    %c0_3 = arith.constant 0 : index
    %c0_4 = arith.constant 0 : index
    %c0_5 = arith.constant 0 : index
    %3 = vector.load %arg8[%c0_3, %c0_4, %c0_5] : memref<18x18x4xf32, #tpu.memory_space<vmem>>, vector<18x18x4xf32>
    tpu.vector_store %arg8[%c0_3, %c0_4, %c0_5], %2 {strides = array<i32>} : memref<18x18x4xf32, #tpu.memory_space<vmem>>, vector<18x18x4xf32>,
    %c0_6 = arith.constant 0 : index
    %c0_7 = arith.constant 0 : index
    %c0_8 = arith.constant 0 : index
    %c0_9 = arith.constant 0 : index
    %4 = vector.load %arg1[%c0_6, %c0_7, %c0_8, %c0_9] : memref<1x16x16x4xf32, #tpu.memory_space<vmem>>, vector<1x16x16x4xf32>
    %5 = vector.shape_cast %4 : vector<1x16x16x4xf32> to vector<16x16x4xf32>
    %c1 = arith.constant 1 : index
    %c1_10 = arith.constant 1 : index
    %c0_11 = arith.constant 0 : index
    %6 = vector.load %arg7[%c1, %c1_10, %c0_11] : memref<18x18x4xf32, #tpu.memory_space<vmem>>, vector<16x16x4xf32>
    tpu.vector_store %arg7[%c1, %c1_10, %c0_11], %5 {strides = array<i32>} : memref<18x18x4xf32, #tpu.memory_space<vmem>>, vector<16x16x4xf32>,
    %cst_12 = arith.constant 0.000000e+00 : f32
    %7 = vector.broadcast %cst_12 : f32 to vector<256x4xf32>
    %c0_13 = arith.constant 0 : index
    %c0_14 = arith.constant 0 : index
    %c0_15 = arith.constant 0 : index
    %8 = vector.load %arg7[%c0_13, %c0_14, %c0_15] : memref<18x18x4xf32, #tpu.memory_space<vmem>>, vector<16x16x4xf32>
    %9 = vector.shape_cast %8 : vector<16x16x4xf32> to vector<256x4xf32>
    %c0_16 = arith.constant 0 : index
    %c0_17 = arith.constant 0 : index
    %c0_18 = arith.constant 0 : index
    %10 = vector.load %arg2[%c0_16, %c0_17, %c0_18] : memref<9x4x4xf32, #tpu.memory_space<vmem>>, vector<1x4x4xf32>
    %11 = vector.shape_cast %10 : vector<1x4x4xf32> to vector<4x4xf32>
    %cst_19 = arith.constant dense<0.000000e+00> : vector<256x4xf32>
    %12 = tpu.matmul %9, %11, %cst_19 {dimension_numbers = #tpu.dot_dimension_numbers<[1], [0], [0], [1], [0, 0, 1, 1], [], []>} : vector<256x4xf32>, vector<4x4xf32>, vector<256x4xf32> -> vector<256x4xf32>
    %13 = arith.addf %7, %12 : vector<256x4xf32>
    %c0_20 = arith.constant 0 : index
    %c1_21 = arith.constant 1 : index
    %c0_22 = arith.constant 0 : index
    %14 = vector.load %arg7[%c0_20, %c1_21, %c0_22] : memref<18x18x4xf32, #tpu.memory_space<vmem>>, vector<16x16x4xf32>
    %15 = vector.shape_cast %14 : vector<16x16x4xf32> to vector<256x4xf32>
    %c1_23 = arith.constant 1 : index
    %c0_24 = arith.constant 0 : index
    %c0_25 = arith.constant 0 : index
    %16 = vector.load %arg2[%c1_23, %c0_24, %c0_25] : memref<9x4x4xf32, #tpu.memory_space<vmem>>, vector<1x4x4xf32>
    %17 = vector.shape_cast %16 : vector<1x4x4xf32> to vector<4x4xf32>
    %cst_26 = arith.constant dense<0.000000e+00> : vector<256x4xf32>
    %18 = tpu.matmul %15, %17, %cst_26 {dimension_numbers = #tpu.dot_dimension_numbers<[1], [0], [0], [1], [0, 0, 1, 1], [], []>} : vector<256x4xf32>, vector<4x4xf32>, vector<256x4xf32> -> vector<256x4xf32>
    %19 = arith.addf %13, %18 : vector<256x4xf32>
    %c0_27 = arith.constant 0 : index
    %c2 = arith.constant 2 : index
    %c0_28 = arith.constant 0 : index
    %20 = vector.load %arg7[%c0_27, %c2, %c0_28] : memref<18x18x4xf32, #tpu.memory_space<vmem>>, vector<16x16x4xf32>
    %21 = vector.shape_cast %20 : vector<16x16x4xf32> to vector<256x4xf32>
    %c2_29 = arith.constant 2 : index
    %c0_30 = arith.constant 0 : index
    %c0_31 = arith.constant 0 : index
    %22 = vector.load %arg2[%c2_29, %c0_30, %c0_31] : memref<9x4x4xf32, #tpu.memory_space<vmem>>, vector<1x4x4xf32>
    %23 = vector.shape_cast %22 : vector<1x4x4xf32> to vector<4x4xf32>
    %cst_32 = arith.constant dense<0.000000e+00> : vector<256x4xf32>
    %24 = tpu.matmul %21, %23, %cst_32 {dimension_numbers = #tpu.dot_dimension_numbers<[1], [0], [0], [1], [0, 0, 1, 1], [], []>} : vector<256x4xf32>, vector<4x4xf32>, vector<256x4xf32> -> vector<256x4xf32>
    %25 = arith.addf %19, %24 : vector<256x4xf32>
    %c1_33 = arith.constant 1 : index
    %c0_34 = arith.constant 0 : index
    %c0_35 = arith.constant 0 : index
    %26 = vector.load %arg7[%c1_33, %c0_34, %c0_35] : memref<18x18x4xf32, #tpu.memory_space<vmem>>, vector<16x16x4xf32>
    %27 = vector.shape_cast %26 : vector<16x16x4xf32> to vector<256x4xf32>
    %c3 = arith.constant 3 : index
    %c0_36 = arith.constant 0 : index
    %c0_37 = arith.constant 0 : index
    %28 = vector.load %arg2[%c3, %c0_36, %c0_37] : memref<9x4x4xf32, #tpu.memory_space<vmem>>, vector<1x4x4xf32>
    %29 = vector.shape_cast %28 : vector<1x4x4xf32> to vector<4x4xf32>
    %cst_38 = arith.constant dense<0.000000e+00> : vector<256x4xf32>
    %30 = tpu.matmul %27, %29, %cst_38 {dimension_numbers = #tpu.dot_dimension_numbers<[1], [0], [0], [1], [0, 0, 1, 1], [], []>} : vector<256x4xf32>, vector<4x4xf32>, vector<256x4xf32> -> vector<256x4xf32>
    %31 = arith.addf %25, %30 : vector<256x4xf32>
    %c1_39 = arith.constant 1 : index
    %c1_40 = arith.constant 1 : index
    %c0_41 = arith.constant 0 : index
    %32 = vector.load %arg7[%c1_39, %c1_40, %c0_41] : memref<18x18x4xf32, #tpu.memory_space<vmem>>, vector<16x16x4xf32>
    %33 = vector.shape_cast %32 : vector<16x16x4xf32> to vector<256x4xf32>
    %c4 = arith.constant 4 : index
    %c0_42 = arith.constant 0 : index
    %c0_43 = arith.constant 0 : index
    %34 = vector.load %arg2[%c4, %c0_42, %c0_43] : memref<9x4x4xf32, #tpu.memory_space<vmem>>, vector<1x4x4xf32>
    %35 = vector.shape_cast %34 : vector<1x4x4xf32> to vector<4x4xf32>
    %cst_44 = arith.constant dense<0.000000e+00> : vector<256x4xf32>
    %36 = tpu.matmul %33, %35, %cst_44 {dimension_numbers = #tpu.dot_dimension_numbers<[1], [0], [0], [1], [0, 0, 1, 1], [], []>} : vector<256x4xf32>, vector<4x4xf32>, vector<256x4xf32> -> vector<256x4xf32>
    %37 = arith.addf %31, %36 : vector<256x4xf32>
    %c1_45 = arith.constant 1 : index
    %c2_46 = arith.constant 2 : index
    %c0_47 = arith.constant 0 : index
    %38 = vector.load %arg7[%c1_45, %c2_46, %c0_47] : memref<18x18x4xf32, #tpu.memory_space<vmem>>, vector<16x16x4xf32>
    %39 = vector.shape_cast %38 : vector<16x16x4xf32> to vector<256x4xf32>
    %c5 = arith.constant 5 : index
    %c0_48 = arith.constant 0 : index
    %c0_49 = arith.constant 0 : index
    %40 = vector.load %arg2[%c5, %c0_48, %c0_49] : memref<9x4x4xf32, #tpu.memory_space<vmem>>, vector<1x4x4xf32>
    %41 = vector.shape_cast %40 : vector<1x4x4xf32> to vector<4x4xf32>
    %cst_50 = arith.constant dense<0.000000e+00> : vector<256x4xf32>
    %42 = tpu.matmul %39, %41, %cst_50 {dimension_numbers = #tpu.dot_dimension_numbers<[1], [0], [0], [1], [0, 0, 1, 1], [], []>} : vector<256x4xf32>, vector<4x4xf32>, vector<256x4xf32> -> vector<256x4xf32>
    %43 = arith.addf %37, %42 : vector<256x4xf32>
    %c2_51 = arith.constant 2 : index
    %c0_52 = arith.constant 0 : index
    %c0_53 = arith.constant 0 : index
    %44 = vector.load %arg7[%c2_51, %c0_52, %c0_53] : memref<18x18x4xf32, #tpu.memory_space<vmem>>, vector<16x16x4xf32>
    %45 = vector.shape_cast %44 : vector<16x16x4xf32> to vector<256x4xf32>
    %c6 = arith.constant 6 : index
    %c0_54 = arith.constant 0 : index
    %c0_55 = arith.constant 0 : index
    %46 = vector.load %arg2[%c6, %c0_54, %c0_55] : memref<9x4x4xf32, #tpu.memory_space<vmem>>, vector<1x4x4xf32>
    %47 = vector.shape_cast %46 : vector<1x4x4xf32> to vector<4x4xf32>
    %cst_56 = arith.constant dense<0.000000e+00> : vector<256x4xf32>
    %48 = tpu.matmul %45, %47, %cst_56 {dimension_numbers = #tpu.dot_dimension_numbers<[1], [0], [0], [1], [0, 0, 1, 1], [], []>} : vector<256x4xf32>, vector<4x4xf32>, vector<256x4xf32> -> vector<256x4xf32>
    %49 = arith.addf %43, %48 : vector<256x4xf32>
    %c2_57 = arith.constant 2 : index
    %c1_58 = arith.constant 1 : index
    %c0_59 = arith.constant 0 : index
    %50 = vector.load %arg7[%c2_57, %c1_58, %c0_59] : memref<18x18x4xf32, #tpu.memory_space<vmem>>, vector<16x16x4xf32>
    %51 = vector.shape_cast %50 : vector<16x16x4xf32> to vector<256x4xf32>
    %c7 = arith.constant 7 : index
    %c0_60 = arith.constant 0 : index
    %c0_61 = arith.constant 0 : index
    %52 = vector.load %arg2[%c7, %c0_60, %c0_61] : memref<9x4x4xf32, #tpu.memory_space<vmem>>, vector<1x4x4xf32>
    %53 = vector.shape_cast %52 : vector<1x4x4xf32> to vector<4x4xf32>
    %cst_62 = arith.constant dense<0.000000e+00> : vector<256x4xf32>
    %54 = tpu.matmul %51, %53, %cst_62 {dimension_numbers = #tpu.dot_dimension_numbers<[1], [0], [0], [1], [0, 0, 1, 1], [], []>} : vector<256x4xf32>, vector<4x4xf32>, vector<256x4xf32> -> vector<256x4xf32>
    %55 = arith.addf %49, %54 : vector<256x4xf32>
    %c2_63 = arith.constant 2 : index
    %c2_64 = arith.constant 2 : index
    %c0_65 = arith.constant 0 : index
    %56 = vector.load %arg7[%c2_63, %c2_64, %c0_65] : memref<18x18x4xf32, #tpu.memory_space<vmem>>, vector<16x16x4xf32>
    %57 = vector.shape_cast %56 : vector<16x16x4xf32> to vector<256x4xf32>
    %c8 = arith.constant 8 : index
    %c0_66 = arith.constant 0 : index
    %c0_67 = arith.constant 0 : index
    %58 = vector.load %arg2[%c8, %c0_66, %c0_67] : memref<9x4x4xf32, #tpu.memory_space<vmem>>, vector<1x4x4xf32>
    %59 = vector.shape_cast %58 : vector<1x4x4xf32> to vector<4x4xf32>
    %cst_68 = arith.constant dense<0.000000e+00> : vector<256x4xf32>
    %60 = tpu.matmul %57, %59, %cst_68 {dimension_numbers = #tpu.dot_dimension_numbers<[1], [0], [0], [1], [0, 0, 1, 1], [], []>} : vector<256x4xf32>, vector<4x4xf32>, vector<256x4xf32> -> vector<256x4xf32>
    %61 = arith.addf %55, %60 : vector<256x4xf32>
    %c0_69 = arith.constant 0 : index
    %c0_70 = arith.constant 0 : index
    %62 = vector.load %arg3[%c0_69, %c0_70] : memref<1x4xf32, #tpu.memory_space<vmem>>, vector<1x4xf32>
    %63 = vector.broadcast %62 : vector<1x4xf32> to vector<256x4xf32>
    %64 = arith.addf %61, %63 : vector<256x4xf32>
    %cst_71 = arith.constant 0.000000e+00 : f32
    %65 = vector.broadcast %cst_71 : f32 to vector<256x4xf32>
    %66 = arith.maximumf %64, %65 : vector<256x4xf32>
    %67 = vector.shape_cast %66 : vector<256x4xf32> to vector<16x16x4xf32>
    %c1_72 = arith.constant 1 : index
    %c1_73 = arith.constant 1 : index
    %c0_74 = arith.constant 0 : index
    %68 = vector.load %arg8[%c1_72, %c1_73, %c0_74] : memref<18x18x4xf32, #tpu.memory_space<vmem>>, vector<16x16x4xf32>
    tpu.vector_store %arg8[%c1_72, %c1_73, %c0_74], %67 {strides = array<i32>} : memref<18x18x4xf32, #tpu.memory_space<vmem>>, vector<16x16x4xf32>,
    %cst_75 = arith.constant 0.000000e+00 : f32
    %69 = vector.broadcast %cst_75 : f32 to vector<256x4xf32>
    %c0_76 = arith.constant 0 : index
    %c0_77 = arith.constant 0 : index
    %c0_78 = arith.constant 0 : index
    %70 = vector.load %arg8[%c0_76, %c0_77, %c0_78] : memref<18x18x4xf32, #tpu.memory_space<vmem>>, vector<16x16x4xf32>
    %71 = vector.shape_cast %70 : vector<16x16x4xf32> to vector<256x4xf32>
    %c0_79 = arith.constant 0 : index
    %c0_80 = arith.constant 0 : index
    %c0_81 = arith.constant 0 : index
    %72 = vector.load %arg4[%c0_79, %c0_80, %c0_81] : memref<9x4x4xf32, #tpu.memory_space<vmem>>, vector<1x4x4xf32>
    %73 = vector.shape_cast %72 : vector<1x4x4xf32> to vector<4x4xf32>
    %cst_82 = arith.constant dense<0.000000e+00> : vector<256x4xf32>
    %74 = tpu.matmul %71, %73, %cst_82 {dimension_numbers = #tpu.dot_dimension_numbers<[1], [0], [0], [1], [0, 0, 1, 1], [], []>} : vector<256x4xf32>, vector<4x4xf32>, vector<256x4xf32> -> vector<256x4xf32>
    %75 = arith.addf %69, %74 : vector<256x4xf32>
    %c0_83 = arith.constant 0 : index
    %c1_84 = arith.constant 1 : index
    %c0_85 = arith.constant 0 : index
    %76 = vector.load %arg8[%c0_83, %c1_84, %c0_85] : memref<18x18x4xf32, #tpu.memory_space<vmem>>, vector<16x16x4xf32>
    %77 = vector.shape_cast %76 : vector<16x16x4xf32> to vector<256x4xf32>
    %c1_86 = arith.constant 1 : index
    %c0_87 = arith.constant 0 : index
    %c0_88 = arith.constant 0 : index
    %78 = vector.load %arg4[%c1_86, %c0_87, %c0_88] : memref<9x4x4xf32, #tpu.memory_space<vmem>>, vector<1x4x4xf32>
    %79 = vector.shape_cast %78 : vector<1x4x4xf32> to vector<4x4xf32>
    %cst_89 = arith.constant dense<0.000000e+00> : vector<256x4xf32>
    %80 = tpu.matmul %77, %79, %cst_89 {dimension_numbers = #tpu.dot_dimension_numbers<[1], [0], [0], [1], [0, 0, 1, 1], [], []>} : vector<256x4xf32>, vector<4x4xf32>, vector<256x4xf32> -> vector<256x4xf32>
    %81 = arith.addf %75, %80 : vector<256x4xf32>
    %c0_90 = arith.constant 0 : index
    %c2_91 = arith.constant 2 : index
    %c0_92 = arith.constant 0 : index
    %82 = vector.load %arg8[%c0_90, %c2_91, %c0_92] : memref<18x18x4xf32, #tpu.memory_space<vmem>>, vector<16x16x4xf32>
    %83 = vector.shape_cast %82 : vector<16x16x4xf32> to vector<256x4xf32>
    %c2_93 = arith.constant 2 : index
    %c0_94 = arith.constant 0 : index
    %c0_95 = arith.constant 0 : index
    %84 = vector.load %arg4[%c2_93, %c0_94, %c0_95] : memref<9x4x4xf32, #tpu.memory_space<vmem>>, vector<1x4x4xf32>
    %85 = vector.shape_cast %84 : vector<1x4x4xf32> to vector<4x4xf32>
    %cst_96 = arith.constant dense<0.000000e+00> : vector<256x4xf32>
    %86 = tpu.matmul %83, %85, %cst_96 {dimension_numbers = #tpu.dot_dimension_numbers<[1], [0], [0], [1], [0, 0, 1, 1], [], []>} : vector<256x4xf32>, vector<4x4xf32>, vector<256x4xf32> -> vector<256x4xf32>
    %87 = arith.addf %81, %86 : vector<256x4xf32>
    %c1_97 = arith.constant 1 : index
    %c0_98 = arith.constant 0 : index
    %c0_99 = arith.constant 0 : index
    %88 = vector.load %arg8[%c1_97, %c0_98, %c0_99] : memref<18x18x4xf32, #tpu.memory_space<vmem>>, vector<16x16x4xf32>
    %89 = vector.shape_cast %88 : vector<16x16x4xf32> to vector<256x4xf32>
    %c3_100 = arith.constant 3 : index
    %c0_101 = arith.constant 0 : index
    %c0_102 = arith.constant 0 : index
    %90 = vector.load %arg4[%c3_100, %c0_101, %c0_102] : memref<9x4x4xf32, #tpu.memory_space<vmem>>, vector<1x4x4xf32>
    %91 = vector.shape_cast %90 : vector<1x4x4xf32> to vector<4x4xf32>
    %cst_103 = arith.constant dense<0.000000e+00> : vector<256x4xf32>
    %92 = tpu.matmul %89, %91, %cst_103 {dimension_numbers = #tpu.dot_dimension_numbers<[1], [0], [0], [1], [0, 0, 1, 1], [], []>} : vector<256x4xf32>, vector<4x4xf32>, vector<256x4xf32> -> vector<256x4xf32>
    %93 = arith.addf %87, %92 : vector<256x4xf32>
    %c1_104 = arith.constant 1 : index
    %c1_105 = arith.constant 1 : index
    %c0_106 = arith.constant 0 : index
    %94 = vector.load %arg8[%c1_104, %c1_105, %c0_106] : memref<18x18x4xf32, #tpu.memory_space<vmem>>, vector<16x16x4xf32>
    %95 = vector.shape_cast %94 : vector<16x16x4xf32> to vector<256x4xf32>
    %c4_107 = arith.constant 4 : index
    %c0_108 = arith.constant 0 : index
    %c0_109 = arith.constant 0 : index
    %96 = vector.load %arg4[%c4_107, %c0_108, %c0_109] : memref<9x4x4xf32, #tpu.memory_space<vmem>>, vector<1x4x4xf32>
    %97 = vector.shape_cast %96 : vector<1x4x4xf32> to vector<4x4xf32>
    %cst_110 = arith.constant dense<0.000000e+00> : vector<256x4xf32>
    %98 = tpu.matmul %95, %97, %cst_110 {dimension_numbers = #tpu.dot_dimension_numbers<[1], [0], [0], [1], [0, 0, 1, 1], [], []>} : vector<256x4xf32>, vector<4x4xf32>, vector<256x4xf32> -> vector<256x4xf32>
    %99 = arith.addf %93, %98 : vector<256x4xf32>
    %c1_111 = arith.constant 1 : index
    %c2_112 = arith.constant 2 : index
    %c0_113 = arith.constant 0 : index
    %100 = vector.load %arg8[%c1_111, %c2_112, %c0_113] : memref<18x18x4xf32, #tpu.memory_space<vmem>>, vector<16x16x4xf32>
    %101 = vector.shape_cast %100 : vector<16x16x4xf32> to vector<256x4xf32>
    %c5_114 = arith.constant 5 : index
    %c0_115 = arith.constant 0 : index
    %c0_116 = arith.constant 0 : index
    %102 = vector.load %arg4[%c5_114, %c0_115, %c0_116] : memref<9x4x4xf32, #tpu.memory_space<vmem>>, vector<1x4x4xf32>
    %103 = vector.shape_cast %102 : vector<1x4x4xf32> to vector<4x4xf32>
    %cst_117 = arith.constant dense<0.000000e+00> : vector<256x4xf32>
    %104 = tpu.matmul %101, %103, %cst_117 {dimension_numbers = #tpu.dot_dimension_numbers<[1], [0], [0], [1], [0, 0, 1, 1], [], []>} : vector<256x4xf32>, vector<4x4xf32>, vector<256x4xf32> -> vector<256x4xf32>
    %105 = arith.addf %99, %104 : vector<256x4xf32>
    %c2_118 = arith.constant 2 : index
    %c0_119 = arith.constant 0 : index
    %c0_120 = arith.constant 0 : index
    %106 = vector.load %arg8[%c2_118, %c0_119, %c0_120] : memref<18x18x4xf32, #tpu.memory_space<vmem>>, vector<16x16x4xf32>
    %107 = vector.shape_cast %106 : vector<16x16x4xf32> to vector<256x4xf32>
    %c6_121 = arith.constant 6 : index
    %c0_122 = arith.constant 0 : index
    %c0_123 = arith.constant 0 : index
    %108 = vector.load %arg4[%c6_121, %c0_122, %c0_123] : memref<9x4x4xf32, #tpu.memory_space<vmem>>, vector<1x4x4xf32>
    %109 = vector.shape_cast %108 : vector<1x4x4xf32> to vector<4x4xf32>
    %cst_124 = arith.constant dense<0.000000e+00> : vector<256x4xf32>
    %110 = tpu.matmul %107, %109, %cst_124 {dimension_numbers = #tpu.dot_dimension_numbers<[1], [0], [0], [1], [0, 0, 1, 1], [], []>} : vector<256x4xf32>, vector<4x4xf32>, vector<256x4xf32> -> vector<256x4xf32>
    %111 = arith.addf %105, %110 : vector<256x4xf32>
    %c2_125 = arith.constant 2 : index
    %c1_126 = arith.constant 1 : index
    %c0_127 = arith.constant 0 : index
    %112 = vector.load %arg8[%c2_125, %c1_126, %c0_127] : memref<18x18x4xf32, #tpu.memory_space<vmem>>, vector<16x16x4xf32>
    %113 = vector.shape_cast %112 : vector<16x16x4xf32> to vector<256x4xf32>
    %c7_128 = arith.constant 7 : index
    %c0_129 = arith.constant 0 : index
    %c0_130 = arith.constant 0 : index
    %114 = vector.load %arg4[%c7_128, %c0_129, %c0_130] : memref<9x4x4xf32, #tpu.memory_space<vmem>>, vector<1x4x4xf32>
    %115 = vector.shape_cast %114 : vector<1x4x4xf32> to vector<4x4xf32>
    %cst_131 = arith.constant dense<0.000000e+00> : vector<256x4xf32>
    %116 = tpu.matmul %113, %115, %cst_131 {dimension_numbers = #tpu.dot_dimension_numbers<[1], [0], [0], [1], [0, 0, 1, 1], [], []>} : vector<256x4xf32>, vector<4x4xf32>, vector<256x4xf32> -> vector<256x4xf32>
    %117 = arith.addf %111, %116 : vector<256x4xf32>
    %c2_132 = arith.constant 2 : index
    %c2_133 = arith.constant 2 : index
    %c0_134 = arith.constant 0 : index
    %118 = vector.load %arg8[%c2_132, %c2_133, %c0_134] : memref<18x18x4xf32, #tpu.memory_space<vmem>>, vector<16x16x4xf32>
    %119 = vector.shape_cast %118 : vector<16x16x4xf32> to vector<256x4xf32>
    %c8_135 = arith.constant 8 : index
    %c0_136 = arith.constant 0 : index
    %c0_137 = arith.constant 0 : index
    %120 = vector.load %arg4[%c8_135, %c0_136, %c0_137] : memref<9x4x4xf32, #tpu.memory_space<vmem>>, vector<1x4x4xf32>
    %121 = vector.shape_cast %120 : vector<1x4x4xf32> to vector<4x4xf32>
    %cst_138 = arith.constant dense<0.000000e+00> : vector<256x4xf32>
    %122 = tpu.matmul %119, %121, %cst_138 {dimension_numbers = #tpu.dot_dimension_numbers<[1], [0], [0], [1], [0, 0, 1, 1], [], []>} : vector<256x4xf32>, vector<4x4xf32>, vector<256x4xf32> -> vector<256x4xf32>
    %123 = arith.addf %117, %122 : vector<256x4xf32>
    %c1_139 = arith.constant 1 : index
    %c1_140 = arith.constant 1 : index
    %c0_141 = arith.constant 0 : index
    %124 = vector.load %arg7[%c1_139, %c1_140, %c0_141] : memref<18x18x4xf32, #tpu.memory_space<vmem>>, vector<16x16x4xf32>
    %125 = vector.shape_cast %124 : vector<16x16x4xf32> to vector<256x4xf32>
    %c0_142 = arith.constant 0 : index
    %c0_143 = arith.constant 0 : index
    %126 = vector.load %arg5[%c0_142, %c0_143] : memref<1x4xf32, #tpu.memory_space<vmem>>, vector<1x4xf32>
    %127 = vector.broadcast %126 : vector<1x4xf32> to vector<256x4xf32>
    %128 = arith.addf %123, %127 : vector<256x4xf32>
    %129 = arith.addf %128, %125 : vector<256x4xf32>
    %cst_144 = arith.constant 0.000000e+00 : f32
    %130 = vector.broadcast %cst_144 : f32 to vector<256x4xf32>
    %131 = arith.maximumf %129, %130 : vector<256x4xf32>
    %132 = vector.shape_cast %131 : vector<256x4xf32> to vector<16x16x4xf32>
    %c0_145 = arith.constant 0 : index
    %c0_146 = arith.constant 0 : index
    %c0_147 = arith.constant 0 : index
    %c0_148 = arith.constant 0 : index
    %133 = vector.load %arg6[%c0_145, %c0_146, %c0_147, %c0_148] : memref<1x16x16x4xf32, #tpu.memory_space<vmem>>, vector<1x16x16x4xf32>
    %134 = vector.shape_cast %133 : vector<1x16x16x4xf32> to vector<16x16x4xf32>
    %135 = vector.shape_cast %132 : vector<16x16x4xf32> to vector<1x16x16x4xf32>
    tpu.vector_store %arg6[%c0_145, %c0_146, %c0_147, %c0_148], %135 {strides = array<i32>} : memref<1x16x16x4xf32, #tpu.memory_space<vmem>>, vector<1x16x16x4xf32>,
    return
  }
  func.func @transform_0(%arg0: i32) -> (i32, i32, i32, i32) {
    %c0_i32 = arith.constant 0 : i32
    %c0_i32_0 = arith.constant 0 : i32
    %c0_i32_1 = arith.constant 0 : i32
    %c0_i32_2 = arith.constant 0 : i32
    return %arg0, %c0_i32, %c0_i32_0, %c0_i32_1 : i32, i32, i32, i32
  }
  func.func @transform_1(%arg0: i32) -> (i32, i32, i32) {
    %c0_i32 = arith.constant 0 : i32
    %c0_i32_0 = arith.constant 0 : i32
    %c0_i32_1 = arith.constant 0 : i32
    %c0_i32_2 = arith.constant 0 : i32
    return %c0_i32, %c0_i32_0, %c0_i32_1 : i32, i32, i32
  }
  func.func @transform_2(%arg0: i32) -> (i32, i32) {
    %c0_i32 = arith.constant 0 : i32
    %c0_i32_0 = arith.constant 0 : i32
    %c0_i32_1 = arith.constant 0 : i32
    return %c0_i32, %c0_i32_0 : i32, i32
  }
  func.func @transform_3(%arg0: i32) -> (i32, i32, i32) {
    %c0_i32 = arith.constant 0 : i32
    %c0_i32_0 = arith.constant 0 : i32
    %c0_i32_1 = arith.constant 0 : i32
    %c0_i32_2 = arith.constant 0 : i32
    return %c0_i32, %c0_i32_0, %c0_i32_1 : i32, i32, i32
  }
  func.func @transform_4(%arg0: i32) -> (i32, i32) {
    %c0_i32 = arith.constant 0 : i32
    %c0_i32_0 = arith.constant 0 : i32
    %c0_i32_1 = arith.constant 0 : i32
    return %c0_i32, %c0_i32_0 : i32, i32
  }
  func.func @transform_5(%arg0: i32) -> (i32, i32, i32, i32) {
    %c0_i32 = arith.constant 0 : i32
    %c0_i32_0 = arith.constant 0 : i32
    %c0_i32_1 = arith.constant 0 : i32
    %c0_i32_2 = arith.constant 0 : i32
    return %arg0, %c0_i32, %c0_i32_0, %c0_i32_1 : i32, i32, i32, i32
  }
}

</mosaic_0001>

<bundles_post_ra>
// kernel: tpu_custom_call.1
= control target key start
LH: loop header
LB: loop body
LE: loop exit
PB: predicated region body
PF: predicated region fallthrough
CT: control target
= control target key end

     0   :  { %s6275_s18 = smov 0   ;;  %s8892_s0 = inlined_call_operand.vmem [shape: f32[2,16,16,4], index: 0, kind: input, shape index: {}]   ;;  %s8893_s1 = inlined_call_operand.vmem [shape: f32[9,4,4], index: 1, kind: input, shape index: {}]   ;;  %s8894_s2 = inlined_call_operand.vmem [shape: f32[1,4], index: 2, kind: input, shape index: {}]   ;;  %s8895_s3 = inlined_call_operand.vmem [shape: f32[9,4,4], index: 3, kind: input, shape index: {}]   ;;  %s8896_s4 = inlined_call_operand.vmem [shape: f32[1,4], index: 4, kind: input, shape index: {}]   ;;  %s8897_s5 = inlined_call_operand.vmem [shape: f32[2,16,16,4], index: 5, kind: output, shape index: {}]  }
   0x1 LB: > { %s5597_s19 = sadd.s32 4294967295, %s6242_s18   ;;  %p5601_p0 = scmp.ge.s32.totalorder %s6242_s18, 1  ;;  %s6242_s18 = sphi %s6275_s18, %s15_s18  }
   0x2   : > { %p187_p1 = scmp.lt.s32.totalorder %s6242_s18, 3 }
   0x4   : > { %p188_p2 = pnand %p5601_p0, %p187_p1 }
   0x6   : > { %191 = sbr.rel (%p188_p2) target bundleno = 1535 (0x5ff), region = 40 }
   0xb   : > { %v5606_v0 = vld [vmem:[%s8893_s1 + $0x4] sm:$0xf]  ;;  %vm563_vm0 = vcmask 1043456   ;;  %vm225_vm1 = vcmask 31744   ;;  %v6244_v1 = vmov 0.0   ;;  %p215_p3 = scmp.lt.s32.totalorder %s5597_s19, 1 }
   0xc   : > { %5607 = vmatpush.msk.msra.mxu0 %vm563_vm0, %v5606_v0  ;;  %226 = vst.msk [vmem:[#allocation2] sm:$0xff] %vm225_vm1, %v6244_v1  ;;  %6220 = vmatpush.msk.msra.mxu2 %vm563_vm0, %v5606_v0  ;;  %v432_v2 = vld [vmem:[%s8893_s1] sm:$0xf]  ;;  %v5673_v4 = vld [vmem:[%s8893_s1 + $0x8] sm:$0xf]  ;;  %vm228_vm2 = vcmask 25600  }
   0xd   : > { %227 = vst.msk [vmem:[#allocation2 + $0x8] sm:$0xff] %vm225_vm1, %v6244_v1  ;;  %6221 = vmatpush.msk.msra.mxu3 %vm563_vm0, %v432_v2  ;;  %5640 = vmatpush.msk.msra.mxu1 %vm563_vm0, %v432_v2  ;;  %s9209_s19 = smov (!%p215_p3, %s5597_s19), 1  ;;  %v5707_v6 = vld [vmem:[%s8893_s1 + $0xc] sm:$0xf]  ;;  %v5741_v11 = vld [vmem:[%s8893_s1 + $0x10] sm:$0xf] }
   0xe   : > { %230 = vst.msk [vmem:[#allocation2 + $0x18] sm:$0xff] %vm225_vm1, %v6244_v1  ;;  %5674 = vmatpush.msk.msrb.mxu2 %vm563_vm0, %v5673_v4  ;;  %s6218_s26 = sshll.u32 %s9209_s19, 8  ;;  %5742 = vmatpush.msk.msrb.mxu0 %vm563_vm0, %v5741_v11 }
   0xf   : > { %231 = vst.msk [vmem:[#allocation2 + $0x20] sm:$0xff] %vm225_vm1, %v6244_v1  ;;  %s6444_s29 = scalar_lea.vmem %s8892_s0, %s6218_s26  ;;  %5708 = vmatpush.msk.msrb.mxu3 %vm563_vm0, %v5707_v6  ;;  %s8656_s23 = scalar_lea.vmem %s8897_s5, %s6218_s26 }
  0x10   : > { %233 = vst.msk [vmem:[#allocation2 + $0x30] sm:$0xff] %vm225_vm1, %v6244_v1  ;;  %v349_v5 = vld [vmem:[%s6444_s29 + $0x70] sm:$0xff]  ;;  %v350_v13 = vld [vmem:[%s6444_s29 + $0x78] sm:$0xff]  ;;  %v335_v14 = vld [vmem:[%s6444_s29] sm:$0xff] }
  0x11   : > { %234 = vst.msk [vmem:[#allocation2 + $0x38] sm:$0xff] %vm225_vm1, %v6244_v1  ;;  %v351_v15 = vld [vmem:[%s6444_s29 + $0x80] sm:$0xff]  ;;  %v336_v16 = vld [vmem:[%s6444_s29 + $0x8] sm:$0xff]  ;;  %v337_v18 = vld [vmem:[%s6444_s29 + $0x10] sm:$0xff] }
  0x12   : > { %236 = vst.msk [vmem:[#allocation2 + $0x48] sm:$0xff] %vm225_vm1, %v6244_v1  ;;  %v352_v17 = vld [vmem:[%s6444_s29 + $0x88] sm:$0xff]  ;;  %v353_v19 = vld [vmem:[%s6444_s29 + $0x90] sm:$0xff]  ;;  %v338_v20 = vld [vmem:[%s6444_s29 + $0x18] sm:$0xff] }
  0x13   : > { %237 = vst.msk [vmem:[#allocation2 + $0x50] sm:$0xff] %vm225_vm1, %v6244_v1  ;;  %v400_v10 = vld [vmem:[#allocation2] sm:$0xff]  ;;  %v354_v21 = vld [vmem:[%s6444_s29 + $0x98] sm:$0xff]  ;;  %v340_v28 = vld [vmem:[%s6444_s29 + $0x28] sm:$0xff] }
  0x14   : > { %v433_v3 = vld [vmem:[#allocation2 + $0x1] sm:$0xff]  ;;  %239 = vst.msk [vmem:[#allocation2 + $0x60] sm:$0xff] %vm225_vm1, %v6244_v1  ;;  %5641 = vmatmul.msk.f32.vlgmr.msra.gmra.mxu1 %vm225_vm1, %v400_v10  ;;  %v341_v34 = vld [vmem:[%s6444_s29 + $0x30] sm:$0xff]  ;;  %v342_v40 = vld [vmem:[%s6444_s29 + $0x38] sm:$0xff] }
  0x15   : > { %5608 = vmatmul.msk.f32.vlgmr.msra.gmra.mxu0 %vm225_vm1, %v433_v3  ;;  %240 = vst.msk [vmem:[#allocation2 + $0x68] sm:$0xff] %vm225_vm1, %v6244_v1  ;;  %v401_v12 = vld [vmem:[#allocation2 + $0x8] sm:$0xff]  ;;  %v339_v22 = vld [vmem:[%s6444_s29 + $0x20] sm:$0xff]  ;;  %v357_v39 = vld [vmem:[%s6444_s29 + $0xb0] sm:$0xff] }
  0x16   : > { %242 = vst.msk [vmem:[#allocation2 + $0x78] sm:$0xff] %vm225_vm1, %v6244_v1  ;;  %v355_v25 = vld [vmem:[%s6444_s29 + $0xa0] sm:$0xff]  ;;  %v356_v33 = vld [vmem:[%s6444_s29 + $0xa8] sm:$0xff]  ;;  %v358_v45 = vld [vmem:[%s6444_s29 + $0xb8] sm:$0xff] }
  0x17   : > { %243 = vst.msk [vmem:[#allocation2 + $0x80] sm:$0xff] %vm225_vm1, %v6244_v1  ;;  %v343_v46 = vld [vmem:[%s6444_s29 + $0x40] sm:$0xff]  ;;  %v344_v52 = vld [vmem:[%s6444_s29 + $0x48] sm:$0xff]  ;;  %v345_v58 = vld [vmem:[%s6444_s29 + $0x50] sm:$0xff] }
  0x18   : > { %245 = vst.msk [vmem:[#allocation2 + $0x90] sm:$0xff] %vm225_vm1, %v6244_v1  ;;  %v359_v51 = vld [vmem:[%s6444_s29 + $0xc0] sm:$0xff]  ;;  %v360_v57 = vld [vmem:[%s6444_s29 + $0xc8] sm:$0xff]  ;;  %v361_v63 = vld [vmem:[%s6444_s29 + $0xd0] sm:$0xff] }
  0x19   : > { %246 = vst.msk [vmem:[#allocation2 + $0x98] sm:$0xff] %vm225_vm1, %v6244_v1  ;;  %v346_v0 = vld [vmem:[%s6444_s29 + $0x58] sm:$0xff]  ;;  %v347_v6 = vld [vmem:[%s6444_s29 + $0x60] sm:$0xff] }
  0x1a   : > { %248 = vst.msk [vmem:[#allocation2 + $0xa8] sm:$0xff] %vm225_vm1, %v6244_v1 }
  0x1b   : > { %249 = vst.msk [vmem:[#allocation2 + $0xb0] sm:$0xff] %vm225_vm1, %v6244_v1 }
  0x1c   : > { %251 = vst.msk [vmem:[#allocation2 + $0xc0] sm:$0xff] %vm225_vm1, %v6244_v1  ;;  %5642 = vmatmul.msk.f32.gmra.mxu1 %vm225_vm1, %v401_v12 }
  0x1d   : > { %252 = vst.msk [vmem:[#allocation2 + $0xc8] sm:$0xff] %vm225_vm1, %v6244_v1 }
  0x1e   : > { %254 = vst.msk [vmem:[#allocation2 + $0xd8] sm:$0xff] %vm225_vm1, %v6244_v1 }
  0x1f   : > { %255 = vst.msk [vmem:[#allocation2 + $0xe0] sm:$0xff] %vm225_vm1, %v6244_v1 }
  0x20   : > { %257 = vst.msk [vmem:[#allocation2 + $0xf0] sm:$0xff] %vm225_vm1, %v6244_v1 }
  0x21   : > { %258 = vst.msk [vmem:[#allocation2 + $0xf8] sm:$0xff] %vm225_vm1, %v6244_v1 }
  0x22   : > { %260 = vst.msk [vmem:[#allocation2 + $0x108] sm:$0xff] %vm225_vm1, %v6244_v1 }
  0x23   : > { %261 = vst.msk [vmem:[#allocation2 + $0x110] sm:$0xff] %vm225_vm1, %v6244_v1 }
  0x24   : > { %263 = vst.msk [vmem:[#allocation2 + $0x120] sm:$0xff] %vm225_vm1, %v6244_v1 }
  0x25   : > { %264 = vst.msk [vmem:[#allocation2 + $0x128] sm:$0xff] %vm225_vm1, %v6244_v1 }
  0x26   : > { %266 = vst.msk [vmem:[#allocation2 + $0x138] sm:$0xff] %vm225_vm1, %v6244_v1 }
  0x27   : > { %267 = vst.msk [vmem:[#allocation2 + $0x140] sm:$0xff] %vm225_vm1, %v6244_v1 }
  0x28   : > { %269 = vst.msk [vmem:[#allocation2 + $0x150] sm:$0xff] %vm225_vm1, %v6244_v1 }
  0x29   : > { %270 = vst.msk [vmem:[#allocation2 + $0x158] sm:$0xff] %vm225_vm1, %v6244_v1 }
  0x2a   : > { %272 = vst.msk [vmem:[#allocation2 + $0x168] sm:$0xff] %vm225_vm1, %v6244_v1 }
  0x2b   : > { %273 = vst.msk [vmem:[#allocation2 + $0x170] sm:$0xff] %vm225_vm1, %v6244_v1 }
  0x2c   : > { %275 = vst.msk [vmem:[#allocation2 + $0x180] sm:$0xff] %vm225_vm1, %v6244_v1 }
  0x2d   : > { %276 = vst.msk [vmem:[#allocation2 + $0x188] sm:$0xff] %vm225_vm1, %v6244_v1 }
  0x2e   : > { %278 = vst.msk [vmem:[#allocation2 + $0x198] sm:$0xff] %vm225_vm1, %v6244_v1 }
  0x2f   : > { %279 = vst.msk [vmem:[#allocation2 + $0x1a0] sm:$0xff] %vm225_vm1, %v6244_v1 }
  0x30   : > { %281 = vst.msk [vmem:[#allocation3] sm:$0xff] %vm225_vm1, %v6244_v1 }
  0x31   : > { %282 = vst.msk [vmem:[#allocation3 + $0x8] sm:$0xff] %vm225_vm1, %v6244_v1 }
  0x32   : > { %284 = vst.msk [vmem:[#allocation3 + $0x18] sm:$0xff] %vm225_vm1, %v6244_v1 }
  0x33   : > { %285 = vst.msk [vmem:[#allocation3 + $0x20] sm:$0xff] %vm225_vm1, %v6244_v1 }
  0x34   : > { %287 = vst.msk [vmem:[#allocation3 + $0x30] sm:$0xff] %vm225_vm1, %v6244_v1 }
  0x35   : > { %288 = vst.msk [vmem:[#allocation3 + $0x38] sm:$0xff] %vm225_vm1, %v6244_v1 }
  0x36   : > { %290 = vst.msk [vmem:[#allocation3 + $0x48] sm:$0xff] %vm225_vm1, %v6244_v1 }
  0x37   : > { %291 = vst.msk [vmem:[#allocation3 + $0x50] sm:$0xff] %vm225_vm1, %v6244_v1 }
  0x38   : > { %293 = vst.msk [vmem:[#allocation3 + $0x60] sm:$0xff] %vm225_vm1, %v6244_v1 }
  0x39   : > { %294 = vst.msk [vmem:[#allocation3 + $0x68] sm:$0xff] %vm225_vm1, %v6244_v1 }
  0x3a   : > { %296 = vst.msk [vmem:[#allocation3 + $0x78] sm:$0xff] %vm225_vm1, %v6244_v1 }
  0x3b   : > { %297 = vst.msk [vmem:[#allocation3 + $0x80] sm:$0xff] %vm225_vm1, %v6244_v1 }
  0x3c   : > { %299 = vst.msk [vmem:[#allocation3 + $0x90] sm:$0xff] %vm225_vm1, %v6244_v1 }
  0x3d   : > { %300 = vst.msk [vmem:[#allocation3 + $0x98] sm:$0xff] %vm225_vm1, %v6244_v1 }
  0x3e   : > { %302 = vst.msk [vmem:[#allocation3 + $0xa8] sm:$0xff] %vm225_vm1, %v6244_v1 }
  0x3f   : > { %303 = vst.msk [vmem:[#allocation3 + $0xb0] sm:$0xff] %vm225_vm1, %v6244_v1 }
  0x40   : > { %305 = vst.msk [vmem:[#allocation3 + $0xc0] sm:$0xff] %vm225_vm1, %v6244_v1 }
  0x41   : > { %306 = vst.msk [vmem:[#allocation3 + $0xc8] sm:$0xff] %vm225_vm1, %v6244_v1 }
  0x42   : > { %308 = vst.msk [vmem:[#allocation3 + $0xd8] sm:$0xff] %vm225_vm1, %v6244_v1 }
  0x43   : > { %309 = vst.msk [vmem:[#allocation3 + $0xe0] sm:$0xff] %vm225_vm1, %v6244_v1 }
  0x44   : > { %311 = vst.msk [vmem:[#allocation3 + $0xf0] sm:$0xff] %vm225_vm1, %v6244_v1 }
  0x45   : > { %312 = vst.msk [vmem:[#allocation3 + $0xf8] sm:$0xff] %vm225_vm1, %v6244_v1 }
  0x46   : > { %314 = vst.msk [vmem:[#allocation3 + $0x108] sm:$0xff] %vm225_vm1, %v6244_v1 }
  0x47   : > { %315 = vst.msk [vmem:[#allocation3 + $0x110] sm:$0xff] %vm225_vm1, %v6244_v1 }
  0x48   : > { %317 = vst.msk [vmem:[#allocation3 + $0x120] sm:$0xff] %vm225_vm1, %v6244_v1 }
  0x49   : > { %318 = vst.msk [vmem:[#allocation3 + $0x128] sm:$0xff] %vm225_vm1, %v6244_v1 }
  0x4a   : > { %320 = vst.msk [vmem:[#allocation3 + $0x138] sm:$0xff] %vm225_vm1, %v6244_v1 }
  0x4b   : > { %321 = vst.msk [vmem:[#allocation3 + $0x140] sm:$0xff] %vm225_vm1, %v6244_v1 }
  0x4c   : > { %323 = vst.msk [vmem:[#allocation3 + $0x150] sm:$0xff] %vm225_vm1, %v6244_v1 }
  0x4d   : > { %324 = vst.msk [vmem:[#allocation3 + $0x158] sm:$0xff] %vm225_vm1, %v6244_v1 }
  0x4e   : > { %326 = vst.msk [vmem:[#allocation3 + $0x168] sm:$0xff] %vm225_vm1, %v6244_v1 }
  0x4f   : > { %327 = vst.msk [vmem:[#allocation3 + $0x170] sm:$0xff] %vm225_vm1, %v6244_v1 }
  0x50   : > { %329 = vst.msk [vmem:[#allocation3 + $0x180] sm:$0xff] %vm225_vm1, %v6244_v1 }
  0x51   : > { %330 = vst.msk [vmem:[#allocation3 + $0x188] sm:$0xff] %vm225_vm1, %v6244_v1 }
  0x52   : > { %332 = vst.msk [vmem:[#allocation3 + $0x198] sm:$0xff] %vm225_vm1, %v6244_v1 }
  0x53   : > { %333 = vst.msk [vmem:[#allocation3 + $0x1a0] sm:$0xff] %vm225_vm1, %v6244_v1 }
  0x54   : > { %382 = vst.msk [vmem:[#allocation2 + $0xc1] sm:$0xff] %vm225_vm1, %v349_v5  ;;  %v362_v5 = vld [vmem:[%s6444_s29 + $0xd8] sm:$0xff] }
  0x55   : > { %229 = vst.msk [vmem:[#allocation2 + $0x10] sm:$0x3] %vm228_vm2, %v6244_v1 }
  0x56   : > { %232 = vst.msk [vmem:[#allocation2 + $0x28] sm:$0x3] %vm228_vm2, %v6244_v1 }
  0x57   : > { %235 = vst.msk [vmem:[#allocation2 + $0x40] sm:$0x3] %vm228_vm2, %v6244_v1 }
  0x58   : > { %238 = vst.msk [vmem:[#allocation2 + $0x58] sm:$0x3] %vm228_vm2, %v6244_v1 }
  0x59   : > { %241 = vst.msk [vmem:[#allocation2 + $0x70] sm:$0x3] %vm228_vm2, %v6244_v1 }
  0x5a   : > { %244 = vst.msk [vmem:[#allocation2 + $0x88] sm:$0x3] %vm228_vm2, %v6244_v1 }
  0x5b   : > { %v6474_v7 = vld [vmem:[#allocation2 + $0xc1] sm:$0xff]  ;;  %247 = vst.msk [vmem:[#allocation2 + $0xa0] sm:$0x3] %vm228_vm2, %v6244_v1 }
  0x5c   : > { %v6476_v8 = vld [vmem:[#allocation2 + $0xc0] sm:$0xff]  ;;  %5624 = vmatmul.msk.f32.vlgmr.msra.gmra.mxu2 %vm225_vm1, %v6474_v7  ;;  %v434_v9 = vld [vmem:[#allocation2 + $0x9] sm:$0xff]  ;;  %250 = vst.msk [vmem:[#allocation2 + $0xb8] sm:$0x3] %vm228_vm2, %v6244_v1 }
  0x5d   : > { %5657 = vmatmul.msk.f32.vlgmr.msra.gmra.mxu3 %vm225_vm1, %v6476_v8  ;;  %5609 = vmatmul.msk.f32.gmra.mxu0 %vm225_vm1, %v434_v9  ;;  %253 = vst.msk [vmem:[#allocation2 + $0xd0] sm:$0x3] %vm228_vm2, %v6244_v1 }
  0x5e   : > { %256 = vst.msk [vmem:[#allocation2 + $0xe8] sm:$0x3] %vm228_vm2, %v6244_v1 }
  0x5f   : > { %259 = vst.msk [vmem:[#allocation2 + $0x100] sm:$0x3] %vm228_vm2, %v6244_v1 }
  0x60   : > { %262 = vst.msk [vmem:[#allocation2 + $0x118] sm:$0x3] %vm228_vm2, %v6244_v1 }
  0x61   : > { %265 = vst.msk [vmem:[#allocation2 + $0x130] sm:$0x3] %vm228_vm2, %v6244_v1 }
  0x62   : > { %268 = vst.msk [vmem:[#allocation2 + $0x148] sm:$0x3] %vm228_vm2, %v6244_v1 }
  0x63   : > { %271 = vst.msk [vmem:[#allocation2 + $0x160] sm:$0x3] %vm228_vm2, %v6244_v1 }
  0x64   : > { %274 = vst.msk [vmem:[#allocation2 + $0x178] sm:$0x3] %vm228_vm2, %v6244_v1 }
  0x65   : > { %277 = vst.msk [vmem:[#allocation2 + $0x190] sm:$0x3] %vm228_vm2, %v6244_v1 }
  0x66   : > { %280 = vst.msk [vmem:[#allocation2 + $0x1a8] sm:$0x3] %vm228_vm2, %v6244_v1 }
  0x67   : > { %283 = vst.msk [vmem:[#allocation3 + $0x10] sm:$0x3] %vm228_vm2, %v6244_v1 }
  0x68   : > { %286 = vst.msk [vmem:[#allocation3 + $0x28] sm:$0x3] %vm228_vm2, %v6244_v1 }
  0x69   : > { %289 = vst.msk [vmem:[#allocation3 + $0x40] sm:$0x3] %vm228_vm2, %v6244_v1 }
  0x6a   : > { %292 = vst.msk [vmem:[#allocation3 + $0x58] sm:$0x3] %vm228_vm2, %v6244_v1 }
  0x6b   : > { %295 = vst.msk [vmem:[#allocation3 + $0x70] sm:$0x3] %vm228_vm2, %v6244_v1 }
  0x6c   : > { %298 = vst.msk [vmem:[#allocation3 + $0x88] sm:$0x3] %vm228_vm2, %v6244_v1 }
  0x6d   : > { %301 = vst.msk [vmem:[#allocation3 + $0xa0] sm:$0x3] %vm228_vm2, %v6244_v1 }
  0x6e   : > { %304 = vst.msk [vmem:[#allocation3 + $0xb8] sm:$0x3] %vm228_vm2, %v6244_v1 }
  0x6f   : > { %307 = vst.msk [vmem:[#allocation3 + $0xd0] sm:$0x3] %vm228_vm2, %v6244_v1 }
  0x70   : > { %310 = vst.msk [vmem:[#allocation3 + $0xe8] sm:$0x3] %vm228_vm2, %v6244_v1 }
  0x71   : > { %313 = vst.msk [vmem:[#allocation3 + $0x100] sm:$0x3] %vm228_vm2, %v6244_v1 }
  0x72   : > { %316 = vst.msk [vmem:[#allocation3 + $0x118] sm:$0x3] %vm228_vm2, %v6244_v1 }
  0x73   : > { %319 = vst.msk [vmem:[#allocation3 + $0x130] sm:$0x3] %vm228_vm2, %v6244_v1 }
  0x74   : > { %322 = vst.msk [vmem:[#allocation3 + $0x148] sm:$0x3] %vm228_vm2, %v6244_v1 }
  0x75   : > { %325 = vst.msk [vmem:[#allocation3 + $0x160] sm:$0x3] %vm228_vm2, %v6244_v1 }
  0x76   : > { %328 = vst.msk [vmem:[#allocation3 + $0x178] sm:$0x3] %vm228_vm2, %v6244_v1 }
  0x77   : > { %331 = vst.msk [vmem:[#allocation3 + $0x190] sm:$0x3] %vm228_vm2, %v6244_v1 }
  0x78   : > { %334 = vst.msk [vmem:[#allocation3 + $0x1a8] sm:$0x3] %vm228_vm2, %v6244_v1 }
  0x79   : > { %383 = vst.msk [vmem:[#allocation2 + $0xc9] sm:$0xff] %vm225_vm1, %v350_v13  ;;  %v363_v13 = vld [vmem:[%s6444_s29 + $0xe0] sm:$0xff] }
  0x7a   : > { %368 = vst.msk [vmem:[#allocation2 + $0x19] sm:$0xff] %vm225_vm1, %v335_v14  ;;  %v348_v14 = vld [vmem:[%s6444_s29 + $0x68] sm:$0xff] }
  0x7b   : > { %384 = vst.msk [vmem:[#allocation2 + $0xd9] sm:$0xff] %vm225_vm1, %v351_v15 }
  0x7c   : > { %369 = vst.msk [vmem:[#allocation2 + $0x21] sm:$0xff] %vm225_vm1, %v336_v16 }
  0x7d   : > { %385 = vst.msk [vmem:[#allocation2 + $0xe1] sm:$0xff] %vm225_vm1, %v352_v17 }
  0x7e   : > { %370 = vst.msk [vmem:[#allocation2 + $0x31] sm:$0xff] %vm225_vm1, %v337_v18 }
  0x7f   : > { %386 = vst.msk [vmem:[#allocation2 + $0xf1] sm:$0xff] %vm225_vm1, %v353_v19  ;;  %v364_v19 = vld [vmem:[%s6444_s29 + $0xe8] sm:$0xff] }
  0x80   : > { %v6566_v23 = vld [vmem:[#allocation2 + $0xc9] sm:$0xff]  ;;  %371 = vst.msk [vmem:[#allocation2 + $0x39] sm:$0xff] %vm225_vm1, %v338_v20 }
  0x81   : > { %v6568_v24 = vld [vmem:[#allocation2 + $0xc8] sm:$0xff]  ;;  %5625 = vmatmul.msk.f32.gmra.mxu2 %vm225_vm1, %v6566_v23  ;;  %v6576_v26 = vld [vmem:[#allocation2 + $0x19] sm:$0xff]  ;;  %387 = vst.msk [vmem:[#allocation2 + $0xf9] sm:$0xff] %vm225_vm1, %v354_v21 }
  0x82   : > { %5658 = vmatmul.msk.f32.gmra.mxu3 %vm225_vm1, %v6568_v24  ;;  %v6578_v27 = vld [vmem:[#allocation2 + $0x18] sm:$0xff]  ;;  %5610 = vmatmul.msk.f32.gmra.mxu0 %vm225_vm1, %v6576_v26  ;;  %372 = vst.msk [vmem:[#allocation2 + $0x49] sm:$0xff] %vm225_vm1, %v339_v22 }
  0x83   : > { %5643 = vmatmul.msk.f32.gmra.mxu1 %vm225_vm1, %v6578_v27  ;;  %388 = vst.msk [vmem:[#allocation2 + $0x109] sm:$0xff] %vm225_vm1, %v355_v25  ;;  %v6589_v29 = vld [vmem:[#allocation2 + $0xd9] sm:$0xff]  ;;  %v6593_v31 = vld [vmem:[#allocation2 + $0x21] sm:$0xff] }
  0x84   : > { %373 = vst.msk [vmem:[#allocation2 + $0x51] sm:$0xff] %vm225_vm1, %v340_v28  ;;  %v6591_v30 = vld [vmem:[#allocation2 + $0xd8] sm:$0xff]  ;;  %v6595_v32 = vld [vmem:[#allocation2 + $0x20] sm:$0xff] }
  0x85   : > { %389 = vst.msk [vmem:[#allocation2 + $0x111] sm:$0xff] %vm225_vm1, %v356_v33  ;;  %v6609_v35 = vld [vmem:[#allocation2 + $0xe1] sm:$0xff]  ;;  %v6613_v37 = vld [vmem:[#allocation2 + $0x31] sm:$0xff] }
  0x86   : > { %374 = vst.msk [vmem:[#allocation2 + $0x61] sm:$0xff] %vm225_vm1, %v341_v34  ;;  %v6611_v36 = vld [vmem:[#allocation2 + $0xe0] sm:$0xff]  ;;  %v6615_v38 = vld [vmem:[#allocation2 + $0x30] sm:$0xff] }
  0x87   : > { %390 = vst.msk [vmem:[#allocation2 + $0x121] sm:$0xff] %vm225_vm1, %v357_v39  ;;  %v6629_v41 = vld [vmem:[#allocation2 + $0xf1] sm:$0xff]  ;;  %v6633_v43 = vld [vmem:[#allocation2 + $0x39] sm:$0xff] }
  0x88   : > { %375 = vst.msk [vmem:[#allocation2 + $0x69] sm:$0xff] %vm225_vm1, %v342_v40  ;;  %v6631_v42 = vld [vmem:[#allocation2 + $0xf0] sm:$0xff]  ;;  %v6635_v44 = vld [vmem:[#allocation2 + $0x38] sm:$0xff] }
  0x89   : > { %5626 = vmatmul.msk.f32.gmra.mxu2 %vm225_vm1, %v6589_v29  ;;  %391 = vst.msk [vmem:[#allocation2 + $0x129] sm:$0xff] %vm225_vm1, %v358_v45  ;;  %v6649_v47 = vld [vmem:[#allocation2 + $0xf9] sm:$0xff]  ;;  %v6653_v49 = vld [vmem:[#allocation2 + $0x49] sm:$0xff] }
  0x8a   : > { %5659 = vmatmul.msk.f32.gmra.mxu3 %vm225_vm1, %v6591_v30  ;;  %5611 = vmatmul.msk.f32.gmra.mxu0 %vm225_vm1, %v6593_v31  ;;  %376 = vst.msk [vmem:[#allocation2 + $0x79] sm:$0xff] %vm225_vm1, %v343_v46  ;;  %v6651_v48 = vld [vmem:[#allocation2 + $0xf8] sm:$0xff]  ;;  %v6655_v50 = vld [vmem:[#allocation2 + $0x48] sm:$0xff]  ;;  %v5775_v46 = vld [vmem:[%s8893_s1 + $0x14] sm:$0xf] }
  0x8b   : > { %5644 = vmatmul.msk.f32.gmra.mxu1 %vm225_vm1, %v6595_v32  ;;  %392 = vst.msk [vmem:[#allocation2 + $0x139] sm:$0xff] %vm225_vm1, %v359_v51  ;;  %v6669_v53 = vld [vmem:[#allocation2 + $0x109] sm:$0xff]  ;;  %v6673_v55 = vld [vmem:[#allocation2 + $0x51] sm:$0xff]  ;;  %v5843_v45 = vld [vmem:[%s8893_s1 + $0x1c] sm:$0xf] }
  0x8c   : > { %377 = vst.msk [vmem:[#allocation2 + $0x81] sm:$0xff] %vm225_vm1, %v344_v52  ;;  %v6671_v54 = vld [vmem:[#allocation2 + $0x108] sm:$0xff]  ;;  %v6675_v56 = vld [vmem:[#allocation2 + $0x50] sm:$0xff]  ;;  %v5809_v40 = vld [vmem:[%s8893_s1 + $0x18] sm:$0xf]  ;;  %5844 = vmatpush.msk.msra.mxu3 %vm563_vm0, %v5843_v45  ;;  %5776 = vmatpush.msk.msrb.mxu1 %vm563_vm0, %v5775_v46 }
  0x8d   : > { %393 = vst.msk [vmem:[#allocation2 + $0x141] sm:$0xff] %vm225_vm1, %v360_v57  ;;  %v6689_v59 = vld [vmem:[#allocation2 + $0x111] sm:$0xff]  ;;  %v6693_v61 = vld [vmem:[#allocation2 + $0x61] sm:$0xff]  ;;  %5810 = vmatpush.msk.msra.mxu2 %vm563_vm0, %v5809_v40 }
  0x8e   : > { %378 = vst.msk [vmem:[#allocation2 + $0x91] sm:$0xff] %vm225_vm1, %v345_v58  ;;  %v6691_v60 = vld [vmem:[#allocation2 + $0x110] sm:$0xff]  ;;  %v6695_v62 = vld [vmem:[#allocation2 + $0x60] sm:$0xff] }
  0x8f   : > { %394 = vst.msk [vmem:[#allocation2 + $0x151] sm:$0xff] %vm225_vm1, %v361_v63  ;;  %v6709_v1 = vld [vmem:[#allocation2 + $0x121] sm:$0xff]  ;;  %v6713_v3 = vld [vmem:[#allocation2 + $0x69] sm:$0xff] }
  0x90   : > { %379 = vst.msk [vmem:[#allocation2 + $0x99] sm:$0xff] %vm225_vm1, %v346_v0  ;;  %v6711_v2 = vld [vmem:[#allocation2 + $0x120] sm:$0xff]  ;;  %v6715_v4 = vld [vmem:[#allocation2 + $0x68] sm:$0xff] }
  0x91   : > { %5627 = vmatmul.msk.f32.gmra.mxu2 %vm225_vm1, %v6609_v35  ;;  %395 = vst.msk [vmem:[#allocation2 + $0x159] sm:$0xff] %vm225_vm1, %v362_v5  ;;  %v6729_v9 = vld [vmem:[#allocation2 + $0x129] sm:$0xff]  ;;  %v6733_v11 = vld [vmem:[#allocation2 + $0x79] sm:$0xff] }
  0x92   : > { %5660 = vmatmul.msk.f32.gmra.mxu3 %vm225_vm1, %v6611_v36  ;;  %5612 = vmatmul.msk.f32.gmra.mxu0 %vm225_vm1, %v6613_v37  ;;  %380 = vst.msk [vmem:[#allocation2 + $0xa9] sm:$0xff] %vm225_vm1, %v347_v6  ;;  %v6731_v10 = vld [vmem:[#allocation2 + $0x128] sm:$0xff]  ;;  %v6735_v12 = vld [vmem:[#allocation2 + $0x78] sm:$0xff]  ;;  %v5877_v63 = vld [vmem:[%s8893_s1 + $0x20] sm:$0xf] }
  0x93   : > { %5645 = vmatmul.msk.f32.gmra.mxu1 %vm225_vm1, %v6615_v38  ;;  %396 = vst.msk [vmem:[#allocation2 + $0x169] sm:$0xff] %vm225_vm1, %v363_v13  ;;  %v6749_v15 = vld [vmem:[#allocation2 + $0x139] sm:$0xff]  ;;  %v6753_v17 = vld [vmem:[#allocation2 + $0x81] sm:$0xff]  ;;  %5878 = vmatpush.msk.msra.mxu0 %vm563_vm0, %v5877_v63 }
  0x94   : > { %381 = vst.msk [vmem:[#allocation2 + $0xb1] sm:$0xff] %vm225_vm1, %v348_v14  ;;  %v6751_v16 = vld [vmem:[#allocation2 + $0x138] sm:$0xff]  ;;  %v6755_v18 = vld [vmem:[#allocation2 + $0x80] sm:$0xff]  ;;  %v6847_v14 = vpop.f32.mrf.mxu0 }
  0x95   : > { %397 = vst.msk [vmem:[#allocation2 + $0x171] sm:$0xff] %vm225_vm1, %v364_v19  ;;  %v6767_v20 = vld [vmem:[#allocation2 + $0x141] sm:$0xff]  ;;  %v6771_v22 = vld [vmem:[#allocation2 + $0x91] sm:$0xff]  ;;  %v6849_v19 = vpop.f32.mrf.mxu1 }
  0x96   : > { %v6769_v21 = vld [vmem:[#allocation2 + $0x140] sm:$0xff]  ;;  %v6773_v25 = vld [vmem:[#allocation2 + $0x90] sm:$0xff] }
  0x97   : > { %8964 = vst [vmem:[#allocation4_spill] sm:$0xff] %v6769_v21  ;;  %v6783_v28 = vld [vmem:[#allocation2 + $0x151] sm:$0xff]  ;;  %v6787_v34 = vld [vmem:[#allocation2 + $0x99] sm:$0xff] }
  0x98   : > { %8965 = vst [vmem:[#allocation5_spill] sm:$0xff] %v6783_v28  ;;  %v6785_v33 = vld [vmem:[#allocation2 + $0x150] sm:$0xff]  ;;  %v6789_v39 = vld [vmem:[#allocation2 + $0x98] sm:$0xff] }
  0x99   : > { %5628 = vmatmul.msk.f32.gmra.mxu2 %vm225_vm1, %v6629_v41  ;;  %8966 = vst [vmem:[#allocation6_spill] sm:$0xff] %v6785_v33  ;;  %v6811_v51 = vld [vmem:[#allocation2 + $0x159] sm:$0xff]  ;;  %v6815_v57 = vld [vmem:[#allocation2 + $0xa9] sm:$0xff] }
  0x9a   : > { %5661 = vmatmul.msk.f32.gmra.mxu3 %vm225_vm1, %v6631_v42  ;;  %5613 = vmatmul.msk.f32.gmra.mxu0 %vm225_vm1, %v6633_v43  ;;  %8967 = vst [vmem:[#allocation7_spill] sm:$0xff] %v6811_v51  ;;  %v6813_v52 = vld [vmem:[#allocation2 + $0x158] sm:$0xff]  ;;  %v6817_v58 = vld [vmem:[#allocation2 + $0xa8] sm:$0xff] }
  0x9b   : > { %5646 = vmatmul.msk.f32.gmra.mxu1 %vm225_vm1, %v6635_v44  ;;  %8968 = vst [vmem:[#allocation8_spill] sm:$0xff] %v6813_v52  ;;  %v6831_v0 = vld [vmem:[#allocation2 + $0x169] sm:$0xff]  ;;  %v6835_v6 = vld [vmem:[#allocation2 + $0xb1] sm:$0xff]  ;;  %v1726_v46 = vld [vmem:[#allocation2 + $0x1a] sm:$0xff] }
  0x9c   : > { %8969 = vst [vmem:[#allocation9_spill] sm:$0xff] %v6831_v0  ;;  %v6833_v5 = vld [vmem:[#allocation2 + $0x168] sm:$0xff]  ;;  %v6837_v13 = vld [vmem:[#allocation2 + $0xb0] sm:$0xff] }
  0x9d   : > { %8970 = vst [vmem:[#allocation10_spill] sm:$0xff] %v6833_v5  ;;  %v6851_v40 = vld [vmem:[#allocation2 + $0x171] sm:$0xff] }
  0x9e   : > { %8971 = vst [vmem:[#allocation11_spill] sm:$0xff] %v6851_v40  ;;  %v6853_v45 = vld [vmem:[#allocation2 + $0x170] sm:$0xff] }
  0x9f   : > { %8972 = vst [vmem:[#allocation12_spill] sm:$0xff] %v6853_v45 }
  0xa1   : > { %5629 = vmatmul.msk.f32.gmra.mxu2 %vm225_vm1, %v6649_v47 }
  0xa2   : > { %5662 = vmatmul.msk.f32.gmra.mxu3 %vm225_vm1, %v6651_v48  ;;  %5614 = vmatmul.msk.f32.gmra.mxu0 %vm225_vm1, %v6653_v49 }
  0xa3   : > { %5647 = vmatmul.msk.f32.gmra.mxu1 %vm225_vm1, %v6655_v50 }
  0xa9   : > { %5630 = vmatmul.msk.f32.gmra.mxu2 %vm225_vm1, %v6669_v53 }
  0xaa   : > { %5663 = vmatmul.msk.f32.gmra.mxu3 %vm225_vm1, %v6671_v54  ;;  %5615 = vmatmul.msk.f32.gmra.mxu0 %vm225_vm1, %v6673_v55 }
  0xab   : > { %5648 = vmatmul.msk.f32.gmra.mxu1 %vm225_vm1, %v6675_v56 }
  0xb1   : > { %5631 = vmatmul.msk.f32.gmra.mxu2 %vm225_vm1, %v6689_v59 }
  0xb2   : > { %5664 = vmatmul.msk.f32.gmra.mxu3 %vm225_vm1, %v6691_v60  ;;  %5616 = vmatmul.msk.f32.gmra.mxu0 %vm225_vm1, %v6693_v61 }
  0xb3   : > { %5649 = vmatmul.msk.f32.gmra.mxu1 %vm225_vm1, %v6695_v62 }
  0xb9   : > { %5632 = vmatmul.msk.f32.gmra.mxu2 %vm225_vm1, %v6709_v1 }
  0xba   : > { %5665 = vmatmul.msk.f32.gmra.mxu3 %vm225_vm1, %v6711_v2  ;;  %5617 = vmatmul.msk.f32.gmra.mxu0 %vm225_vm1, %v6713_v3 }
  0xbb   : > { %5650 = vmatmul.msk.f32.gmra.mxu1 %vm225_vm1, %v6715_v4 }
  0xc1   : > { %5633 = vmatmul.msk.f32.gmra.mxu2 %vm225_vm1, %v6729_v9 }
  0xc2   : > { %5666 = vmatmul.msk.f32.gmra.mxu3 %vm225_vm1, %v6731_v10  ;;  %5618 = vmatmul.msk.f32.gmra.mxu0 %vm225_vm1, %v6733_v11 }
  0xc3   : > { %5651 = vmatmul.msk.f32.gmra.mxu1 %vm225_vm1, %v6735_v12 }
  0xc9   : > { %5634 = vmatmul.msk.f32.gmra.mxu2 %vm225_vm1, %v6749_v15 }
  0xca   : > { %5667 = vmatmul.msk.f32.gmra.mxu3 %vm225_vm1, %v6751_v16  ;;  %5619 = vmatmul.msk.f32.gmra.mxu0 %vm225_vm1, %v6753_v17 }
  0xcb   : > { %5652 = vmatmul.msk.f32.gmra.mxu1 %vm225_vm1, %v6755_v18 }
  0xd1   : > { %5635 = vmatmul.msk.f32.gmra.mxu2 %vm225_vm1, %v6767_v20 }
  0xd2   : > { %5668 = vmatmul.msk.f32.gmra.mxu3 %vm225_vm1, %v6769_v21  ;;  %5620 = vmatmul.msk.f32.gmra.mxu0 %vm225_vm1, %v6771_v22  ;;  %v6895_v21 = vld [vmem:[#allocation2 + $0x3a] sm:$0xff] }
  0xd3   : > { %5653 = vmatmul.msk.f32.gmra.mxu1 %vm225_vm1, %v6773_v25  ;;  %8977 = vst [vmem:[#allocation17_spill] sm:$0xff] %v6895_v21 }
  0xd9   : > { %5636 = vmatmul.msk.f32.gmra.mxu2 %vm225_vm1, %v6783_v28  ;;  %v6880_v28 = vld [vmem:[#allocation2 + $0x32] sm:$0xff] }
  0xda   : > { %5669 = vmatmul.msk.f32.gmra.mxu3 %vm225_vm1, %v6785_v33  ;;  %5621 = vmatmul.msk.f32.gmra.mxu0 %vm225_vm1, %v6787_v34  ;;  %v6862_v63 = vpop.f32.mrf.mxu0  ;;  %8975 = vst [vmem:[#allocation15_spill] sm:$0xff] %v6880_v28 }
  0xdb   : > { %5654 = vmatmul.msk.f32.gmra.mxu1 %vm225_vm1, %v6789_v39 }
  0xe1   : > { %5637 = vmatmul.msk.f32.gmra.mxu2 %vm225_vm1, %v6811_v51 }
  0xe2   : > { %5670 = vmatmul.msk.f32.gmra.mxu3 %vm225_vm1, %v6813_v52  ;;  %5622 = vmatmul.msk.f32.gmra.mxu0 %vm225_vm1, %v6815_v57  ;;  %v1727_v52 = vld [vmem:[#allocation2 + $0x22] sm:$0xff] }
  0xe3   : > { %5655 = vmatmul.msk.f32.gmra.mxu1 %vm225_vm1, %v6817_v58 }
  0xe9   : > { %5638 = vmatmul.msk.f32.gmra.mxu2 %vm225_vm1, %v6831_v0  ;;  %v892_v0 = vld [vmem:[#allocation2 + $0x2] sm:$0xff] }
  0xea   : > { %5671 = vmatmul.msk.f32.gmra.mxu3 %vm225_vm1, %v6833_v5  ;;  %5623 = vmatmul.msk.f32.gmra.mxu0 %vm225_vm1, %v6835_v6  ;;  %v6864_v5 = vpop.f32.mrf.mxu1 }
  0xeb   : > { %5656 = vmatmul.msk.f32.gmra.mxu1 %vm225_vm1, %v6837_v13 }
  0xf1   : > { %5639 = vmatmul.msk.f32.gmra.mxu2 %vm225_vm1, %v6851_v40  ;;  %v6873_v40 = vpop.f32.mrf.mxu3 }
  0xf2   : > { %5672 = vmatmul.msk.f32.gmra.mxu3 %vm225_vm1, %v6853_v45  ;;  %5743 = vmatmul.msk.f32.vlgmr.msrb.gmra.mxu0 %vm225_vm1, %v6576_v26  ;;  %v6871_v45 = vpop.f32.mrf.mxu2  ;;  %8974 = vst [vmem:[#allocation14_spill] sm:$0xff] %v6873_v40  ;;  %v893_v26 = vld [vmem:[#allocation2 + $0xa] sm:$0xff] }
  0xf3   : > { %5777 = vmatmul.msk.f32.vlgmr.msrb.gmra.mxu1 %vm225_vm1, %v1726_v46  ;;  %8973 = vst [vmem:[#allocation13_spill] sm:$0xff] %v6871_v45 }
  0xf9   : > { %5675 = vmatmul.msk.f32.vlgmr.msrb.gmra.mxu2 %vm225_vm1, %v892_v0 }
  0xfa   : > { %5709 = vmatmul.msk.f32.vlgmr.msrb.gmra.mxu3 %vm225_vm1, %v6578_v27  ;;  %5744 = vmatmul.msk.f32.gmra.mxu0 %vm225_vm1, %v6593_v31 }
  0xfb   : > { %5778 = vmatmul.msk.f32.gmra.mxu1 %vm225_vm1, %v1727_v52 }
  0xff   : > { %v6876_v51 = vpop.f32.mrf.mxu0 }
 0x100   : > { %v6878_v33 = vpop.f32.mrf.mxu1 }
 0x101   : > { %5676 = vmatmul.msk.f32.gmra.mxu2 %vm225_vm1, %v893_v26 }
 0x102   : > { %5710 = vmatmul.msk.f32.gmra.mxu3 %vm225_vm1, %v6595_v32  ;;  %5745 = vmatmul.msk.f32.gmra.mxu0 %vm225_vm1, %v6613_v37 }
 0x103   : > { %5779 = vmatmul.msk.f32.gmra.mxu1 %vm225_vm1, %v6880_v28 }
 0x104   : > { %v635_v27 = vpop.f32.mrf.mxu2 }
 0x105   : > { %v847_v31 = vpop.f32.mrf.mxu3 }
 0x106   : > { %v6889_v0 = vadd.f32 %v847_v31, %v635_v27 }
 0x107   : > { %v6891_v40 = vpop.f32.mrf.mxu0 }
 0x108   : > { %8976 = vst [vmem:[#allocation16_spill] sm:$0xff] %v6889_v0  ;;  %v6893_v45 = vpop.f32.mrf.mxu1  ;;  %v6910_v0 = vld [vmem:[#allocation2 + $0x4a] sm:$0xff] }
 0x109   : > { %5677 = vmatmul.msk.f32.gmra.mxu2 %vm225_vm1, %v1726_v46  ;;  %8979 = vst [vmem:[#allocation19_spill] sm:$0xff] %v6910_v0 }
 0x10a   : > { %5711 = vmatmul.msk.f32.gmra.mxu3 %vm225_vm1, %v6615_v38  ;;  %5746 = vmatmul.msk.f32.gmra.mxu0 %vm225_vm1, %v6633_v43 }
 0x10b   : > { %5780 = vmatmul.msk.f32.gmra.mxu1 %vm225_vm1, %v6895_v21 }
 0x10c   : > { %v638_v32 = vpop.f32.mrf.mxu2 }
 0x10d   : > { %v850_v37 = vpop.f32.mrf.mxu3 }
 0x10e   : > { %v6904_v26 = vadd.f32 %v850_v37, %v638_v32 }
 0x10f   : > { %v6906_v27 = vpop.f32.mrf.mxu0 }
 0x110   : > { %8978 = vst [vmem:[#allocation18_spill] sm:$0xff] %v6904_v26  ;;  %v6908_v31 = vpop.f32.mrf.mxu1  ;;  %v6925_v26 = vld [vmem:[#allocation2 + $0x52] sm:$0xff] }
 0x111   : > { %5678 = vmatmul.msk.f32.gmra.mxu2 %vm225_vm1, %v1727_v52  ;;  %8981 = vst [vmem:[#allocation21_spill] sm:$0xff] %v6925_v26 }
 0x112   : > { %5712 = vmatmul.msk.f32.gmra.mxu3 %vm225_vm1, %v6635_v44  ;;  %5747 = vmatmul.msk.f32.gmra.mxu0 %vm225_vm1, %v6653_v49 }
 0x113   : > { %5781 = vmatmul.msk.f32.gmra.mxu1 %vm225_vm1, %v6910_v0 }
 0x114   : > { %v641_v38 = vpop.f32.mrf.mxu2 }
 0x115   : > { %v853_v43 = vpop.f32.mrf.mxu3 }
 0x116   : > { %v6919_v46 = vadd.f32 %v853_v43, %v641_v38 }
 0x117   : > { %v6921_v32 = vpop.f32.mrf.mxu0 }
 0x118   : > { %8980 = vst [vmem:[#allocation20_spill] sm:$0xff] %v6919_v46  ;;  %v6923_v37 = vpop.f32.mrf.mxu1  ;;  %v6941_v46 = vld [vmem:[#allocation2 + $0x62] sm:$0xff] }
 0x119   : > { %5679 = vmatmul.msk.f32.gmra.mxu2 %vm225_vm1, %v6880_v28  ;;  %8983 = vst [vmem:[#allocation23_spill] sm:$0xff] %v6941_v46  ;;  %v6957_v28 = vld [vmem:[#allocation2 + $0x6a] sm:$0xff] }
 0x11a   : > { %5713 = vmatmul.msk.f32.gmra.mxu3 %vm225_vm1, %v6655_v50  ;;  %5748 = vmatmul.msk.f32.gmra.mxu0 %vm225_vm1, %v6673_v55  ;;  %8985 = vst [vmem:[#allocation25_spill] sm:$0xff] %v6957_v28 }
 0x11b   : > { %5782 = vmatmul.msk.f32.gmra.mxu1 %vm225_vm1, %v6925_v26 }
 0x11c   : > { %v644_v44 = vpop.f32.mrf.mxu2 }
 0x11d   : > { %v856_v49 = vpop.f32.mrf.mxu3 }
 0x11e   : > { %v6935_v52 = vadd.f32 %v856_v49, %v644_v44 }
 0x11f   : > { %v6937_v38 = vpop.f32.mrf.mxu0 }
 0x120   : > { %8982 = vst [vmem:[#allocation22_spill] sm:$0xff] %v6935_v52  ;;  %v6939_v43 = vpop.f32.mrf.mxu1 }
 0x121   : > { %5680 = vmatmul.msk.f32.gmra.mxu2 %vm225_vm1, %v6895_v21  ;;  %v6973_v21 = vld [vmem:[#allocation2 + $0x7a] sm:$0xff] }
 0x122   : > { %5714 = vmatmul.msk.f32.gmra.mxu3 %vm225_vm1, %v6675_v56  ;;  %5749 = vmatmul.msk.f32.gmra.mxu0 %vm225_vm1, %v6693_v61  ;;  %8987 = vst [vmem:[#allocation27_spill] sm:$0xff] %v6973_v21 }
 0x123   : > { %5783 = vmatmul.msk.f32.gmra.mxu1 %vm225_vm1, %v6941_v46 }
 0x124   : > { %v647_v50 = vpop.f32.mrf.mxu2 }
 0x125   : > { %v859_v55 = vpop.f32.mrf.mxu3 }
 0x126   : > { %v6951_v44 = vadd.f32 %v859_v55, %v647_v50 }
 0x127   : > { %v6953_v49 = vpop.f32.mrf.mxu0 }
 0x128   : > { %8984 = vst [vmem:[#allocation24_spill] sm:$0xff] %v6951_v44  ;;  %v6955_v52 = vpop.f32.mrf.mxu1 }
 0x129   : > { %5681 = vmatmul.msk.f32.gmra.mxu2 %vm225_vm1, %v6910_v0  ;;  %v6989_v0 = vld [vmem:[#allocation2 + $0x82] sm:$0xff] }
 0x12a   : > { %5715 = vmatmul.msk.f32.gmra.mxu3 %vm225_vm1, %v6695_v62  ;;  %5750 = vmatmul.msk.f32.gmra.mxu0 %vm225_vm1, %v6713_v3  ;;  %8989 = vst [vmem:[#allocation29_spill] sm:$0xff] %v6989_v0 }
 0x12b   : > { %5784 = vmatmul.msk.f32.gmra.mxu1 %vm225_vm1, %v6957_v28 }
 0x12c   : > { %v650_v56 = vpop.f32.mrf.mxu2 }
 0x12d   : > { %v862_v61 = vpop.f32.mrf.mxu3 }
 0x12e   : > { %v6967_v50 = vadd.f32 %v862_v61, %v650_v56 }
 0x12f   : > { %v6969_v55 = vpop.f32.mrf.mxu0 }
 0x130   : > { %8986 = vst [vmem:[#allocation26_spill] sm:$0xff] %v6967_v50  ;;  %v6971_v44 = vpop.f32.mrf.mxu1 }
 0x131   : > { %5682 = vmatmul.msk.f32.gmra.mxu2 %vm225_vm1, %v6925_v26  ;;  %v7005_v26 = vld [vmem:[#allocation2 + $0x92] sm:$0xff] }
 0x132   : > { %5716 = vmatmul.msk.f32.gmra.mxu3 %vm225_vm1, %v6715_v4  ;;  %5751 = vmatmul.msk.f32.gmra.mxu0 %vm225_vm1, %v6733_v11  ;;  %8991 = vst [vmem:[#allocation31_spill] sm:$0xff] %v7005_v26 }
 0x133   : > { %5785 = vmatmul.msk.f32.gmra.mxu1 %vm225_vm1, %v6973_v21 }
 0x134   : > { %v653_v62 = vpop.f32.mrf.mxu2 }
 0x135   : > { %v865_v3 = vpop.f32.mrf.mxu3 }
 0x136   : > { %v6983_v56 = vadd.f32 %v865_v3, %v653_v62 }
 0x137   : > { %v6985_v61 = vpop.f32.mrf.mxu0 }
 0x138   : > { %8988 = vst [vmem:[#allocation28_spill] sm:$0xff] %v6983_v56  ;;  %v6987_v50 = vpop.f32.mrf.mxu1 }
 0x139   : > { %5683 = vmatmul.msk.f32.gmra.mxu2 %vm225_vm1, %v6941_v46  ;;  %v7021_v46 = vld [vmem:[#allocation2 + $0x9a] sm:$0xff] }
 0x13a   : > { %5717 = vmatmul.msk.f32.gmra.mxu3 %vm225_vm1, %v6735_v12  ;;  %5752 = vmatmul.msk.f32.gmra.mxu0 %vm225_vm1, %v6753_v17  ;;  %8993 = vst [vmem:[#allocation33_spill] sm:$0xff] %v7021_v46 }
 0x13b   : > { %5786 = vmatmul.msk.f32.gmra.mxu1 %vm225_vm1, %v6989_v0 }
 0x13c   : > { %v656_v4 = vpop.f32.mrf.mxu2 }
 0x13d   : > { %v868_v11 = vpop.f32.mrf.mxu3 }
 0x13e   : > { %v6999_v62 = vadd.f32 %v868_v11, %v656_v4 }
 0x13f   : > { %v7001_v3 = vpop.f32.mrf.mxu0 }
 0x140   : > { %8990 = vst [vmem:[#allocation30_spill] sm:$0xff] %v6999_v62  ;;  %v7003_v56 = vpop.f32.mrf.mxu1 }
 0x141   : > { %5684 = vmatmul.msk.f32.gmra.mxu2 %vm225_vm1, %v6957_v28  ;;  %v7037_v28 = vld [vmem:[#allocation2 + $0xaa] sm:$0xff] }
 0x142   : > { %5718 = vmatmul.msk.f32.gmra.mxu3 %vm225_vm1, %v6755_v18  ;;  %5753 = vmatmul.msk.f32.gmra.mxu0 %vm225_vm1, %v6771_v22  ;;  %8995 = vst [vmem:[#allocation35_spill] sm:$0xff] %v7037_v28 }
 0x143   : > { %5787 = vmatmul.msk.f32.gmra.mxu1 %vm225_vm1, %v7005_v26 }
 0x144   : > { %v659_v12 = vpop.f32.mrf.mxu2 }
 0x145   : > { %v871_v17 = vpop.f32.mrf.mxu3 }
 0x146   : > { %v7015_v4 = vadd.f32 %v871_v17, %v659_v12 }
 0x147   : > { %v7017_v11 = vpop.f32.mrf.mxu0 }
 0x148   : > { %8992 = vst [vmem:[#allocation32_spill] sm:$0xff] %v7015_v4  ;;  %v7019_v62 = vpop.f32.mrf.mxu1 }
 0x149   : > { %5685 = vmatmul.msk.f32.gmra.mxu2 %vm225_vm1, %v6973_v21  ;;  %v7053_v21 = vld [vmem:[#allocation2 + $0xb2] sm:$0xff] }
 0x14a   : > { %5719 = vmatmul.msk.f32.gmra.mxu3 %vm225_vm1, %v6773_v25  ;;  %5754 = vmatmul.msk.f32.gmra.mxu0 %vm225_vm1, %v6787_v34  ;;  %8997 = vst [vmem:[#allocation37_spill] sm:$0xff] %v7053_v21 }
 0x14b   : > { %5788 = vmatmul.msk.f32.gmra.mxu1 %vm225_vm1, %v7021_v46 }
 0x14c   : > { %v662_v18 = vpop.f32.mrf.mxu2 }
 0x14d   : > { %v874_v22 = vpop.f32.mrf.mxu3 }
 0x14e   : > { %v7031_v12 = vadd.f32 %v874_v22, %v662_v18 }
 0x14f   : > { %v7033_v17 = vpop.f32.mrf.mxu0 }
 0x150   : > { %8994 = vst [vmem:[#allocation34_spill] sm:$0xff] %v7031_v12  ;;  %v7035_v4 = vpop.f32.mrf.mxu1 }
 0x151   : > { %5686 = vmatmul.msk.f32.gmra.mxu2 %vm225_vm1, %v6989_v0  ;;  %v7069_v0 = vld [vmem:[#allocation2 + $0xc2] sm:$0xff] }
 0x152   : > { %5720 = vmatmul.msk.f32.gmra.mxu3 %vm225_vm1, %v6789_v39  ;;  %5755 = vmatmul.msk.f32.gmra.mxu0 %vm225_vm1, %v6815_v57  ;;  %8999 = vst [vmem:[#allocation39_spill] sm:$0xff] %v7069_v0 }
 0x153   : > { %5789 = vmatmul.msk.f32.gmra.mxu1 %vm225_vm1, %v7037_v28 }
 0x154   : > { %v665_v25 = vpop.f32.mrf.mxu2 }
 0x155   : > { %v877_v34 = vpop.f32.mrf.mxu3 }
 0x156   : > { %v7047_v18 = vadd.f32 %v877_v34, %v665_v25 }
 0x157   : > { %v7049_v22 = vpop.f32.mrf.mxu0 }
 0x158   : > { %8996 = vst [vmem:[#allocation36_spill] sm:$0xff] %v7047_v18  ;;  %v7051_v12 = vpop.f32.mrf.mxu1 }
 0x159   : > { %5687 = vmatmul.msk.f32.gmra.mxu2 %vm225_vm1, %v7005_v26  ;;  %v7087_v26 = vld [vmem:[#allocation2 + $0xca] sm:$0xff] }
 0x15a   : > { %5721 = vmatmul.msk.f32.gmra.mxu3 %vm225_vm1, %v6817_v58  ;;  %5756 = vmatmul.msk.f32.gmra.mxu0 %vm225_vm1, %v6835_v6  ;;  %v5911_v58 = vld [vmem:[%s8895_s3 + $0x4] sm:$0xf]  ;;  %9001 = vst [vmem:[#allocation41_spill] sm:$0xff] %v7087_v26 }
 0x15b   : > { %5790 = vmatmul.msk.f32.gmra.mxu1 %vm225_vm1, %v7053_v21 }
 0x15c   : > { %v668_v39 = vpop.f32.mrf.mxu2  ;;  %5912 = vmatpush.msk.msra.mxu1 %vm563_vm0, %v5911_v58 }
 0x15d   : > { %v880_v57 = vpop.f32.mrf.mxu3 }
 0x15e   : > { %v7063_v25 = vadd.f32 %v880_v57, %v668_v39 }
 0x15f   : > { %v7065_v34 = vpop.f32.mrf.mxu0 }
 0x160   : > { %8998 = vst [vmem:[#allocation38_spill] sm:$0xff] %v7063_v25  ;;  %v7067_v18 = vpop.f32.mrf.mxu1 }
 0x161   : > { %5688 = vmatmul.msk.f32.gmra.mxu2 %vm225_vm1, %v7021_v46 }
 0x162   : > { %5722 = vmatmul.msk.f32.gmra.mxu3 %vm225_vm1, %v6837_v13  ;;  %5757 = vmatmul.msk.f32.gmra.mxu0 %vm225_vm1, %v6474_v7 }
 0x163   : > { %5791 = vmatmul.msk.f32.gmra.mxu1 %vm225_vm1, %v7069_v0 }
 0x164   : > { %v671_v6 = vpop.f32.mrf.mxu2 }
 0x165   : > { %v883_v39 = vpop.f32.mrf.mxu3 }
 0x166   : > { %v7083_v57 = vadd.f32 %v883_v39, %v671_v6 }
 0x167   : > { %v7085_v25 = vpop.f32.mrf.mxu0 }
 0x168   : > { %9000 = vst [vmem:[#allocation40_spill] sm:$0xff] %v7083_v57  ;;  %v7093_v13 = vpop.f32.mrf.mxu1  ;;  %v7101_v57 = vld [vmem:[#allocation2 + $0xda] sm:$0xff] }
 0x169   : > { %5689 = vmatmul.msk.f32.gmra.mxu2 %vm225_vm1, %v7037_v28  ;;  %9002 = vst [vmem:[#allocation42_spill] sm:$0xff] %v7093_v13  ;;  %v7125_v13 = vld [vmem:[#allocation2 + $0xf2] sm:$0xff] }
 0x16a   : > { %5723 = vmatmul.msk.f32.gmra.mxu3 %vm225_vm1, %v6476_v8  ;;  %5758 = vmatmul.msk.f32.gmra.mxu0 %vm225_vm1, %v6566_v23 }
 0x16b   : > { %5792 = vmatmul.msk.f32.gmra.mxu1 %vm225_vm1, %v7087_v26 }
 0x16c   : > { %v674_v7 = vpop.f32.mrf.mxu2 }
 0x16d   : > { %v886_v58 = vpop.f32.mrf.mxu3 }
 0x16e   : > { %v7099_v6 = vadd.f32 %v886_v58, %v674_v7 }
 0x16f   : > { %v1598_v39 = vpop.f32.mrf.mxu0 }
 0x170   : > { %9003 = vst [vmem:[#allocation43_spill] sm:$0xff] %v7099_v6  ;;  %v1876_v8 = vpop.f32.mrf.mxu1  ;;  %v7113_v6 = vld [vmem:[#allocation2 + $0xe2] sm:$0xff] }
 0x171   : > { %5690 = vmatmul.msk.f32.gmra.mxu2 %vm225_vm1, %v7053_v21 }
 0x172   : > { %5724 = vmatmul.msk.f32.gmra.mxu3 %vm225_vm1, %v6568_v24  ;;  %5759 = vmatmul.msk.f32.gmra.mxu0 %vm225_vm1, %v6589_v29  ;;  %v797_v24 = vadd.f32 %v6849_v19, %v6847_v14 }
 0x173   : > { %5793 = vmatmul.msk.f32.gmra.mxu1 %vm225_vm1, %v7101_v57 }
 0x174   : > { %v677_v23 = vpop.f32.mrf.mxu2 }
 0x175   : > { %v889_v28 = vpop.f32.mrf.mxu3 }
 0x176   : > { %v7111_v7 = vadd.f32 %v889_v28, %v677_v23 }
 0x177   : > { %v1601_v58 = vpop.f32.mrf.mxu0 }
 0x178   : > { %9004 = vst [vmem:[#allocation44_spill] sm:$0xff] %v7111_v7  ;;  %v1879_v29 = vpop.f32.mrf.mxu1 }
 0x179   : > { %5691 = vmatmul.msk.f32.gmra.mxu2 %vm225_vm1, %v7069_v0  ;;  %v7139_v0 = vld [vmem:[#allocation2 + $0xfa] sm:$0xff] }
 0x17a   : > { %5725 = vmatmul.msk.f32.gmra.mxu3 %vm225_vm1, %v6591_v30  ;;  %5760 = vmatmul.msk.f32.gmra.mxu0 %vm225_vm1, %v6609_v35  ;;  %v800_v35 = vadd.f32 %v6864_v5, %v6862_v63 }
 0x17b   : > { %5794 = vmatmul.msk.f32.gmra.mxu1 %vm225_vm1, %v7113_v6 }
 0x17c   : > { %v1042_v28 = vpop.f32.mrf.mxu2 }
 0x17d   : > { %v1320_v23 = vpop.f32.mrf.mxu3  ;;  %v1138_v7 = vadd.f32 %v1042_v28, %v797_v24 }
 0x17f   : > { %v1416_v21 = vadd.f32 %v1320_v23, %v1138_v7  ;;  %v1604_v46 = vpop.f32.mrf.mxu0 }
 0x180   : > { %v1882_v28 = vpop.f32.mrf.mxu1 }
 0x181   : > { %5692 = vmatmul.msk.f32.gmra.mxu2 %vm225_vm1, %v7087_v26  ;;  %v1694_v30 = vadd.f32 %v1598_v39, %v1416_v21 }
 0x182   : > { %5726 = vmatmul.msk.f32.gmra.mxu3 %vm225_vm1, %v6611_v36  ;;  %5761 = vmatmul.msk.f32.gmra.mxu0 %vm225_vm1, %v6629_v41  ;;  %v803_v41 = vadd.f32 %v6878_v33, %v6876_v51 }
 0x183   : > { %5795 = vmatmul.msk.f32.gmra.mxu1 %vm225_vm1, %v7125_v13  ;;  %v7137_v14 = vadd.f32 %v1876_v8, %v1694_v30 }
 0x184   : > { %v1045_v19 = vpop.f32.mrf.mxu2 }
 0x185   : > { %v1323_v7 = vpop.f32.mrf.mxu3  ;;  %v1139_v24 = vadd.f32 %v1045_v19, %v800_v35  ;;  %v7153_v19 = vld [vmem:[#allocation2 + $0x10a] sm:$0xff] }
 0x187   : > { %v1417_v23 = vadd.f32 %v1323_v7, %v1139_v24  ;;  %v1607_v26 = vpop.f32.mrf.mxu0 }
 0x188   : > { %v1885_v35 = vpop.f32.mrf.mxu1 }
 0x189   : > { %5693 = vmatmul.msk.f32.gmra.mxu2 %vm225_vm1, %v7101_v57  ;;  %v1695_v36 = vadd.f32 %v1601_v58, %v1417_v23  ;;  %v7167_v23 = vld [vmem:[#allocation2 + $0x112] sm:$0xff] }
 0x18a   : > { %5727 = vmatmul.msk.f32.gmra.mxu3 %vm225_vm1, %v6631_v42  ;;  %5762 = vmatmul.msk.f32.gmra.mxu0 %vm225_vm1, %v6649_v47  ;;  %v806_v47 = vadd.f32 %v6893_v45, %v6891_v40  ;;  %v809_v40 = vadd.f32 %v6908_v31, %v6906_v27 }
 0x18b   : > { %5796 = vmatmul.msk.f32.gmra.mxu1 %vm225_vm1, %v7139_v0  ;;  %v7151_v21 = vadd.f32 %v1879_v29, %v1695_v36 }
 0x18c   : > { %v1048_v5 = vpop.f32.mrf.mxu2 }
 0x18d   : > { %v1326_v63 = vpop.f32.mrf.mxu3  ;;  %v1140_v39 = vadd.f32 %v1048_v5, %v803_v41 }
 0x18f   : > { %v1418_v8 = vadd.f32 %v1326_v63, %v1140_v39  ;;  %v1610_v30 = vpop.f32.mrf.mxu0  ;;  %v7181_v63 = vld [vmem:[#allocation2 + $0x122] sm:$0xff] }
 0x191   : > { %5694 = vmatmul.msk.f32.gmra.mxu2 %vm225_vm1, %v7113_v6  ;;  %v1696_v42 = vadd.f32 %v1604_v46, %v1418_v8 }
 0x192   : > { %5728 = vmatmul.msk.f32.gmra.mxu3 %vm225_vm1, %v6651_v48  ;;  %5763 = vmatmul.msk.f32.gmra.mxu0 %vm225_vm1, %v6669_v53  ;;  %v1888_v53 = vpop.f32.mrf.mxu1 }
 0x193   : > { %5797 = vmatmul.msk.f32.gmra.mxu1 %vm225_vm1, %v7153_v19  ;;  %v7165_v33 = vadd.f32 %v1882_v28, %v1696_v42 }
 0x194   : > { %v1051_v51 = vpop.f32.mrf.mxu2 }
 0x195   : > { %v1329_v58 = vpop.f32.mrf.mxu3  ;;  %v1141_v29 = vadd.f32 %v1051_v51, %v806_v47  ;;  %v7195_v47 = vld [vmem:[#allocation2 + $0x12a] sm:$0xff] }
 0x197   : > { %v1419_v7 = vadd.f32 %v1329_v58, %v1141_v29  ;;  %v1613_v24 = vpop.f32.mrf.mxu0 }
 0x199   : > { %5695 = vmatmul.msk.f32.gmra.mxu2 %vm225_vm1, %v7125_v13  ;;  %v1697_v48 = vadd.f32 %v1607_v26, %v1419_v7 }
 0x19a   : > { %5729 = vmatmul.msk.f32.gmra.mxu3 %vm225_vm1, %v6671_v54  ;;  %5764 = vmatmul.msk.f32.gmra.mxu0 %vm225_vm1, %v6689_v59  ;;  %v812_v59 = vadd.f32 %v6923_v37, %v6921_v32  ;;  %v1891_v27 = vpop.f32.mrf.mxu1 }
 0x19b   : > { %5798 = vmatmul.msk.f32.gmra.mxu1 %vm225_vm1, %v7167_v23  ;;  %v7179_v45 = vadd.f32 %v1885_v35, %v1697_v48  ;;  %v7209_v48 = vld [vmem:[#allocation2 + $0x13a] sm:$0xff] }
 0x19c   : > { %v1054_v46 = vpop.f32.mrf.mxu2 }
 0x19d   : > { %v1332_v28 = vpop.f32.mrf.mxu3  ;;  %v1142_v36 = vadd.f32 %v1054_v46, %v809_v40 }
 0x19f   : > { %v1420_v41 = vadd.f32 %v1332_v28, %v1142_v36  ;;  %v1616_v5 = vpop.f32.mrf.mxu0  ;;  %v7223_v28 = vld [vmem:[#allocation2 + $0x142] sm:$0xff] }
 0x1a1   : > { %5696 = vmatmul.msk.f32.gmra.mxu2 %vm225_vm1, %v7139_v0  ;;  %v1698_v54 = vadd.f32 %v1610_v30, %v1420_v41 }
 0x1a2   : > { %5730 = vmatmul.msk.f32.gmra.mxu3 %vm225_vm1, %v6691_v60  ;;  %5765 = vmatmul.msk.f32.gmra.mxu0 %vm225_vm1, %v6709_v1  ;;  %v815_v1 = vadd.f32 %v6939_v43, %v6937_v38  ;;  %v1894_v58 = vpop.f32.mrf.mxu1 }
 0x1a3   : > { %5799 = vmatmul.msk.f32.gmra.mxu1 %vm225_vm1, %v7181_v63  ;;  %v7193_v26 = vadd.f32 %v1888_v53, %v1698_v54 }
 0x1a4   : > { %v1057_v31 = vpop.f32.mrf.mxu2 }
 0x1a5   : > { %v1335_v39 = vpop.f32.mrf.mxu3  ;;  %v1143_v8 = vadd.f32 %v1057_v31, %v812_v59 }
 0x1a7   : > { %v1421_v35 = vadd.f32 %v1335_v39, %v1143_v8  ;;  %v1619_v42 = vpop.f32.mrf.mxu0  ;;  %v824_v39 = vadd.f32 %v6987_v50, %v6985_v61  ;;  %v827_v50 = vadd.f32 %v7003_v56, %v7001_v3  ;;  %v830_v56 = vadd.f32 %v7019_v62, %v7017_v11 }
 0x1a8   : > { %v833_v62 = vadd.f32 %v7035_v4, %v7033_v17  ;;  %v836_v4 = vadd.f32 %v7051_v12, %v7049_v22  ;;  %v839_v12 = vadd.f32 %v7067_v18, %v7065_v34  ;;  %v9015_v18 = vld [vmem:[#allocation42_spill] sm:$0xff] }
 0x1a9   : > { %5697 = vmatmul.msk.f32.gmra.mxu2 %vm225_vm1, %v7153_v19  ;;  %v1699_v60 = vadd.f32 %v1613_v24, %v1421_v35  ;;  %v842_v34 = vadd.f32 %v9015_v18, %v7085_v25  ;;  %v2285_v18 = vld [vmem:[#allocation2 + $0x49] sm:$0xff] }
 0x1aa   : > { %5731 = vmatmul.msk.f32.gmra.mxu3 %vm225_vm1, %v6711_v2  ;;  %5766 = vmatmul.msk.f32.gmra.mxu0 %vm225_vm1, %v6729_v9  ;;  %v818_v9 = vadd.f32 %v6955_v52, %v6953_v49  ;;  %v365_v52 = vld [vmem:[%s6444_s29 + $0xf0] sm:$0xff]  ;;  %v821_v49 = vadd.f32 %v6971_v44, %v6969_v55  ;;  %v9006_v44 = vld [vmem:[#allocation5_spill] sm:$0xff]  ;;  %v366_v55 = vld [vmem:[%s6444_s29 + $0xf8] sm:$0xff] }
 0x1ab   : > { %5800 = vmatmul.msk.f32.gmra.mxu1 %vm225_vm1, %v7195_v47  ;;  %v7207_v32 = vadd.f32 %v1891_v27, %v1699_v60  ;;  %398 = vst.msk [vmem:[#allocation2 + $0x181] sm:$0xff] %vm225_vm1, %v365_v52  ;;  %v7239_v27 = vld [vmem:[#allocation2 + $0x152] sm:$0xff] }
 0x1ac   : > { %v1060_v37 = vpop.f32.mrf.mxu2  ;;  %399 = vst.msk [vmem:[#allocation2 + $0x189] sm:$0xff] %vm225_vm1, %v366_v55 }
 0x1ad   : > { %v1338_v30 = vpop.f32.mrf.mxu3  ;;  %v1144_v51 = vadd.f32 %v1060_v37, %v815_v1  ;;  %v7255_v37 = vld [vmem:[#allocation2 + $0x15a] sm:$0xff] }
 0x1af   : > { %v1422_v29 = vadd.f32 %v1338_v30, %v1144_v51  ;;  %v1622_v7 = vpop.f32.mrf.mxu0  ;;  %v9007_v30 = vld [vmem:[#allocation6_spill] sm:$0xff] }
 0x1b1   : > { %5698 = vmatmul.msk.f32.gmra.mxu2 %vm225_vm1, %v7167_v23  ;;  %v1700_v2 = vadd.f32 %v1616_v5, %v1422_v29 }
 0x1b2   : > { %5732 = vmatmul.msk.f32.gmra.mxu3 %vm225_vm1, %v6731_v10  ;;  %5767 = vmatmul.msk.f32.gmra.mxu0 %vm225_vm1, %v6749_v15  ;;  %v1897_v10 = vpop.f32.mrf.mxu1  ;;  %v7297_v55 = vld [vmem:[#allocation2 + $0x181] sm:$0xff] }
 0x1b3   : > { %5801 = vmatmul.msk.f32.gmra.mxu1 %vm225_vm1, %v7209_v48  ;;  %v7221_v38 = vadd.f32 %v1894_v58, %v1700_v2  ;;  %v9008_v58 = vld [vmem:[#allocation7_spill] sm:$0xff] }
 0x1b4   : > { %v1063_v43 = vpop.f32.mrf.mxu2 }
 0x1b5   : > { %v1341_v24 = vpop.f32.mrf.mxu3  ;;  %v1145_v53 = vadd.f32 %v1063_v43, %v818_v9  ;;  %v7269_v43 = vld [vmem:[#allocation2 + $0x16a] sm:$0xff] }
 0x1b7   : > { %v1423_v40 = vadd.f32 %v1341_v24, %v1145_v53  ;;  %v1625_v46 = vpop.f32.mrf.mxu0  ;;  %v9009_v24 = vld [vmem:[#allocation8_spill] sm:$0xff] }
 0x1b9   : > { %5699 = vmatmul.msk.f32.gmra.mxu2 %vm225_vm1, %v7181_v63  ;;  %v1701_v15 = vadd.f32 %v1619_v42, %v1423_v40  ;;  %v9010_v40 = vld [vmem:[#allocation9_spill] sm:$0xff] }
 0x1ba   : > { %5733 = vmatmul.msk.f32.gmra.mxu3 %vm225_vm1, %v6751_v16  ;;  %5768 = vmatmul.msk.f32.gmra.mxu0 %vm225_vm1, %v6767_v20  ;;  %v9005_v20 = vld [vmem:[#allocation4_spill] sm:$0xff] }
 0x1bb   : > { %5802 = vmatmul.msk.f32.gmra.mxu1 %vm225_vm1, %v7223_v28  ;;  %v7236_v36 = vadd.f32 %v1897_v10, %v1701_v15 }
 0x1bc   : > { %v1066_v41 = vpop.f32.mrf.mxu2 }
 0x1bd   : > { %v1344_v5 = vpop.f32.mrf.mxu3  ;;  %v1146_v54 = vadd.f32 %v1066_v41, %v821_v49  ;;  %v7283_v49 = vld [vmem:[#allocation2 + $0x172] sm:$0xff] }
 0x1be   : > { %v9011_v41 = vld [vmem:[#allocation10_spill] sm:$0xff] }
 0x1bf   : > { %v1424_v16 = vadd.f32 %v1344_v5, %v1146_v54  ;;  %v1628_v59 = vpop.f32.mrf.mxu0  ;;  %v9012_v54 = vld [vmem:[#allocation11_spill] sm:$0xff] }
 0x1c1   : > { %5700 = vmatmul.msk.f32.gmra.mxu2 %vm225_vm1, %v7195_v47  ;;  %v7245_v31 = vadd.f32 %v1622_v7, %v1424_v16 }
 0x1c2   : > { %5734 = vmatmul.msk.f32.gmra.mxu3 %vm225_vm1, %v9005_v20  ;;  %5769 = vmatmul.msk.f32.gmra.mxu0 %vm225_vm1, %v9006_v44 }
 0x1c3   : > { %5803 = vmatmul.msk.f32.gmra.mxu1 %vm225_vm1, %v7239_v27 }
 0x1c4   : > { %v1069_v8 = vpop.f32.mrf.mxu2 }
 0x1c5   : > { %v1347_v35 = vpop.f32.mrf.mxu3  ;;  %v1147_v42 = vadd.f32 %v1069_v8, %v824_v39  ;;  %v7299_v39 = vld [vmem:[#allocation2 + $0x182] sm:$0xff] }
 0x1c6   : > { %v9013_v8 = vld [vmem:[#allocation12_spill] sm:$0xff] }
 0x1c7   : > { %v1425_v60 = vadd.f32 %v1347_v35, %v1147_v42  ;;  %v1631_v1 = vpop.f32.mrf.mxu0 }
 0x1c9   : > { %5701 = vmatmul.msk.f32.gmra.mxu2 %vm225_vm1, %v7209_v48  ;;  %v7261_v51 = vadd.f32 %v1625_v46, %v1425_v60 }
 0x1ca   : > { %5735 = vmatmul.msk.f32.gmra.mxu3 %vm225_vm1, %v9007_v30  ;;  %5770 = vmatmul.msk.f32.gmra.mxu0 %vm225_vm1, %v9008_v58 }
 0x1cb   : > { %5804 = vmatmul.msk.f32.gmra.mxu1 %vm225_vm1, %v7255_v37 }
 0x1cc   : > { %v1072_v61 = vpop.f32.mrf.mxu2 }
 0x1cd   : > { %v1350_v29 = vpop.f32.mrf.mxu3  ;;  %v1148_v7 = vadd.f32 %v1072_v61, %v827_v50  ;;  %v7315_v50 = vld [vmem:[#allocation2 + $0x189] sm:$0xff] }
 0x1ce   : > { %v7317_v61 = vld [vmem:[#allocation2 + $0x18a] sm:$0xff] }
 0x1cf   : > { %v1426_v2 = vadd.f32 %v1350_v29, %v1148_v7  ;;  %v1634_v9 = vpop.f32.mrf.mxu0 }
 0x1d1   : > { %5702 = vmatmul.msk.f32.gmra.mxu2 %vm225_vm1, %v7223_v28  ;;  %v7275_v53 = vadd.f32 %v1628_v59, %v1426_v2 }
 0x1d2   : > { %5736 = vmatmul.msk.f32.gmra.mxu3 %vm225_vm1, %v9009_v24  ;;  %5771 = vmatmul.msk.f32.gmra.mxu0 %vm225_vm1, %v9010_v40 }
 0x1d3   : > { %5805 = vmatmul.msk.f32.gmra.mxu1 %vm225_vm1, %v7269_v43 }
 0x1d4   : > { %v1075_v3 = vpop.f32.mrf.mxu2 }
 0x1d5   : > { %v1353_v46 = vpop.f32.mrf.mxu3  ;;  %v1149_v10 = vadd.f32 %v1075_v3, %v830_v56  ;;  %v9014_v3 = vld [vmem:[#allocation15_spill] sm:$0xff] }
 0x1d7   : > { %v1427_v15 = vadd.f32 %v1353_v46, %v1149_v10  ;;  %v1637_v52 = vpop.f32.mrf.mxu0 }
 0x1d9   : > { %5703 = vmatmul.msk.f32.gmra.mxu2 %vm225_vm1, %v7239_v27  ;;  %v7289_v5 = vadd.f32 %v1631_v1, %v1427_v15  ;;  %v7313_v1 = vld [vmem:[#allocation2 + $0x180] sm:$0xff] }
 0x1da   : > { %5737 = vmatmul.msk.f32.gmra.mxu3 %vm225_vm1, %v9011_v41  ;;  %5772 = vmatmul.msk.f32.gmra.mxu0 %vm225_vm1, %v9012_v54  ;;  %v2283_v41 = vld [vmem:[#allocation2 + $0x31] sm:$0xff] }
 0x1db   : > { %5806 = vmatmul.msk.f32.gmra.mxu1 %vm225_vm1, %v7283_v49 }
 0x1dc   : > { %v1078_v11 = vpop.f32.mrf.mxu2 }
 0x1dd   : > { %v1356_v16 = vpop.f32.mrf.mxu3  ;;  %v1150_v59 = vadd.f32 %v1078_v11, %v833_v62 }
 0x1df   : > { %v1428_v20 = vadd.f32 %v1356_v16, %v1150_v59  ;;  %v1640_v44 = vpop.f32.mrf.mxu0  ;;  %v9016_v16 = vld [vmem:[#allocation17_spill] sm:$0xff] }
 0x1e0   : > { %v9017_v59 = vld [vmem:[#allocation13_spill] sm:$0xff] }
 0x1e1   : > { %5704 = vmatmul.msk.f32.gmra.mxu2 %vm225_vm1, %v7255_v37  ;;  %v7305_v35 = vadd.f32 %v1634_v9, %v1428_v20  ;;  %v7331_v9 = vld [vmem:[#allocation2 + $0x188] sm:$0xff]  ;;  %v9018_v20 = vld [vmem:[#allocation14_spill] sm:$0xff] }
 0x1e2   : > { %5738 = vmatmul.msk.f32.gmra.mxu3 %vm225_vm1, %v9013_v8  ;;  %5773 = vmatmul.msk.f32.gmra.mxu0 %vm225_vm1, %v7297_v55 }
 0x1e3   : > { %5807 = vmatmul.msk.f32.gmra.mxu1 %vm225_vm1, %v7299_v39 }
 0x1e4   : > { %v1081_v17 = vpop.f32.mrf.mxu2 }
 0x1e5   : > { %v1359_v42 = vpop.f32.mrf.mxu3  ;;  %v1151_v60 = vadd.f32 %v1081_v17, %v836_v4  ;;  %v2006_v17 = vld [vmem:[#allocation2 + $0x38] sm:$0xff] }
 0x1e7   : > { %v1429_v30 = vadd.f32 %v1359_v42, %v1151_v60  ;;  %v1643_v58 = vpop.f32.mrf.mxu0  ;;  %v2284_v42 = vld [vmem:[#allocation2 + $0x39] sm:$0xff] }
 0x1e9   : > { %5705 = vmatmul.msk.f32.gmra.mxu2 %vm225_vm1, %v7269_v43  ;;  %v7323_v29 = vadd.f32 %v1637_v52, %v1429_v30  ;;  %v2005_v52 = vld [vmem:[#allocation2 + $0x30] sm:$0xff] }
 0x1ea   : > { %5739 = vmatmul.msk.f32.gmra.mxu3 %vm225_vm1, %v7313_v1  ;;  %5774 = vmatmul.msk.f32.gmra.mxu0 %vm225_vm1, %v7315_v50 }
 0x1eb   : > { %5808 = vmatmul.msk.f32.gmra.mxu1 %vm225_vm1, %v7317_v61 }
 0x1ec   : > { %v1084_v22 = vpop.f32.mrf.mxu2 }
 0x1ed   : > { %v1362_v7 = vpop.f32.mrf.mxu3  ;;  %v1152_v2 = vadd.f32 %v1084_v22, %v839_v12 }
 0x1ef   : > { %v1430_v24 = vadd.f32 %v1362_v7, %v1152_v2  ;;  %v1646_v40 = vpop.f32.mrf.mxu0  ;;  %v9020_v2 = vld [vmem:[#allocation16_spill] sm:$0xff] }
 0x1f1   : > { %5706 = vmatmul.msk.f32.gmra.mxu2 %vm225_vm1, %v7283_v49  ;;  %v7337_v56 = vadd.f32 %v1640_v44, %v1430_v24  ;;  %v845_v44 = vadd.f32 %v9018_v20, %v9017_v59  ;;  %v2008_v59 = vld [vmem:[#allocation2 + $0x50] sm:$0xff] }
 0x1f2   : > { %5740 = vmatmul.msk.f32.gmra.mxu3 %vm225_vm1, %v7331_v9  ;;  %5879 = vmatmul.msk.f32.vlgmr.msra.gmra.mxu0 %vm225_vm1, %v9014_v3  ;;  %v2007_v3 = vld [vmem:[#allocation2 + $0x48] sm:$0xff]  ;;  %v2286_v20 = vld [vmem:[#allocation2 + $0x51] sm:$0xff] }
 0x1f4   : > { %v1087_v46 = vpop.f32.mrf.mxu2 }
 0x1f5   : > { %v1365_v10 = vpop.f32.mrf.mxu3  ;;  %v1153_v15 = vadd.f32 %v1087_v46, %v842_v34 }
 0x1f7   : > { %v1431_v54 = vadd.f32 %v1365_v10, %v1153_v15  ;;  %v1649_v62 = vpop.f32.mrf.mxu0  ;;  %v9021_v15 = vld [vmem:[#allocation21_spill] sm:$0xff] }
 0x1f9   : > { %5811 = vmatmul.msk.f32.vlgmr.msra.gmra.mxu2 %vm225_vm1, %v2005_v52  ;;  %v7345_v11 = vadd.f32 %v1643_v58, %v1431_v54  ;;  %v9019_v58 = vld [vmem:[#allocation19_spill] sm:$0xff]  ;;  %v9022_v54 = vld [vmem:[#allocation18_spill] sm:$0xff] }
 0x1fa   : > { %5845 = vmatmul.msk.f32.vlgmr.msra.gmra.mxu3 %vm225_vm1, %v2283_v41  ;;  %5880 = vmatmul.msk.f32.gmra.mxu0 %vm225_vm1, %v9016_v16 }
 0x1fc   : > { %v1090_v25 = vpop.f32.mrf.mxu2 }
 0x1fd   : > { %v1368_v8 = vpop.f32.mrf.mxu3  ;;  %v1154_v4 = vadd.f32 %v1090_v25, %v845_v44 }
 0x1ff   : > { %v1432_v60 = vadd.f32 %v1368_v8, %v1154_v4  ;;  %v1652_v30 = vpop.f32.mrf.mxu0 }
 0x201   : > { %5812 = vmatmul.msk.f32.gmra.mxu2 %vm225_vm1, %v2006_v17  ;;  %v7353_v12 = vadd.f32 %v1646_v40, %v1432_v60  ;;  %v7364_v40 = vpop.f32.mrf.mxu1  ;;  %v9025_v60 = vld [vmem:[#allocation20_spill] sm:$0xff] }
 0x202   : > { %5846 = vmatmul.msk.f32.gmra.mxu3 %vm225_vm1, %v2284_v42  ;;  %5881 = vmatmul.msk.f32.gmra.mxu0 %vm225_vm1, %v9019_v58 }
 0x204   : > { %v1093_v22 = vpop.f32.mrf.mxu2 }
 0x205   : > { %v1371_v7 = vpop.f32.mrf.mxu3  ;;  %v1155_v24 = vadd.f32 %v1093_v22, %v9020_v2  ;;  %v2009_v22 = vld [vmem:[#allocation2 + $0x60] sm:$0xff] }
 0x207   : > { %v1433_v34 = vadd.f32 %v1371_v7, %v1155_v24  ;;  %v1655_v46 = vpop.f32.mrf.mxu0  ;;  %v2287_v7 = vld [vmem:[#allocation2 + $0x61] sm:$0xff] }
 0x209   : > { %5813 = vmatmul.msk.f32.gmra.mxu2 %vm225_vm1, %v2007_v3  ;;  %v7360_v10 = vadd.f32 %v1649_v62, %v1433_v34  ;;  %v9024_v62 = vld [vmem:[#allocation23_spill] sm:$0xff]  ;;  %v7373_v42 = vpop.f32.mrf.mxu1 }
 0x20a   : > { %5847 = vmatmul.msk.f32.gmra.mxu3 %vm225_vm1, %v2285_v18  ;;  %5882 = vmatmul.msk.f32.gmra.mxu0 %vm225_vm1, %v9021_v15  ;;  %v9028_v15 = vld [vmem:[#allocation22_spill] sm:$0xff] }
 0x20c   : > { %v1096_v52 = vpop.f32.mrf.mxu2 }
 0x20d   : > { %v1374_v41 = vpop.f32.mrf.mxu3  ;;  %v1156_v16 = vadd.f32 %v1096_v52, %v9022_v54  ;;  %v2288_v54 = vld [vmem:[#allocation2 + $0x69] sm:$0xff] }
 0x20f   : > { %v1434_v44 = vadd.f32 %v1374_v41, %v1156_v16  ;;  %v1658_v25 = vpop.f32.mrf.mxu0  ;;  %v2010_v41 = vld [vmem:[#allocation2 + $0x68] sm:$0xff] }
 0x211   : > { %5814 = vmatmul.msk.f32.gmra.mxu2 %vm225_vm1, %v2008_v59  ;;  %v7369_v8 = vadd.f32 %v1652_v30, %v1434_v44  ;;  %v9027_v30 = vld [vmem:[#allocation25_spill] sm:$0xff]  ;;  %v7383_v16 = vpop.f32.mrf.mxu1 }
 0x212   : > { %5848 = vmatmul.msk.f32.gmra.mxu3 %vm225_vm1, %v2286_v20  ;;  %5883 = vmatmul.msk.f32.gmra.mxu0 %vm225_vm1, %v9024_v62 }
 0x213   : > { %9023 = vst [vmem:[#allocation4_spill] sm:$0xff] %v7369_v8 }
 0x214   : > { %v1099_v4 = vpop.f32.mrf.mxu2 }
 0x215   : > { %v1377_v17 = vpop.f32.mrf.mxu3  ;;  %v1157_v58 = vadd.f32 %v1099_v4, %v9025_v60 }
 0x217   : > { %v1435_v2 = vadd.f32 %v1377_v17, %v1157_v58  ;;  %v1661_v24 = vpop.f32.mrf.mxu0  ;;  %v9031_v17 = vld [vmem:[#allocation24_spill] sm:$0xff]  ;;  %v2011_v58 = vld [vmem:[#allocation2 + $0x78] sm:$0xff] }
 0x219   : > { %5815 = vmatmul.msk.f32.gmra.mxu2 %vm225_vm1, %v2009_v22  ;;  %v7378_v3 = vadd.f32 %v1655_v46, %v1435_v2  ;;  %v9030_v46 = vld [vmem:[#allocation27_spill] sm:$0xff] }
 0x21a   : > { %5849 = vmatmul.msk.f32.gmra.mxu3 %vm225_vm1, %v2287_v7  ;;  %5884 = vmatmul.msk.f32.gmra.mxu0 %vm225_vm1, %v9027_v30  ;;  %v2289_v22 = vld [vmem:[#allocation2 + $0x79] sm:$0xff]  ;;  %v7392_v30 = vpop.f32.mrf.mxu1 }
 0x21b   : > { %9026 = vst [vmem:[#allocation5_spill] sm:$0xff] %v7378_v3 }
 0x21c   : > { %v1102_v18 = vpop.f32.mrf.mxu2 }
 0x21d   : > { %v1380_v34 = vpop.f32.mrf.mxu3  ;;  %v1158_v52 = vadd.f32 %v1102_v18, %v9028_v15 }
 0x21f   : > { %v1436_v59 = vadd.f32 %v1380_v34, %v1158_v52  ;;  %v1664_v20 = vpop.f32.mrf.mxu0  ;;  %v9034_v52 = vld [vmem:[#allocation26_spill] sm:$0xff] }
 0x221   : > { %5816 = vmatmul.msk.f32.gmra.mxu2 %vm225_vm1, %v2010_v41  ;;  %v7387_v44 = vadd.f32 %v1658_v25, %v1436_v59  ;;  %v9033_v25 = vld [vmem:[#allocation29_spill] sm:$0xff] }
 0x222   : > { %5850 = vmatmul.msk.f32.gmra.mxu3 %vm225_vm1, %v2288_v54  ;;  %5885 = vmatmul.msk.f32.gmra.mxu0 %vm225_vm1, %v9030_v46  ;;  %v2012_v54 = vld [vmem:[#allocation2 + $0x80] sm:$0xff] }
 0x223   : > { %9029 = vst [vmem:[#allocation6_spill] sm:$0xff] %v7387_v44  ;;  %v2290_v59 = vld [vmem:[#allocation2 + $0x81] sm:$0xff]  ;;  %v2293_v44 = vld [vmem:[#allocation2 + $0xa9] sm:$0xff] }
 0x224   : > { %v1105_v62 = vpop.f32.mrf.mxu2 }
 0x225   : > { %v1383_v4 = vpop.f32.mrf.mxu3  ;;  %v1159_v60 = vadd.f32 %v1105_v62, %v9031_v17  ;;  %v9036_v17 = vld [vmem:[#allocation31_spill] sm:$0xff] }
 0x227   : > { %v1437_v7 = vadd.f32 %v1383_v4, %v1159_v60  ;;  %v1667_v2 = vpop.f32.mrf.mxu0 }
 0x229   : > { %5817 = vmatmul.msk.f32.gmra.mxu2 %vm225_vm1, %v2011_v58  ;;  %v7396_v18 = vadd.f32 %v1661_v24, %v1437_v7  ;;  %v7407_v24 = vpop.f32.mrf.mxu1 }
 0x22a   : > { %5851 = vmatmul.msk.f32.gmra.mxu3 %vm225_vm1, %v2289_v22  ;;  %5886 = vmatmul.msk.f32.gmra.mxu0 %vm225_vm1, %v9033_v25  ;;  %v9037_v22 = vld [vmem:[#allocation28_spill] sm:$0xff]  ;;  %v2013_v25 = vld [vmem:[#allocation2 + $0x90] sm:$0xff] }
 0x22b   : > { %9032 = vst [vmem:[#allocation7_spill] sm:$0xff] %v7396_v18 }
 0x22c   : > { %v1108_v34 = vpop.f32.mrf.mxu2 }
 0x22d   : > { %v1386_v15 = vpop.f32.mrf.mxu3  ;;  %v1160_v41 = vadd.f32 %v1108_v34, %v9034_v52  ;;  %v2291_v34 = vld [vmem:[#allocation2 + $0x91] sm:$0xff] }
 0x22f   : > { %v1438_v46 = vadd.f32 %v1386_v15, %v1160_v41  ;;  %v1670_v62 = vpop.f32.mrf.mxu0 }
 0x231   : > { %5818 = vmatmul.msk.f32.gmra.mxu2 %vm225_vm1, %v2012_v54  ;;  %v7403_v4 = vadd.f32 %v1664_v20, %v1438_v46  ;;  %v9039_v20 = vld [vmem:[#allocation33_spill] sm:$0xff]  ;;  %v7416_v46 = vpop.f32.mrf.mxu1 }
 0x232   : > { %5852 = vmatmul.msk.f32.gmra.mxu3 %vm225_vm1, %v2290_v59  ;;  %5887 = vmatmul.msk.f32.gmra.mxu0 %vm225_vm1, %v9036_v17  ;;  %v9040_v17 = vld [vmem:[#allocation30_spill] sm:$0xff] }
 0x233   : > { %9035 = vst [vmem:[#allocation8_spill] sm:$0xff] %v7403_v4 }
 0x234   : > { %v1111_v60 = vpop.f32.mrf.mxu2 }
 0x235   : > { %v1389_v58 = vpop.f32.mrf.mxu3  ;;  %v1161_v7 = vadd.f32 %v1111_v60, %v9037_v22  ;;  %v2014_v60 = vld [vmem:[#allocation2 + $0x98] sm:$0xff] }
 0x236   : > { %v2292_v22 = vld [vmem:[#allocation2 + $0x99] sm:$0xff] }
 0x237   : > { %v1439_v52 = vadd.f32 %v1389_v58, %v1161_v7  ;;  %v1673_v15 = vpop.f32.mrf.mxu0 }
 0x239   : > { %5819 = vmatmul.msk.f32.gmra.mxu2 %vm225_vm1, %v2013_v25  ;;  %v7412_v41 = vadd.f32 %v1667_v2, %v1439_v52  ;;  %v9042_v2 = vld [vmem:[#allocation35_spill] sm:$0xff]  ;;  %v9043_v52 = vld [vmem:[#allocation32_spill] sm:$0xff] }
 0x23a   : > { %5853 = vmatmul.msk.f32.gmra.mxu3 %vm225_vm1, %v2291_v34  ;;  %5888 = vmatmul.msk.f32.gmra.mxu0 %vm225_vm1, %v9039_v20 }
 0x23b   : > { %9038 = vst [vmem:[#allocation9_spill] sm:$0xff] %v7412_v41  ;;  %v2015_v41 = vld [vmem:[#allocation2 + $0xa8] sm:$0xff] }
 0x23c   : > { %v1114_v54 = vpop.f32.mrf.mxu2 }
 0x23d   : > { %v1392_v59 = vpop.f32.mrf.mxu3  ;;  %v1162_v4 = vadd.f32 %v1114_v54, %v9040_v17  ;;  %v7426_v54 = vpop.f32.mrf.mxu1 }
 0x23f   : > { %v1440_v18 = vadd.f32 %v1392_v59, %v1162_v4  ;;  %v1676_v58 = vpop.f32.mrf.mxu0 }
 0x241   : > { %5820 = vmatmul.msk.f32.gmra.mxu2 %vm225_vm1, %v2014_v60  ;;  %v7421_v7 = vadd.f32 %v1670_v62, %v1440_v18  ;;  %v9045_v18 = vld [vmem:[#allocation37_spill] sm:$0xff] }
 0x242   : > { %5854 = vmatmul.msk.f32.gmra.mxu3 %vm225_vm1, %v2292_v22  ;;  %5889 = vmatmul.msk.f32.gmra.mxu0 %vm225_vm1, %v9042_v2  ;;  %v9046_v22 = vld [vmem:[#allocation34_spill] sm:$0xff] }
 0x243   : > { %9041 = vst [vmem:[#allocation10_spill] sm:$0xff] %v7421_v7 }
 0x244   : > { %v1117_v25 = vpop.f32.mrf.mxu2 }
 0x245   : > { %v1395_v34 = vpop.f32.mrf.mxu3  ;;  %v1163_v20 = vadd.f32 %v1117_v25, %v9043_v52  ;;  %v2016_v25 = vld [vmem:[#allocation2 + $0xb0] sm:$0xff]  ;;  %v7435_v8 = vpop.f32.mrf.mxu1 }
 0x246   : > { %v2294_v52 = vld [vmem:[#allocation2 + $0xb1] sm:$0xff] }
 0x247   : > { %v1441_v17 = vadd.f32 %v1395_v34, %v1163_v20  ;;  %v1679_v4 = vpop.f32.mrf.mxu0 }
 0x249   : > { %5821 = vmatmul.msk.f32.gmra.mxu2 %vm225_vm1, %v2015_v41  ;;  %v7430_v59 = vadd.f32 %v1673_v15, %v1441_v17  ;;  %v9048_v15 = vld [vmem:[#allocation39_spill] sm:$0xff]  ;;  %v2972_v41 = vld [vmem:[%s8895_s3] sm:$0xf] }
 0x24a   : > { %5855 = vmatmul.msk.f32.gmra.mxu3 %vm225_vm1, %v2293_v44  ;;  %5890 = vmatmul.msk.f32.gmra.mxu0 %vm225_vm1, %v9045_v18  ;;  %v9049_v17 = vld [vmem:[#allocation36_spill] sm:$0xff] }
 0x24b   : > { %9044 = vst [vmem:[#allocation11_spill] sm:$0xff] %v7430_v59  ;;  %5945 = vmatpush.msk.msrb.mxu2 %vm563_vm0, %v2972_v41 }
 0x24c   : > { %v1120_v62 = vpop.f32.mrf.mxu2 }
 0x24d   : > { %v1398_v60 = vpop.f32.mrf.mxu3  ;;  %v1164_v2 = vadd.f32 %v1120_v62, %v9046_v22  ;;  %v2017_v62 = vld [vmem:[#allocation2 + $0xc0] sm:$0xff] }
 0x24f   : > { %v1442_v7 = vadd.f32 %v1398_v60, %v1164_v2  ;;  %v1682_v3 = vpop.f32.mrf.mxu0  ;;  %v2295_v60 = vld [vmem:[#allocation2 + $0xc1] sm:$0xff] }
 0x251   : > { %5822 = vmatmul.msk.f32.gmra.mxu2 %vm225_vm1, %v2016_v25  ;;  %v7439_v44 = vadd.f32 %v1676_v58, %v1442_v7  ;;  %v5978_v58 = vld [vmem:[%s8895_s3 + $0x8] sm:$0xf] }
 0x252   : > { %5856 = vmatmul.msk.f32.gmra.mxu3 %vm225_vm1, %v2294_v52  ;;  %5891 = vmatmul.msk.f32.gmra.mxu0 %vm225_vm1, %v9048_v15  ;;  %v9051_v25 = vld [vmem:[#allocation41_spill] sm:$0xff]  ;;  %v7458_v52 = vpop.f32.mrf.mxu1 }
 0x253   : > { %9047 = vst [vmem:[#allocation12_spill] sm:$0xff] %v7439_v44  ;;  %5979 = vmatpush.msk.msrb.mxu3 %vm563_vm0, %v5978_v58  ;;  %v2973_v44 = vld [vmem:[#allocation3 + $0x1] sm:$0xff] }
 0x254   : > { %v1123_v34 = vpop.f32.mrf.mxu2  ;;  %5913 = vmatmul.msk.f32.vlgmr.msra.gmra.mxu1 %vm225_vm1, %v2973_v44 }
 0x255   : > { %v1401_v20 = vpop.f32.mrf.mxu3  ;;  %v1165_v18 = vadd.f32 %v1123_v34, %v9049_v17  ;;  %v9052_v34 = vld [vmem:[#allocation38_spill] sm:$0xff]  ;;  %v2018_v17 = vld [vmem:[#allocation2 + $0xc8] sm:$0xff] }
 0x257   : > { %v1443_v22 = vadd.f32 %v1401_v20, %v1165_v18  ;;  %v1685_v2 = vpop.f32.mrf.mxu0  ;;  %v2296_v18 = vld [vmem:[#allocation2 + $0xc9] sm:$0xff] }
 0x259   : > { %5823 = vmatmul.msk.f32.gmra.mxu2 %vm225_vm1, %v2017_v62  ;;  %v7454_v7 = vadd.f32 %v1679_v4, %v1443_v22 }
 0x25a   : > { %5857 = vmatmul.msk.f32.gmra.mxu3 %vm225_vm1, %v2295_v60  ;;  %5892 = vmatmul.msk.f32.gmra.mxu0 %vm225_vm1, %v9051_v25  ;;  %v7468_v22 = vpop.f32.mrf.mxu1  ;;  %v9054_v25 = vld [vmem:[#allocation40_spill] sm:$0xff] }
 0x25b   : > { %9050 = vst [vmem:[#allocation15_spill] sm:$0xff] %v7454_v7 }
 0x25c   : > { %v1126_v15 = vpop.f32.mrf.mxu2 }
 0x25d   : > { %v1404_v41 = vpop.f32.mrf.mxu3  ;;  %v1166_v20 = vadd.f32 %v1126_v15, %v9052_v34  ;;  %v2019_v34 = vld [vmem:[#allocation2 + $0xd8] sm:$0xff] }
 0x25f   : > { %v1444_v59 = vadd.f32 %v1404_v41, %v1166_v20  ;;  %v1688_v58 = vpop.f32.mrf.mxu0  ;;  %v2297_v41 = vld [vmem:[#allocation2 + $0xd9] sm:$0xff] }
 0x260   : > { %v2974_v20 = vld [vmem:[#allocation3 + $0x9] sm:$0xff] }
 0x261   : > { %5824 = vmatmul.msk.f32.gmra.mxu2 %vm225_vm1, %v2018_v17  ;;  %v7464_v4 = vadd.f32 %v1682_v3, %v1444_v59  ;;  %v6012_v17 = vld [vmem:[%s8895_s3 + $0xc] sm:$0xf]  ;;  %v6046_v3 = vld [vmem:[%s8895_s3 + $0x10] sm:$0xf]  ;;  %5914 = vmatmul.msk.f32.gmra.mxu1 %vm225_vm1, %v2974_v20 }
 0x262   : > { %5858 = vmatmul.msk.f32.gmra.mxu3 %vm225_vm1, %v2296_v18  ;;  %5893 = vmatmul.msk.f32.gmra.mxu0 %vm225_vm1, %v7101_v57  ;;  %v7487_v20 = vpop.f32.mrf.mxu1 }
 0x263   : > { %9053 = vst [vmem:[#allocation42_spill] sm:$0xff] %v7464_v4  ;;  %6013 = vmatpush.msk.msrb.mxu0 %vm563_vm0, %v6012_v17  ;;  %6047 = vmatpush.msk.msrb.mxu1 %vm563_vm0, %v6046_v3  ;;  %v2021_v3 = vld [vmem:[#allocation2 + $0xf0] sm:$0xff] }
 0x264   : > { %v1129_v62 = vpop.f32.mrf.mxu2  ;;  %9057 = vst [vmem:[#allocation13_spill] sm:$0xff] %v7487_v20 }
 0x265   : > { %v1407_v60 = vpop.f32.mrf.mxu3  ;;  %v1167_v15 = vadd.f32 %v1129_v62, %v9054_v25  ;;  %v9056_v62 = vld [vmem:[#allocation43_spill] sm:$0xff]  ;;  %v2020_v25 = vld [vmem:[#allocation2 + $0xe0] sm:$0xff] }
 0x267   : > { %v1445_v7 = vadd.f32 %v1407_v60, %v1167_v15  ;;  %v1691_v44 = vpop.f32.mrf.mxu0  ;;  %v2298_v15 = vld [vmem:[#allocation2 + $0xe1] sm:$0xff] }
 0x269   : > { %5825 = vmatmul.msk.f32.gmra.mxu2 %vm225_vm1, %v2019_v34  ;;  %v7482_v57 = vadd.f32 %v1685_v2, %v1445_v7  ;;  %v9058_v7 = vld [vmem:[#allocation44_spill] sm:$0xff] }
 0x26a   : > { %5859 = vmatmul.msk.f32.gmra.mxu3 %vm225_vm1, %v2297_v41  ;;  %5894 = vmatmul.msk.f32.gmra.mxu0 %vm225_vm1, %v7113_v6  ;;  %v7496_v20 = vpop.f32.mrf.mxu1 }
 0x26b   : > { %9055 = vst [vmem:[#allocation17_spill] sm:$0xff] %v7482_v57 }
 0x26c   : > { %v1132_v59 = vpop.f32.mrf.mxu2 }
 0x26d   : > { %v1410_v18 = vpop.f32.mrf.mxu3  ;;  %v1168_v60 = vadd.f32 %v1132_v59, %v9056_v62  ;;  %v2299_v59 = vld [vmem:[#allocation2 + $0xf1] sm:$0xff] }
 0x26f   : > { %v1446_v17 = vadd.f32 %v1410_v18, %v1168_v60  ;;  %v2711_v4 = vpop.f32.mrf.mxu0 }
 0x271   : > { %5826 = vmatmul.msk.f32.gmra.mxu2 %vm225_vm1, %v2020_v25  ;;  %v7491_v34 = vadd.f32 %v1688_v58, %v1446_v17  ;;  %v2022_v25 = vld [vmem:[#allocation2 + $0xf8] sm:$0xff] }
 0x272   : > { %5860 = vmatmul.msk.f32.gmra.mxu3 %vm225_vm1, %v2298_v15  ;;  %5895 = vmatmul.msk.f32.gmra.mxu0 %vm225_vm1, %v7125_v13  ;;  %v2300_v15 = vld [vmem:[#allocation2 + $0xf9] sm:$0xff] }
 0x274   : > { %v1135_v6 = vpop.f32.mrf.mxu2 }
 0x275   : > { %v1413_v2 = vpop.f32.mrf.mxu3  ;;  %v1169_v41 = vadd.f32 %v1135_v6, %v9058_v7  ;;  %v7508_v6 = vld [vmem:[%s8894_s2] ss:$0 sm:$0xff] }
 0x277   : > { %v1447_v62 = vadd.f32 %v1413_v2, %v1169_v41  ;;  %v2714_v57 = vpop.f32.mrf.mxu0 }
 0x279   : > { %5827 = vmatmul.msk.f32.gmra.mxu2 %vm225_vm1, %v2021_v3  ;;  %v7500_v18 = vadd.f32 %v1691_v44, %v1447_v62  ;;  %v2023_v62 = vld [vmem:[#allocation2 + $0x108] sm:$0xff] }
 0x27a   : > { %5861 = vmatmul.msk.f32.gmra.mxu3 %vm225_vm1, %v2299_v59  ;;  %5896 = vmatmul.msk.f32.gmra.mxu0 %vm225_vm1, %v7139_v0  ;;  %v7514_v0 = vpop.f32.mrf.mxu1 }
 0x27c   : > { %v2155_v13 = vpop.f32.mrf.mxu2 }
 0x27d   : > { %v2433_v58 = vpop.f32.mrf.mxu3  ;;  %v2251_v60 = vadd.f32 %v2155_v13, %v7137_v14  ;;  %v2301_v13 = vld [vmem:[#allocation2 + $0x109] sm:$0xff] }
 0x27f   : > { %v2529_v17 = vadd.f32 %v2433_v58, %v2251_v60  ;;  %v2717_v2 = vpop.f32.mrf.mxu0 }
 0x281   : > { %v2807_v7 = vadd.f32 %v2711_v4, %v2529_v17  ;;  %5828 = vmatmul.msk.f32.gmra.mxu2 %vm225_vm1, %v2022_v25 }
 0x282   : > { %5862 = vmatmul.msk.f32.gmra.mxu3 %vm225_vm1, %v2300_v15  ;;  %5897 = vmatmul.msk.f32.gmra.mxu0 %vm225_vm1, %v7153_v19  ;;  %v7524_v17 = vpop.f32.mrf.mxu1 }
 0x283   : > { %v2843_v14 = vadd.f32 %v7508_v6, %v2807_v7 }
 0x284   : > { %v2158_v44 = vpop.f32.mrf.mxu2 }
 0x285   : > { %v2436_v41 = vpop.f32.mrf.mxu3  ;;  %v2875_v3 = vmax.f32 %v2843_v14, 0.0  ;;  %v2252_v59 = vadd.f32 %v2158_v44, %v7151_v21  ;;  %v2024_v44 = vld [vmem:[#allocation2 + $0x110] sm:$0xff] }
 0x287   : > { %2908 = vst.msk [vmem:[#allocation3 + $0x19] sm:$0xff] %vm225_vm1, %v2875_v3  ;;  %v2530_v4 = vadd.f32 %v2436_v41, %v2252_v59  ;;  %v2720_v58 = vpop.f32.mrf.mxu0  ;;  %v2302_v41 = vld [vmem:[#allocation2 + $0x111] sm:$0xff] }
 0x289   : > { %v2808_v60 = vadd.f32 %v2714_v57, %v2530_v4  ;;  %5829 = vmatmul.msk.f32.gmra.mxu2 %vm225_vm1, %v2023_v62 }
 0x28a   : > { %5863 = vmatmul.msk.f32.gmra.mxu3 %vm225_vm1, %v2301_v13  ;;  %5898 = vmatmul.msk.f32.gmra.mxu0 %vm225_vm1, %v7167_v23 }
 0x28b   : > { %v2844_v19 = vadd.f32 %v7508_v6, %v2808_v60 }
 0x28c   : > { %v2161_v25 = vpop.f32.mrf.mxu2 }
 0x28d   : > { %v2439_v15 = vpop.f32.mrf.mxu3  ;;  %v2876_v21 = vmax.f32 %v2844_v19, 0.0  ;;  %v2253_v7 = vadd.f32 %v2161_v25, %v7165_v33  ;;  %v2025_v19 = vld [vmem:[#allocation2 + $0x120] sm:$0xff] }
 0x28e   : > { %v2975_v14 = vld [vmem:[#allocation3 + $0x19] sm:$0xff]  ;;  %v2303_v25 = vld [vmem:[#allocation2 + $0x121] sm:$0xff] }
 0x28f   : > { %2909 = vst.msk [vmem:[#allocation3 + $0x21] sm:$0xff] %vm225_vm1, %v2876_v21  ;;  %v2531_v57 = vadd.f32 %v2439_v15, %v2253_v7  ;;  %5915 = vmatmul.msk.f32.gmra.mxu1 %vm225_vm1, %v2975_v14  ;;  %v2723_v3 = vpop.f32.mrf.mxu0  ;;  %v7535_v15 = vpop.f32.mrf.mxu1 }
 0x291   : > { %v2809_v59 = vadd.f32 %v2717_v2, %v2531_v57  ;;  %5830 = vmatmul.msk.f32.gmra.mxu2 %vm225_vm1, %v2024_v44 }
 0x292   : > { %5864 = vmatmul.msk.f32.gmra.mxu3 %vm225_vm1, %v2302_v41  ;;  %5899 = vmatmul.msk.f32.gmra.mxu0 %vm225_vm1, %v7181_v63 }
 0x293   : > { %v2845_v23 = vadd.f32 %v7508_v6, %v2809_v59  ;;  %v2026_v59 = vld [vmem:[#allocation2 + $0x128] sm:$0xff] }
 0x294   : > { %v2164_v33 = vpop.f32.mrf.mxu2 }
 0x295   : > { %v2442_v62 = vpop.f32.mrf.mxu3  ;;  %v2877_v13 = vmax.f32 %v2845_v23, 0.0  ;;  %v2254_v4 = vadd.f32 %v2164_v33, %v7179_v45  ;;  %v2304_v23 = vld [vmem:[#allocation2 + $0x129] sm:$0xff] }
 0x296   : > { %v2976_v60 = vld [vmem:[#allocation3 + $0x21] sm:$0xff] }
 0x297   : > { %2910 = vst.msk [vmem:[#allocation3 + $0x31] sm:$0xff] %vm225_vm1, %v2877_v13  ;;  %v2532_v2 = vadd.f32 %v2442_v62, %v2254_v4  ;;  %5916 = vmatmul.msk.f32.gmra.mxu1 %vm225_vm1, %v2976_v60  ;;  %v2726_v21 = vpop.f32.mrf.mxu0  ;;  %v7547_v62 = vpop.f32.mrf.mxu1 }
 0x299   : > { %v2810_v7 = vadd.f32 %v2720_v58, %v2532_v2  ;;  %5831 = vmatmul.msk.f32.gmra.mxu2 %vm225_vm1, %v2025_v19  ;;  %v2027_v2 = vld [vmem:[#allocation2 + $0x138] sm:$0xff] }
 0x29a   : > { %5865 = vmatmul.msk.f32.gmra.mxu3 %vm225_vm1, %v2303_v25  ;;  %5900 = vmatmul.msk.f32.gmra.mxu0 %vm225_vm1, %v7195_v47 }
 0x29b   : > { %v2846_v45 = vadd.f32 %v7508_v6, %v2810_v7  ;;  %v2305_v7 = vld [vmem:[#allocation2 + $0x139] sm:$0xff] }
 0x29c   : > { %v2167_v63 = vpop.f32.mrf.mxu2 }
 0x29d   : > { %v2445_v14 = vpop.f32.mrf.mxu3  ;;  %v2878_v44 = vmax.f32 %v2846_v45, 0.0  ;;  %v2255_v41 = vadd.f32 %v2167_v63, %v7193_v26 }
 0x29e   : > { %v2977_v57 = vld [vmem:[#allocation3 + $0x31] sm:$0xff] }
 0x29f   : > { %2911 = vst.msk [vmem:[#allocation3 + $0x39] sm:$0xff] %vm225_vm1, %v2878_v44  ;;  %v2533_v58 = vadd.f32 %v2445_v14, %v2255_v41  ;;  %5917 = vmatmul.msk.f32.gmra.mxu1 %vm225_vm1, %v2977_v57  ;;  %v2729_v33 = vpop.f32.mrf.mxu0 }
 0x2a1   : > { %v2811_v13 = vadd.f32 %v2723_v3, %v2533_v58  ;;  %5832 = vmatmul.msk.f32.gmra.mxu2 %vm225_vm1, %v2026_v59  ;;  %v2306_v58 = vld [vmem:[#allocation2 + $0x141] sm:$0xff] }
 0x2a2   : > { %5866 = vmatmul.msk.f32.gmra.mxu3 %vm225_vm1, %v2304_v23  ;;  %5901 = vmatmul.msk.f32.gmra.mxu0 %vm225_vm1, %v7209_v48  ;;  %v7561_v48 = vpop.f32.mrf.mxu1  ;;  %v2028_v23 = vld [vmem:[#allocation2 + $0x140] sm:$0xff] }
 0x2a3   : > { %v2847_v26 = vadd.f32 %v7508_v6, %v2811_v13 }
 0x2a4   : > { %v2170_v47 = vpop.f32.mrf.mxu2 }
 0x2a5   : > { %v2448_v4 = vpop.f32.mrf.mxu3  ;;  %v2879_v60 = vmax.f32 %v2847_v26, 0.0  ;;  %v2256_v19 = vadd.f32 %v2170_v47, %v7207_v32 }
 0x2a6   : > { %v2978_v25 = vld [vmem:[#allocation3 + $0x39] sm:$0xff] }
 0x2a7   : > { %2912 = vst.msk [vmem:[#allocation3 + $0x49] sm:$0xff] %vm225_vm1, %v2879_v60  ;;  %v2534_v3 = vadd.f32 %v2448_v4, %v2256_v19  ;;  %5918 = vmatmul.msk.f32.gmra.mxu1 %vm225_vm1, %v2978_v25  ;;  %v2732_v45 = vpop.f32.mrf.mxu0 }
 0x2a9   : > { %v2812_v63 = vadd.f32 %v2726_v21, %v2534_v3  ;;  %5833 = vmatmul.msk.f32.gmra.mxu2 %vm225_vm1, %v2027_v2  ;;  %v2029_v2 = vld [vmem:[#allocation2 + $0x150] sm:$0xff] }
 0x2aa   : > { %5867 = vmatmul.msk.f32.gmra.mxu3 %vm225_vm1, %v2305_v7  ;;  %5902 = vmatmul.msk.f32.gmra.mxu0 %vm225_vm1, %v7223_v28  ;;  %v7572_v4 = vpop.f32.mrf.mxu1  ;;  %v2307_v7 = vld [vmem:[#allocation2 + $0x151] sm:$0xff] }
 0x2ab   : > { %v2848_v32 = vadd.f32 %v7508_v6, %v2812_v63 }
 0x2ac   : > { %v2173_v14 = vpop.f32.mrf.mxu2 }
 0x2ad   : > { %v2451_v44 = vpop.f32.mrf.mxu3  ;;  %v2880_v41 = vmax.f32 %v2848_v32, 0.0  ;;  %v2257_v57 = vadd.f32 %v2173_v14, %v7221_v38 }
 0x2ae   : > { %v2979_v59 = vld [vmem:[#allocation3 + $0x49] sm:$0xff] }
 0x2af   : > { %2913 = vst.msk [vmem:[#allocation3 + $0x51] sm:$0xff] %vm225_vm1, %v2880_v41  ;;  %v2535_v21 = vadd.f32 %v2451_v44, %v2257_v57  ;;  %5919 = vmatmul.msk.f32.gmra.mxu1 %vm225_vm1, %v2979_v59  ;;  %v2735_v13 = vpop.f32.mrf.mxu0  ;;  %v2030_v59 = vld [vmem:[#allocation2 + $0x158] sm:$0xff] }
 0x2b1   : > { %v2813_v26 = vadd.f32 %v2729_v33, %v2535_v21  ;;  %5834 = vmatmul.msk.f32.gmra.mxu2 %vm225_vm1, %v2028_v23  ;;  %v2308_v23 = vld [vmem:[#allocation2 + $0x159] sm:$0xff] }
 0x2b2   : > { %5868 = vmatmul.msk.f32.gmra.mxu3 %vm225_vm1, %v2306_v58  ;;  %5903 = vmatmul.msk.f32.gmra.mxu0 %vm225_vm1, %v7239_v27 }
 0x2b3   : > { %v2849_v28 = vadd.f32 %v7508_v6, %v2813_v26 }
 0x2b4   : > { %v2176_v38 = vpop.f32.mrf.mxu2 }
 0x2b5   : > { %v2454_v47 = vpop.f32.mrf.mxu3  ;;  %v2881_v60 = vmax.f32 %v2849_v28, 0.0  ;;  %v2258_v19 = vadd.f32 %v2176_v38, %v7236_v36  ;;  %v1980_v36 = vadd.f32 %v7364_v40, %v7245_v31  ;;  %v1981_v31 = vadd.f32 %v7373_v42, %v7261_v51 }
 0x2b6   : > { %v2980_v25 = vld [vmem:[#allocation3 + $0x51] sm:$0xff]  ;;  %v1982_v51 = vadd.f32 %v7383_v16, %v7275_v53  ;;  %v1983_v53 = vadd.f32 %v7392_v30, %v7289_v5  ;;  %v1984_v5 = vadd.f32 %v7407_v24, %v7305_v35  ;;  %v1985_v35 = vadd.f32 %v7416_v46, %v7323_v29 }
 0x2b7   : > { %2914 = vst.msk [vmem:[#allocation3 + $0x61] sm:$0xff] %vm225_vm1, %v2881_v60  ;;  %v2536_v33 = vadd.f32 %v2454_v47, %v2258_v19  ;;  %5920 = vmatmul.msk.f32.gmra.mxu1 %vm225_vm1, %v2980_v25  ;;  %v2738_v3 = vpop.f32.mrf.mxu0  ;;  %v2031_v19 = vld [vmem:[#allocation2 + $0x168] sm:$0xff] }
 0x2b8   : > { %v2309_v25 = vld [vmem:[#allocation2 + $0x169] sm:$0xff] }
 0x2b9   : > { %v2814_v63 = vadd.f32 %v2732_v45, %v2536_v33  ;;  %5835 = vmatmul.msk.f32.gmra.mxu2 %vm225_vm1, %v2029_v2  ;;  %v7584_v45 = vpop.f32.mrf.mxu1  ;;  %v2592_v29 = vld [vmem:[#allocation2 + $0x1a2] sm:$0xff] }
 0x2ba   : > { %5869 = vmatmul.msk.f32.gmra.mxu3 %vm225_vm1, %v2307_v7  ;;  %5904 = vmatmul.msk.f32.gmra.mxu0 %vm225_vm1, %v7255_v37 }
 0x2bb   : > { %v2850_v27 = vadd.f32 %v7508_v6, %v2814_v63 }
 0x2bc   : > { %v2179_v32 = vpop.f32.mrf.mxu2 }
 0x2bd   : > { %v2457_v14 = vpop.f32.mrf.mxu3  ;;  %v2882_v44 = vmax.f32 %v2850_v27, 0.0  ;;  %v2259_v41 = vadd.f32 %v2179_v32, %v1980_v36 }
 0x2be   : > { %v2981_v57 = vld [vmem:[#allocation3 + $0x61] sm:$0xff] }
 0x2bf   : > { %2915 = vst.msk [vmem:[#allocation3 + $0x69] sm:$0xff] %vm225_vm1, %v2882_v44  ;;  %v2537_v58 = vadd.f32 %v2457_v14, %v2259_v41  ;;  %5921 = vmatmul.msk.f32.gmra.mxu1 %vm225_vm1, %v2981_v57  ;;  %v2741_v37 = vpop.f32.mrf.mxu0  ;;  %v2032_v14 = vld [vmem:[#allocation2 + $0x170] sm:$0xff] }
 0x2c0   : > { %v2310_v44 = vld [vmem:[#allocation2 + $0x171] sm:$0xff] }
 0x2c1   : > { %v2815_v21 = vadd.f32 %v2735_v13, %v2537_v58  ;;  %5836 = vmatmul.msk.f32.gmra.mxu2 %vm225_vm1, %v2030_v59  ;;  %v7597_v7 = vpop.f32.mrf.mxu1 }
 0x2c2   : > { %5870 = vmatmul.msk.f32.gmra.mxu3 %vm225_vm1, %v2308_v23  ;;  %5905 = vmatmul.msk.f32.gmra.mxu0 %vm225_vm1, %v7269_v43 }
 0x2c3   : > { %v2851_v40 = vadd.f32 %v7508_v6, %v2815_v21 }
 0x2c4   : > { %v2182_v26 = vpop.f32.mrf.mxu2 }
 0x2c5   : > { %v2460_v28 = vpop.f32.mrf.mxu3  ;;  %v2883_v38 = vmax.f32 %v2851_v40, 0.0  ;;  %v2260_v47 = vadd.f32 %v2182_v26, %v1981_v31 }
 0x2c6   : > { %v2982_v60 = vld [vmem:[#allocation3 + $0x69] sm:$0xff] }
 0x2c7   : > { %2916 = vst.msk [vmem:[#allocation3 + $0x79] sm:$0xff] %vm225_vm1, %v2883_v38  ;;  %v2538_v13 = vadd.f32 %v2460_v28, %v2260_v47  ;;  %5922 = vmatmul.msk.f32.gmra.mxu1 %vm225_vm1, %v2982_v60  ;;  %v2744_v2 = vpop.f32.mrf.mxu0 }
 0x2c9   : > { %v2816_v43 = vadd.f32 %v2738_v3, %v2538_v13  ;;  %5837 = vmatmul.msk.f32.gmra.mxu2 %vm225_vm1, %v2031_v19 }
 0x2ca   : > { %5871 = vmatmul.msk.f32.gmra.mxu3 %vm225_vm1, %v2309_v25  ;;  %5906 = vmatmul.msk.f32.gmra.mxu0 %vm225_vm1, %v7283_v49  ;;  %v7614_v49 = vpop.f32.mrf.mxu1 }
 0x2cb   : > { %v2852_v42 = vadd.f32 %v7508_v6, %v2816_v43 }
 0x2cc   : > { %v2185_v33 = vpop.f32.mrf.mxu2 }
 0x2cd   : > { %v2463_v63 = vpop.f32.mrf.mxu3  ;;  %v2884_v36 = vmax.f32 %v2852_v42, 0.0  ;;  %v2261_v27 = vadd.f32 %v2185_v33, %v1982_v51  ;;  %v2035_v33 = vld [vmem:[#allocation2 + $0x198] sm:$0xff] }
 0x2ce   : > { %v2983_v32 = vld [vmem:[#allocation3 + $0x79] sm:$0xff] }
 0x2cf   : > { %2917 = vst.msk [vmem:[#allocation3 + $0x81] sm:$0xff] %vm225_vm1, %v2884_v36  ;;  %v2539_v3 = vadd.f32 %v2463_v63, %v2261_v27  ;;  %5923 = vmatmul.msk.f32.gmra.mxu1 %vm225_vm1, %v2983_v32  ;;  %v2747_v41 = vpop.f32.mrf.mxu0  ;;  %v2313_v63 = vld [vmem:[#allocation2 + $0x199] sm:$0xff]  ;;  %v1986_v27 = vadd.f32 %v7426_v54, %v7337_v56  ;;  %v3709_v54 = vld [vmem:[#allocation3 + $0x18] sm:$0xff] }
 0x2d1   : > { %v2817_v57 = vadd.f32 %v2741_v37, %v2539_v3  ;;  %5838 = vmatmul.msk.f32.gmra.mxu2 %vm225_vm1, %v2032_v14 }
 0x2d2   : > { %5872 = vmatmul.msk.f32.gmra.mxu3 %vm225_vm1, %v2310_v44  ;;  %5907 = vmatmul.msk.f32.gmra.mxu0 %vm225_vm1, %v7299_v39  ;;  %v7631_v38 = vpop.f32.mrf.mxu1 }
 0x2d3   : > { %v2853_v16 = vadd.f32 %v7508_v6, %v2817_v57 }
 0x2d4   : > { %v2188_v59 = vpop.f32.mrf.mxu2 }
 0x2d5   : > { %v2466_v23 = vpop.f32.mrf.mxu3  ;;  %v2885_v58 = vmax.f32 %v2853_v16, 0.0  ;;  %v2262_v21 = vadd.f32 %v2188_v59, %v1983_v53  ;;  %v2036_v53 = vld [vmem:[#allocation2 + $0x1a0] sm:$0xff] }
 0x2d6   : > { %v7617_v31 = vld [vmem:[#allocation3 + $0x81] sm:$0xff]  ;;  %v2314_v16 = vld [vmem:[#allocation2 + $0x1a1] sm:$0xff] }
 0x2d7   : > { %2918 = vst.msk [vmem:[#allocation3 + $0x91] sm:$0xff] %vm225_vm1, %v2885_v58  ;;  %v2540_v37 = vadd.f32 %v2466_v23, %v2262_v21  ;;  %5924 = vmatmul.msk.f32.gmra.mxu1 %vm225_vm1, %v7617_v31  ;;  %v2750_v39 = vpop.f32.mrf.mxu0  ;;  %v1987_v21 = vadd.f32 %v7435_v8, %v7345_v11  ;;  %v3710_v11 = vld [vmem:[#allocation3 + $0x20] sm:$0xff] }
 0x2d9   : > { %v2818_v40 = vadd.f32 %v2744_v2, %v2540_v37  ;;  %5839 = vmatmul.msk.f32.gmra.mxu2 %vm225_vm1, %v7313_v1 }
 0x2da   : > { %5873 = vmatmul.msk.f32.gmra.mxu3 %vm225_vm1, %v7297_v55  ;;  %5908 = vmatmul.msk.f32.gmra.mxu0 %vm225_vm1, %v7317_v61  ;;  %v2591_v61 = vld [vmem:[#allocation2 + $0x19a] sm:$0xff]  ;;  %v7648_v36 = vpop.f32.mrf.mxu1 }
 0x2db   : > { %v2854_v30 = vadd.f32 %v7508_v6, %v2818_v40 }
 0x2dc   : > { %v2191_v26 = vpop.f32.mrf.mxu2 }
 0x2dd   : > { %v2469_v28 = vpop.f32.mrf.mxu3  ;;  %v2886_v47 = vmax.f32 %v2854_v30, 0.0  ;;  %v2263_v60 = vadd.f32 %v2191_v26, %v1984_v5 }
 0x2de   : > { %v7633_v19 = vld [vmem:[#allocation3 + $0x91] sm:$0xff] }
 0x2df   : > { %2919 = vst.msk [vmem:[#allocation3 + $0x99] sm:$0xff] %vm225_vm1, %v2886_v47  ;;  %v2541_v1 = vadd.f32 %v2469_v28, %v2263_v60  ;;  %5925 = vmatmul.msk.f32.gmra.mxu1 %vm225_vm1, %v7633_v19  ;;  %v2753_v55 = vpop.f32.mrf.mxu0  ;;  %v2940_v28 = vld [vmem:[#allocation3] sm:$0xff] }
 0x2e0   : > { %v3431_v47 = vld [vmem:[#allocation3 + $0x2] sm:$0xff] }
 0x2e1   : > { %v2819_v25 = vadd.f32 %v2747_v41, %v2541_v1  ;;  %5840 = vmatmul.msk.f32.gmra.mxu2 %vm225_vm1, %v7331_v9 }
 0x2e2   : > { %5874 = vmatmul.msk.f32.gmra.mxu3 %vm225_vm1, %v7315_v50  ;;  %5909 = vmatmul.msk.f32.gmra.mxu0 %vm225_vm1, %v2591_v61  ;;  %v7664_v58 = vpop.f32.mrf.mxu1  ;;  %v1988_v61 = vadd.f32 %v7458_v52, %v7353_v12  ;;  %v7692_v12 = vld [vmem:[#allocation3 + $0x30] sm:$0xff]  ;;  %v1989_v52 = vadd.f32 %v7468_v22, %v7360_v10  ;;  %v7711_v22 = vld [vmem:[#allocation3 + $0x38] sm:$0xff] }
 0x2e3   : > { %v2855_v24 = vadd.f32 %v7508_v6, %v2819_v25 }
 0x2e4   : > { %v2194_v13 = vpop.f32.mrf.mxu2 }
 0x2e5   : > { %v2472_v2 = vpop.f32.mrf.mxu3  ;;  %v2887_v43 = vmax.f32 %v2855_v24, 0.0  ;;  %v2264_v51 = vadd.f32 %v2194_v13, %v1985_v35 }
 0x2e6   : > { %v7646_v42 = vld [vmem:[#allocation3 + $0x99] sm:$0xff] }
 0x2e7   : > { %2920 = vst.msk [vmem:[#allocation3 + $0xa9] sm:$0xff] %vm225_vm1, %v2887_v43  ;;  %v2542_v50 = vadd.f32 %v2472_v2, %v2264_v51  ;;  %5926 = vmatmul.msk.f32.gmra.mxu1 %vm225_vm1, %v7646_v42  ;;  %v2756_v9 = vpop.f32.mrf.mxu0  ;;  %v2941_v51 = vld [vmem:[#allocation3 + $0x8] sm:$0xff] }
 0x2e9   : > { %v2820_v46 = vadd.f32 %v2750_v39, %v2542_v50  ;;  %5841 = vmatmul.msk.f32.gmra.mxu2 %vm225_vm1, %v2035_v33  ;;  %v3432_v33 = vld [vmem:[#allocation3 + $0xa] sm:$0xff] }
 0x2ea   : > { %5875 = vmatmul.msk.f32.gmra.mxu3 %vm225_vm1, %v2313_v63  ;;  %5910 = vmatmul.msk.f32.gmra.mxu0 %vm225_vm1, %v2592_v29  ;;  %v7679_v8 = vpop.f32.mrf.mxu1 }
 0x2eb   : > { %v2856_v32 = vadd.f32 %v7508_v6, %v2820_v46 }
 0x2ec   : > { %v2197_v14 = vpop.f32.mrf.mxu2 }
 0x2ed   : > { %v2475_v44 = vpop.f32.mrf.mxu3  ;;  %v2888_v3 = vmax.f32 %v2856_v32, 0.0  ;;  %v2265_v41 = vadd.f32 %v2197_v14, %v1986_v27 }
 0x2ee   : > { %v7659_v57 = vld [vmem:[#allocation3 + $0xa9] sm:$0xff] }
 0x2ef   : > { %2921 = vst.msk [vmem:[#allocation3 + $0xb1] sm:$0xff] %vm225_vm1, %v2888_v3  ;;  %v2543_v59 = vadd.f32 %v2475_v44, %v2265_v41  ;;  %5927 = vmatmul.msk.f32.gmra.mxu1 %vm225_vm1, %v7659_v57  ;;  %v2759_v23 = vpop.f32.mrf.mxu0 }
 0x2f1   : > { %v2821_v56 = vadd.f32 %v2753_v55, %v2543_v59  ;;  %5842 = vmatmul.msk.f32.gmra.mxu2 %vm225_vm1, %v2036_v53  ;;  %v9059_v59 = vld [vmem:[#allocation4_spill] sm:$0xff] }
 0x2f2   : > { %5876 = vmatmul.msk.f32.gmra.mxu3 %vm225_vm1, %v2314_v16  ;;  %6014 = vmatmul.msk.f32.vlgmr.msrb.gmra.mxu0 %vm225_vm1, %v3709_v54  ;;  %v7699_v46 = vpop.f32.mrf.mxu1  ;;  %v7706_v16 = vld [vmem:[#allocation3 + $0x1a] sm:$0xff] }
 0x2f3   : > { %v2857_v37 = vadd.f32 %v7508_v6, %v2821_v56 }
 0x2f4   : > { %v2200_v39 = vpop.f32.mrf.mxu2 }
 0x2f5   : > { %v2478_v40 = vpop.f32.mrf.mxu3  ;;  %v2889_v5 = vmax.f32 %v2857_v37, 0.0  ;;  %v2266_v30 = vadd.f32 %v2200_v39, %v1987_v21 }
 0x2f6   : > { %v7672_v26 = vld [vmem:[#allocation3 + $0xb1] sm:$0xff] }
 0x2f7   : > { %2922 = vst.msk [vmem:[#allocation3 + $0xc1] sm:$0xff] %vm225_vm1, %v2889_v5  ;;  %v2544_v60 = vadd.f32 %v2478_v40, %v2266_v30  ;;  %5928 = vmatmul.msk.f32.gmra.mxu1 %vm225_vm1, %v7672_v26  ;;  %v2762_v1 = vpop.f32.mrf.mxu0 }
 0x2f9   : > { %v2822_v55 = vadd.f32 %v2756_v9, %v2544_v60  ;;  %5946 = vmatmul.msk.f32.vlgmr.msrb.gmra.mxu2 %vm225_vm1, %v2940_v28  ;;  %v7725_v60 = vld [vmem:[#allocation3 + $0x22] sm:$0xff] }
 0x2fa   : > { %5980 = vmatmul.msk.f32.vlgmr.msrb.gmra.mxu3 %vm225_vm1, %v3431_v47  ;;  %6015 = vmatmul.msk.f32.gmra.mxu0 %vm225_vm1, %v3710_v11 }
 0x2fb   : > { %v2858_v25 = vadd.f32 %v7508_v6, %v2822_v55  ;;  %v7730_v55 = vld [vmem:[#allocation3 + $0x48] sm:$0xff] }
 0x2fc   : > { %v2203_v35 = vpop.f32.mrf.mxu2 }
 0x2fd   : > { %v2481_v24 = vpop.f32.mrf.mxu3  ;;  %v2890_v13 = vmax.f32 %v2858_v25, 0.0  ;;  %v2267_v2 = vadd.f32 %v2203_v35, %v1988_v61  ;;  %v9061_v61 = vld [vmem:[#allocation5_spill] sm:$0xff] }
 0x2fe   : > { %v7685_v43 = vld [vmem:[#allocation3 + $0xc1] sm:$0xff]  ;;  %v1991_v25 = vadd.f32 %v7496_v20, %v9061_v61 }
 0x2ff   : > { %2923 = vst.msk [vmem:[#allocation3 + $0xc9] sm:$0xff] %vm225_vm1, %v2890_v13  ;;  %v2545_v63 = vadd.f32 %v2481_v24, %v2267_v2  ;;  %5929 = vmatmul.msk.f32.gmra.mxu1 %vm225_vm1, %v7685_v43  ;;  %v2765_v50 = vpop.f32.mrf.mxu0 }
 0x301   : > { %v2823_v9 = vadd.f32 %v2759_v23, %v2545_v63  ;;  %5947 = vmatmul.msk.f32.gmra.mxu2 %vm225_vm1, %v2941_v51  ;;  %v9060_v23 = vld [vmem:[#allocation13_spill] sm:$0xff] }
 0x302   : > { %5981 = vmatmul.msk.f32.gmra.mxu3 %vm225_vm1, %v3432_v33  ;;  %6016 = vmatmul.msk.f32.gmra.mxu0 %vm225_vm1, %v7692_v12  ;;  %v1990_v56 = vadd.f32 %v9060_v23, %v9059_v59 }
 0x303   : > { %v2859_v29 = vadd.f32 %v7508_v6, %v2823_v9  ;;  %v7744_v9 = vld [vmem:[#allocation3 + $0x32] sm:$0xff] }
 0x304   : > { %v2206_v27 = vpop.f32.mrf.mxu2 }
 0x305   : > { %v2484_v32 = vpop.f32.mrf.mxu3  ;;  %v2891_v14 = vmax.f32 %v2859_v29, 0.0  ;;  %v2268_v44 = vadd.f32 %v2206_v27, %v1989_v52  ;;  %v7750_v52 = vld [vmem:[#allocation3 + $0x50] sm:$0xff]  ;;  %v9062_v29 = vld [vmem:[#allocation6_spill] sm:$0xff] }
 0x306   : > { %v7701_v3 = vld [vmem:[#allocation3 + $0xc9] sm:$0xff]  ;;  %v1992_v27 = vadd.f32 %v7514_v0, %v9062_v29 }
 0x307   : > { %2924 = vst.msk [vmem:[#allocation3 + $0xd9] sm:$0xff] %vm225_vm1, %v2891_v14  ;;  %v2546_v41 = vadd.f32 %v2484_v32, %v2268_v44  ;;  %5930 = vmatmul.msk.f32.gmra.mxu1 %vm225_vm1, %v7701_v3  ;;  %v2768_v53 = vpop.f32.mrf.mxu0 }
 0x309   : > { %v2824_v10 = vadd.f32 %v2762_v1, %v2546_v41  ;;  %5948 = vmatmul.msk.f32.gmra.mxu2 %vm225_vm1, %v3709_v54 }
 0x30a   : > { %5982 = vmatmul.msk.f32.gmra.mxu3 %vm225_vm1, %v7706_v16  ;;  %6017 = vmatmul.msk.f32.gmra.mxu0 %vm225_vm1, %v7711_v22 }
 0x30b   : > { %v2860_v21 = vadd.f32 %v7508_v6, %v2824_v10 }
 0x30c   : > { %v2209_v37 = vpop.f32.mrf.mxu2  ;;  %v7718_v30 = vpop.f32.mrf.mxu1 }
 0x30d   : > { %v2487_v39 = vpop.f32.mrf.mxu3  ;;  %v2892_v40 = vmax.f32 %v2860_v21, 0.0  ;;  %v2269_v5 = vadd.f32 %v2209_v37, %v1990_v56  ;;  %v7764_v21 = vld [vmem:[#allocation3 + $0x3a] sm:$0xff] }
 0x30e   : > { %v7720_v54 = vld [vmem:[#allocation3 + $0xd9] sm:$0xff] }
 0x30f   : > { %2925 = vst.msk [vmem:[#allocation3 + $0xe1] sm:$0xff] %vm225_vm1, %v2892_v40  ;;  %v2547_v28 = vadd.f32 %v2487_v39, %v2269_v5  ;;  %5931 = vmatmul.msk.f32.gmra.mxu1 %vm225_vm1, %v7720_v54  ;;  %v2771_v47 = vpop.f32.mrf.mxu0  ;;  %v7770_v37 = vld [vmem:[#allocation3 + $0x60] sm:$0xff]  ;;  %v9063_v39 = vld [vmem:[#allocation7_spill] sm:$0xff] }
 0x310   : > { %v1993_v40 = vadd.f32 %v7524_v17, %v9063_v39  ;;  %v7810_v39 = vld [vmem:[#allocation3 + $0x78] sm:$0xff] }
 0x311   : > { %v2825_v1 = vadd.f32 %v2765_v50, %v2547_v28  ;;  %5949 = vmatmul.msk.f32.gmra.mxu2 %vm225_vm1, %v3710_v11 }
 0x312   : > { %5983 = vmatmul.msk.f32.gmra.mxu3 %vm225_vm1, %v7725_v60  ;;  %6018 = vmatmul.msk.f32.gmra.mxu0 %vm225_vm1, %v7730_v55 }
 0x313   : > { %v2861_v35 = vadd.f32 %v7508_v6, %v2825_v1 }
 0x314   : > { %v2212_v24 = vpop.f32.mrf.mxu2  ;;  %v7737_v33 = vpop.f32.mrf.mxu1 }
 0x315   : > { %v2490_v13 = vpop.f32.mrf.mxu3  ;;  %v2893_v2 = vmax.f32 %v2861_v35, 0.0  ;;  %v2270_v51 = vadd.f32 %v2212_v24, %v1991_v25 }
 0x316   : > { %v7739_v11 = vld [vmem:[#allocation3 + $0xe1] sm:$0xff] }
 0x317   : > { %2926 = vst.msk [vmem:[#allocation3 + $0xf1] sm:$0xff] %vm225_vm1, %v2893_v2  ;;  %v2548_v63 = vadd.f32 %v2490_v13, %v2270_v51  ;;  %5932 = vmatmul.msk.f32.gmra.mxu1 %vm225_vm1, %v7739_v11  ;;  %v2774_v50 = vpop.f32.mrf.mxu0  ;;  %v7784_v2 = vld [vmem:[#allocation3 + $0x4a] sm:$0xff] }
 0x318   : > { %v7790_v51 = vld [vmem:[#allocation3 + $0x68] sm:$0xff] }
 0x319   : > { %v2826_v20 = vadd.f32 %v2768_v53, %v2548_v63  ;;  %5950 = vmatmul.msk.f32.gmra.mxu2 %vm225_vm1, %v7692_v12  ;;  %v9064_v63 = vld [vmem:[#allocation8_spill] sm:$0xff] }
 0x31a   : > { %5984 = vmatmul.msk.f32.gmra.mxu3 %vm225_vm1, %v7744_v9  ;;  %6019 = vmatmul.msk.f32.gmra.mxu0 %vm225_vm1, %v7750_v52 }
 0x31b   : > { %v2862_v32 = vadd.f32 %v7508_v6, %v2826_v20  ;;  %v1994_v20 = vadd.f32 %v7535_v15, %v9064_v63 }
 0x31c   : > { %v2215_v14 = vpop.f32.mrf.mxu2  ;;  %v7757_v10 = vpop.f32.mrf.mxu1 }
 0x31d   : > { %v2493_v44 = vpop.f32.mrf.mxu3  ;;  %v2894_v41 = vmax.f32 %v2862_v32, 0.0  ;;  %v2271_v53 = vadd.f32 %v2215_v14, %v1992_v27 }
 0x31e   : > { %v7759_v59 = vld [vmem:[#allocation3 + $0xf1] sm:$0xff] }
 0x31f   : > { %2927 = vst.msk [vmem:[#allocation3 + $0xf9] sm:$0xff] %vm225_vm1, %v2894_v41  ;;  %v2549_v23 = vadd.f32 %v2493_v44, %v2271_v53  ;;  %5933 = vmatmul.msk.f32.gmra.mxu1 %vm225_vm1, %v7759_v59  ;;  %v2777_v56 = vpop.f32.mrf.mxu0 }
 0x321   : > { %v2827_v0 = vadd.f32 %v2771_v47, %v2549_v23  ;;  %5951 = vmatmul.msk.f32.gmra.mxu2 %vm225_vm1, %v7711_v22 }
 0x322   : > { %5985 = vmatmul.msk.f32.gmra.mxu3 %vm225_vm1, %v7764_v21  ;;  %6020 = vmatmul.msk.f32.gmra.mxu0 %vm225_vm1, %v7770_v37 }
 0x323   : > { %v2863_v5 = vadd.f32 %v7508_v6, %v2827_v0  ;;  %v7804_v0 = vld [vmem:[#allocation3 + $0x52] sm:$0xff] }
 0x324   : > { %v2218_v28 = vpop.f32.mrf.mxu2  ;;  %v7777_v25 = vpop.f32.mrf.mxu1 }
 0x325   : > { %v2496_v1 = vpop.f32.mrf.mxu3  ;;  %v2895_v61 = vmax.f32 %v2863_v5, 0.0  ;;  %v2272_v47 = vadd.f32 %v2218_v28, %v1993_v40  ;;  %v9065_v40 = vld [vmem:[#allocation9_spill] sm:$0xff] }
 0x326   : > { %v7779_v35 = vld [vmem:[#allocation3 + $0xf9] sm:$0xff]  ;;  %v1995_v5 = vadd.f32 %v7547_v62, %v9065_v40 }
 0x327   : > { %2928 = vst.msk [vmem:[#allocation3 + $0x109] sm:$0xff] %vm225_vm1, %v2895_v61  ;;  %v2550_v24 = vadd.f32 %v2496_v1, %v2272_v47  ;;  %5934 = vmatmul.msk.f32.gmra.mxu1 %vm225_vm1, %v7779_v35  ;;  %v2780_v13 = vpop.f32.mrf.mxu0 }
 0x329   : > { %v2828_v17 = vadd.f32 %v2774_v50, %v2550_v24  ;;  %5952 = vmatmul.msk.f32.gmra.mxu2 %vm225_vm1, %v7730_v55 }
 0x32a   : > { %5986 = vmatmul.msk.f32.gmra.mxu3 %vm225_vm1, %v7784_v2  ;;  %6021 = vmatmul.msk.f32.gmra.mxu0 %vm225_vm1, %v7790_v51 }
 0x32b   : > { %v2864_v29 = vadd.f32 %v7508_v6, %v2828_v17 }
 0x32c   : > { %v2221_v27 = vpop.f32.mrf.mxu2  ;;  %v7797_v44 = vpop.f32.mrf.mxu1 }
 0x32d   : > { %v2499_v32 = vpop.f32.mrf.mxu3  ;;  %v2896_v14 = vmax.f32 %v2864_v29, 0.0  ;;  %v2273_v50 = vadd.f32 %v2221_v27, %v1994_v20  ;;  %v7824_v29 = vld [vmem:[#allocation3 + $0x62] sm:$0xff] }
 0x32e   : > { %v7799_v41 = vld [vmem:[#allocation3 + $0x109] sm:$0xff]  ;;  %v7830_v27 = vld [vmem:[#allocation3 + $0x80] sm:$0xff] }
 0x32f   : > { %2929 = vst.msk [vmem:[#allocation3 + $0x111] sm:$0xff] %vm225_vm1, %v2896_v14  ;;  %v2551_v53 = vadd.f32 %v2499_v32, %v2273_v50  ;;  %5935 = vmatmul.msk.f32.gmra.mxu1 %vm225_vm1, %v7799_v41  ;;  %v2783_v23 = vpop.f32.mrf.mxu0  ;;  %v9067_v32 = vld [vmem:[#allocation10_spill] sm:$0xff] }
 0x330   : > { %9066 = vst [vmem:[#allocation14_spill] sm:$0xff] %v7830_v27  ;;  %v1996_v14 = vadd.f32 %v7561_v48, %v9067_v32 }
 0x331   : > { %v2829_v15 = vadd.f32 %v2777_v56, %v2551_v53  ;;  %5953 = vmatmul.msk.f32.gmra.mxu2 %vm225_vm1, %v7750_v52 }
 0x332   : > { %5987 = vmatmul.msk.f32.gmra.mxu3 %vm225_vm1, %v7804_v0  ;;  %6022 = vmatmul.msk.f32.gmra.mxu0 %vm225_vm1, %v7810_v39 }
 0x333   : > { %v2865_v28 = vadd.f32 %v7508_v6, %v2829_v15 }
 0x334   : > { %v2224_v1 = vpop.f32.mrf.mxu2  ;;  %v7817_v24 = vpop.f32.mrf.mxu1 }
 0x335   : > { %v2502_v61 = vpop.f32.mrf.mxu3  ;;  %v2897_v47 = vmax.f32 %v2865_v28, 0.0  ;;  %v2274_v56 = vadd.f32 %v2224_v1, %v1995_v5 }
 0x336   : > { %v7819_v17 = vld [vmem:[#allocation3 + $0x111] sm:$0xff] }
 0x337   : > { %2930 = vst.msk [vmem:[#allocation3 + $0x121] sm:$0xff] %vm225_vm1, %v2897_v47  ;;  %v2552_v63 = vadd.f32 %v2502_v61, %v2274_v56  ;;  %5936 = vmatmul.msk.f32.gmra.mxu1 %vm225_vm1, %v7819_v17  ;;  %v2786_v20 = vpop.f32.mrf.mxu0  ;;  %v7844_v47 = vld [vmem:[#allocation3 + $0x6a] sm:$0xff] }
 0x338   : > { %9069 = vst [vmem:[#allocation16_spill] sm:$0xff] %v7844_v47  ;;  %v7850_v56 = vld [vmem:[#allocation3 + $0x90] sm:$0xff] }
 0x339   : > { %v2830_v62 = vadd.f32 %v2780_v13, %v2552_v63  ;;  %5954 = vmatmul.msk.f32.gmra.mxu2 %vm225_vm1, %v7770_v37  ;;  %9070 = vst [vmem:[#allocation21_spill] sm:$0xff] %v7850_v56  ;;  %v9071_v63 = vld [vmem:[#allocation11_spill] sm:$0xff] }
 0x33a   : > { %5988 = vmatmul.msk.f32.gmra.mxu3 %vm225_vm1, %v7824_v29  ;;  %6023 = vmatmul.msk.f32.gmra.mxu0 %vm225_vm1, %v7830_v27 }
 0x33b   : > { %v2866_v50 = vadd.f32 %v7508_v6, %v2830_v62  ;;  %v1997_v62 = vadd.f32 %v7572_v4, %v9071_v63  ;;  %v9075_v63 = vld [vmem:[#allocation12_spill] sm:$0xff] }
 0x33c   : > { %v2227_v53 = vpop.f32.mrf.mxu2  ;;  %v7837_v5 = vpop.f32.mrf.mxu1 }
 0x33d   : > { %v2505_v15 = vpop.f32.mrf.mxu3  ;;  %v2898_v40 = vmax.f32 %v2866_v50, 0.0  ;;  %v2275_v13 = vadd.f32 %v2227_v53, %v1996_v14 }
 0x33e   : > { %v7839_v28 = vld [vmem:[#allocation3 + $0x121] sm:$0xff] }
 0x33f   : > { %9068 = vst [vmem:[#allocation19_spill] sm:$0xff] %v7839_v28  ;;  %v2553_v1 = vadd.f32 %v2505_v15, %v2275_v13  ;;  %5937 = vmatmul.msk.f32.gmra.mxu1 %vm225_vm1, %v7839_v28  ;;  %v2789_v61 = vpop.f32.mrf.mxu0  ;;  %v7884_v28 = vld [vmem:[#allocation3 + $0x82] sm:$0xff] }
 0x340   : > { %2931 = vst.msk [vmem:[#allocation3 + $0x129] sm:$0xff] %vm225_vm1, %v2898_v40 }
 0x341   : > { %v2831_v48 = vadd.f32 %v2783_v23, %v2553_v1  ;;  %5955 = vmatmul.msk.f32.gmra.mxu2 %vm225_vm1, %v7790_v51  ;;  %9077 = vst [vmem:[#allocation22_spill] sm:$0xff] %v7884_v28 }
 0x342   : > { %5989 = vmatmul.msk.f32.gmra.mxu3 %vm225_vm1, %v7844_v47  ;;  %6024 = vmatmul.msk.f32.gmra.mxu0 %vm225_vm1, %v7850_v56  ;;  %v7864_v47 = vld [vmem:[#allocation3 + $0x7a] sm:$0xff] }
 0x343   : > { %v2867_v32 = vadd.f32 %v7508_v6, %v2831_v48  ;;  %9073 = vst [vmem:[#allocation23_spill] sm:$0xff] %v7864_v47  ;;  %v7870_v48 = vld [vmem:[#allocation3 + $0x98] sm:$0xff] }
 0x344   : > { %v2230_v14 = vpop.f32.mrf.mxu2  ;;  %v7857_v15 = vpop.f32.mrf.mxu1  ;;  %9074 = vst [vmem:[#allocation20_spill] sm:$0xff] %v7870_v48 }
 0x345   : > { %v2508_v50 = vpop.f32.mrf.mxu3  ;;  %v2899_v53 = vmax.f32 %v2867_v32, 0.0  ;;  %v2276_v23 = vadd.f32 %v2230_v14, %v1997_v62  ;;  %v1998_v62 = vadd.f32 %v7584_v45, %v9075_v63  ;;  %v9079_v63 = vld [vmem:[#allocation15_spill] sm:$0xff] }
 0x347   : > { %v7859_v40 = vld [vmem:[#allocation3 + $0x129] sm:$0xff]  ;;  %2932 = vst.msk [vmem:[#allocation3 + $0x139] sm:$0xff] %vm225_vm1, %v2899_v53  ;;  %v2554_v13 = vadd.f32 %v2508_v50, %v2276_v23  ;;  %v2792_v1 = vpop.f32.mrf.mxu0 }
 0x348   : > { %9072 = vst [vmem:[#allocation18_spill] sm:$0xff] %v7859_v40  ;;  %5938 = vmatmul.msk.f32.gmra.mxu1 %vm225_vm1, %v7859_v40 }
 0x349   : > { %v2832_v4 = vadd.f32 %v2786_v20, %v2554_v13  ;;  %5956 = vmatmul.msk.f32.gmra.mxu2 %vm225_vm1, %v7810_v39 }
 0x34a   : > { %5990 = vmatmul.msk.f32.gmra.mxu3 %vm225_vm1, %v7864_v47  ;;  %6025 = vmatmul.msk.f32.gmra.mxu0 %vm225_vm1, %v7870_v48 }
 0x34b   : > { %v2868_v32 = vadd.f32 %v7508_v6, %v2832_v4  ;;  %v7890_v4 = vld [vmem:[#allocation3 + $0xa8] sm:$0xff] }
 0x34c   : > { %v2233_v14 = vpop.f32.mrf.mxu2  ;;  %v7877_v23 = vpop.f32.mrf.mxu1  ;;  %9078 = vst [vmem:[#allocation27_spill] sm:$0xff] %v7890_v4 }
 0x34d   : > { %v2511_v50 = vpop.f32.mrf.mxu3  ;;  %v2900_v53 = vmax.f32 %v2868_v32, 0.0  ;;  %v2277_v20 = vadd.f32 %v2233_v14, %v1998_v62  ;;  %v1999_v62 = vadd.f32 %v7597_v7, %v9079_v63  ;;  %v6080_v7 = vld [vmem:[%s8895_s3 + $0x14] sm:$0xf] }
 0x34e   : > { %v7879_v13 = vld [vmem:[#allocation3 + $0x139] sm:$0xff]  ;;  %6081 = vmatpush.msk.msra.mxu2 %vm563_vm0, %v6080_v7 }
 0x34f   : > { %9076 = vst [vmem:[#allocation25_spill] sm:$0xff] %v7879_v13  ;;  %v2555_v47 = vadd.f32 %v2511_v50, %v2277_v20  ;;  %v2795_v40 = vpop.f32.mrf.mxu0 }
 0x350   : > { %2933 = vst.msk [vmem:[#allocation3 + $0x141] sm:$0xff] %vm225_vm1, %v2900_v53  ;;  %5939 = vmatmul.msk.f32.gmra.mxu1 %vm225_vm1, %v7879_v13 }
 0x351   : > { %v2833_v45 = vadd.f32 %v2789_v61, %v2555_v47  ;;  %5957 = vmatmul.msk.f32.gmra.mxu2 %vm225_vm1, %v7830_v27  ;;  %v7960_v27 = vld [vmem:[#allocation3 + $0xaa] sm:$0xff] }
 0x352   : > { %5991 = vmatmul.msk.f32.gmra.mxu3 %vm225_vm1, %v7884_v28  ;;  %6026 = vmatmul.msk.f32.gmra.mxu0 %vm225_vm1, %v7890_v4  ;;  %9089 = vst [vmem:[#allocation35_spill] sm:$0xff] %v7960_v27 }
 0x353   : > { %v2869_v32 = vadd.f32 %v7508_v6, %v2833_v45  ;;  %v7907_v45 = vld [vmem:[#allocation3 + $0x92] sm:$0xff] }
 0x354   : > { %v2236_v14 = vpop.f32.mrf.mxu2  ;;  %v7897_v47 = vpop.f32.mrf.mxu1  ;;  %9081 = vst [vmem:[#allocation29_spill] sm:$0xff] %v7907_v45 }
 0x355   : > { %v2514_v50 = vpop.f32.mrf.mxu3  ;;  %v2901_v53 = vmax.f32 %v2869_v32, 0.0  ;;  %v2278_v61 = vadd.f32 %v2236_v14, %v1999_v62  ;;  %v7914_v62 = vld [vmem:[#allocation3 + $0xb0] sm:$0xff]  ;;  %v9083_v32 = vld [vmem:[#allocation42_spill] sm:$0xff] }
 0x356   : > { %9082 = vst [vmem:[#allocation26_spill] sm:$0xff] %v7914_v62  ;;  %v2000_v14 = vadd.f32 %v7614_v49, %v9083_v32  ;;  %v6114_v49 = vld [vmem:[%s8895_s3 + $0x18] sm:$0xf]  ;;  %v7934_v32 = vld [vmem:[#allocation3 + $0x9a] sm:$0xff] }
 0x357   : > { %v7899_v20 = vld [vmem:[#allocation3 + $0x141] sm:$0xff]  ;;  %2934 = vst.msk [vmem:[#allocation3 + $0x151] sm:$0xff] %vm225_vm1, %v2901_v53  ;;  %v2556_v28 = vadd.f32 %v2514_v50, %v2278_v61  ;;  %v2798_v13 = vpop.f32.mrf.mxu0  ;;  %6115 = vmatpush.msk.msra.mxu3 %vm563_vm0, %v6114_v49 }
 0x358   : > { %9080 = vst [vmem:[#allocation24_spill] sm:$0xff] %v7899_v20  ;;  %5940 = vmatmul.msk.f32.gmra.mxu1 %vm225_vm1, %v7899_v20 }
 0x359   : > { %v2834_v63 = vadd.f32 %v2792_v1, %v2556_v28  ;;  %5958 = vmatmul.msk.f32.gmra.mxu2 %vm225_vm1, %v7850_v56  ;;  %9085 = vst [vmem:[#allocation28_spill] sm:$0xff] %v7934_v32 }
 0x35a   : > { %5992 = vmatmul.msk.f32.gmra.mxu3 %vm225_vm1, %v7907_v45  ;;  %6027 = vmatmul.msk.f32.gmra.mxu0 %vm225_vm1, %v7914_v62 }
 0x35b   : > { %v2870_v50 = vadd.f32 %v7508_v6, %v2834_v63  ;;  %v6148_v63 = vld [vmem:[%s8895_s3 + $0x1c] sm:$0xf] }
 0x35c   : > { %v2239_v53 = vpop.f32.mrf.mxu2  ;;  %v7921_v1 = vpop.f32.mrf.mxu1  ;;  %6149 = vmatpush.msk.msra.mxu0 %vm563_vm0, %v6148_v63 }
 0x35d   : > { %v2517_v61 = vpop.f32.mrf.mxu3  ;;  %v2902_v7 = vmax.f32 %v2870_v50, 0.0  ;;  %v2279_v28 = vadd.f32 %v2239_v53, %v2000_v14  ;;  %v6182_v14 = vld [vmem:[%s8895_s3 + $0x20] sm:$0xf]  ;;  %v7945_v53 = vld [vmem:[#allocation3 + $0xc0] sm:$0xff] }
 0x35e   : > { %v7923_v20 = vld [vmem:[#allocation3 + $0x151] sm:$0xff]  ;;  %9086 = vst [vmem:[#allocation33_spill] sm:$0xff] %v7945_v53  ;;  %6183 = vmatpush.msk.msra.mxu1 %vm563_vm0, %v6182_v14 }
 0x35f   : > { %9084 = vst [vmem:[#allocation31_spill] sm:$0xff] %v7923_v20  ;;  %v2557_v45 = vadd.f32 %v2517_v61, %v2279_v28  ;;  %v2801_v56 = vpop.f32.mrf.mxu0  ;;  %v9087_v61 = vld [vmem:[#allocation17_spill] sm:$0xff] }
 0x360   : > { %2935 = vst.msk [vmem:[#allocation3 + $0x159] sm:$0xff] %vm225_vm1, %v2902_v7  ;;  %5941 = vmatmul.msk.f32.gmra.mxu1 %vm225_vm1, %v7923_v20  ;;  %v2001_v7 = vadd.f32 %v7631_v38, %v9087_v61  ;;  %v6233_v61 = vld [vmem:[%s8894_s2] ss:$0 sm:$0xff] }
 0x361   : > { %v2835_v50 = vadd.f32 %v2795_v40, %v2557_v45  ;;  %5959 = vmatmul.msk.f32.gmra.mxu2 %vm225_vm1, %v7870_v48 }
 0x362   : > { %5993 = vmatmul.msk.f32.gmra.mxu3 %vm225_vm1, %v7934_v32  ;;  %6028 = vmatmul.msk.f32.gmra.mxu0 %vm225_vm1, %v7945_v53 }
 0x363   : > { %v2871_v28 = vadd.f32 %v7508_v6, %v2835_v50  ;;  %v7966_v6 = vld [vmem:[#allocation3 + $0xc8] sm:$0xff]  ;;  %v2002_v50 = vadd.f32 %v7648_v36, %v7491_v34  ;;  %v7982_v36 = vld [vmem:[#allocation3 + $0xb2] sm:$0xff] }
 0x364   : > { %v2242_v49 = vpop.f32.mrf.mxu2  ;;  %v7953_v20 = vpop.f32.mrf.mxu1  ;;  %9090 = vst [vmem:[#allocation32_spill] sm:$0xff] %v7966_v6 }
 0x365   : > { %v2520_v40 = vpop.f32.mrf.mxu3  ;;  %v2903_v45 = vmax.f32 %v2871_v28, 0.0  ;;  %v2280_v63 = vadd.f32 %v2242_v49, %v2001_v7  ;;  %9092 = vst [vmem:[#allocation34_spill] sm:$0xff] %v7982_v36 }
 0x367   : > { %v7955_v48 = vld [vmem:[#allocation3 + $0x159] sm:$0xff]  ;;  %2936 = vst.msk [vmem:[#allocation3 + $0x169] sm:$0xff] %vm225_vm1, %v2903_v45  ;;  %v2558_v32 = vadd.f32 %v2520_v40, %v2280_v63  ;;  %v2804_v14 = vpop.f32.mrf.mxu0 }
 0x368   : > { %9088 = vst [vmem:[#allocation30_spill] sm:$0xff] %v7955_v48  ;;  %5942 = vmatmul.msk.f32.gmra.mxu1 %vm225_vm1, %v7955_v48  ;;  %v8001_v48 = vld [vmem:[#allocation3 + $0xc2] sm:$0xff] }
 0x369   : > { %v2836_v38 = vadd.f32 %v2798_v13, %v2558_v32  ;;  %5960 = vmatmul.msk.f32.gmra.mxu2 %vm225_vm1, %v7890_v4  ;;  %9095 = vst [vmem:[#allocation41_spill] sm:$0xff] %v8001_v48  ;;  %v6234_v4 = vld [vmem:[#allocation3 + $0x69] sm:$0xff] }
 0x36a   : > { %5994 = vmatmul.msk.f32.gmra.mxu3 %vm225_vm1, %v7960_v27  ;;  %6029 = vmatmul.msk.f32.gmra.mxu0 %vm225_vm1, %v7966_v6 }
 0x36b   : > { %v2872_v7 = vadd.f32 %v6233_v61, %v2836_v38  ;;  %v7988_v38 = vld [vmem:[#allocation3 + $0xd8] sm:$0xff] }
 0x36c   : > { %v2245_v13 = vpop.f32.mrf.mxu2  ;;  %v7975_v40 = vpop.f32.mrf.mxu1  ;;  %9093 = vst [vmem:[#allocation39_spill] sm:$0xff] %v7988_v38 }
 0x36d   : > { %v2523_v32 = vpop.f32.mrf.mxu3  ;;  %v2904_v28 = vmax.f32 %v2872_v7, 0.0  ;;  %v2281_v49 = vadd.f32 %v2245_v13, %v2002_v50  ;;  %v2003_v50 = vadd.f32 %v7664_v58, %v7500_v18  ;;  %v8007_v18 = vld [vmem:[#allocation3 + $0xe0] sm:$0xff] }
 0x36e   : > { %v7977_v45 = vld [vmem:[#allocation3 + $0x169] sm:$0xff]  ;;  %9096 = vst [vmem:[#allocation38_spill] sm:$0xff] %v8007_v18 }
 0x36f   : > { %9091 = vst [vmem:[#allocation37_spill] sm:$0xff] %v7977_v45  ;;  %v2559_v63 = vadd.f32 %v2523_v32, %v2281_v49  ;;  %v3859_v34 = vpop.f32.mrf.mxu0 }
 0x370   : > { %2937 = vst.msk [vmem:[#allocation3 + $0x171] sm:$0xff] %vm225_vm1, %v2904_v28  ;;  %5943 = vmatmul.msk.f32.gmra.mxu1 %vm225_vm1, %v7977_v45 }
 0x371   : > { %v2837_v27 = vadd.f32 %v2801_v56, %v2559_v63  ;;  %5961 = vmatmul.msk.f32.gmra.mxu2 %vm225_vm1, %v7914_v62 }
 0x372   : > { %5995 = vmatmul.msk.f32.gmra.mxu3 %vm225_vm1, %v7982_v36  ;;  %6030 = vmatmul.msk.f32.gmra.mxu0 %vm225_vm1, %v7988_v38 }
 0x373   : > { %v2873_v7 = vadd.f32 %v6233_v61, %v2837_v27 }
 0x374   : > { %v2248_v13 = vpop.f32.mrf.mxu2  ;;  %v7994_v56 = vpop.f32.mrf.mxu1 }
 0x375   : > { %v2526_v32 = vpop.f32.mrf.mxu3  ;;  %v2905_v28 = vmax.f32 %v2873_v7, 0.0  ;;  %v2282_v49 = vadd.f32 %v2248_v13, %v2003_v50 }
 0x377   : > { %v7996_v63 = vld [vmem:[#allocation3 + $0x171] sm:$0xff]  ;;  %2938 = vst.msk [vmem:[#allocation3 + $0x181] sm:$0xff] %vm225_vm1, %v2905_v28  ;;  %v2560_v36 = vadd.f32 %v2526_v32, %v2282_v49  ;;  %v3862_v45 = vpop.f32.mrf.mxu0 }
 0x378   : > { %9094 = vst [vmem:[#allocation36_spill] sm:$0xff] %v7996_v63  ;;  %5944 = vmatmul.msk.f32.gmra.mxu1 %vm225_vm1, %v7996_v63  ;;  %v8016_v49 = vld [vmem:[#allocation3 + $0xca] sm:$0xff] }
 0x379   : > { %v2838_v62 = vadd.f32 %v2804_v14, %v2560_v36  ;;  %5962 = vmatmul.msk.f32.gmra.mxu2 %vm225_vm1, %v7945_v53  ;;  %v3987_v14 = vld [vmem:[#allocation3 + $0x19] sm:$0xff]  ;;  %9097 = vst [vmem:[#allocation40_spill] sm:$0xff] %v8016_v49 }
 0x37a   : > { %5996 = vmatmul.msk.f32.gmra.mxu3 %vm225_vm1, %v8001_v48  ;;  %6031 = vmatmul.msk.f32.gmra.mxu0 %vm225_vm1, %v8007_v18  ;;  %v8032_v48 = vld [vmem:[#allocation3 + $0xda] sm:$0xff] }
 0x37b   : > { %v2874_v58 = vadd.f32 %v6233_v61, %v2838_v62  ;;  %v8022_v62 = vld [vmem:[#allocation3 + $0xf0] sm:$0xff]  ;;  %9100 = vst [vmem:[#allocation4_spill] sm:$0xff] %v8032_v48 }
 0x37c   : > { %v3335_v27 = vpop.f32.mrf.mxu2  ;;  %v8011_v13 = vpop.f32.mrf.mxu1  ;;  %9098 = vst [vmem:[#allocation43_spill] sm:$0xff] %v8022_v62 }
 0x37d   : > { %v3581_v50 = vpop.f32.mrf.mxu3  ;;  %v2906_v7 = vmax.f32 %v2874_v58, 0.0  ;;  %v3336_v32 = vadd.f32 %v3335_v27, %v7679_v8 }
 0x37f   : > { %2939 = vst.msk [vmem:[#allocation3 + $0x189] sm:$0xff] %vm225_vm1, %v2906_v7  ;;  %v3677_v36 = vadd.f32 %v3581_v50, %v3336_v32  ;;  %v3865_v28 = vpop.f32.mrf.mxu0  ;;  %v3988_v7 = vld [vmem:[#allocation3 + $0x21] sm:$0xff] }
 0x380   : > { %6048 = vmatmul.msk.f32.vlgmr.msrb.gmra.mxu1 %vm225_vm1, %v3987_v14 }
 0x381   : > { %5963 = vmatmul.msk.f32.gmra.mxu2 %vm225_vm1, %v7966_v6  ;;  %v8024_v61 = vadd.f32 %v3859_v34, %v3677_v36  ;;  %v8038_v34 = vld [vmem:[#allocation3 + $0xf8] sm:$0xff] }
 0x382   : > { %5997 = vmatmul.msk.f32.gmra.mxu3 %vm225_vm1, %v8016_v49  ;;  %6032 = vmatmul.msk.f32.gmra.mxu0 %vm225_vm1, %v8022_v62  ;;  %9101 = vst [vmem:[#allocation13_spill] sm:$0xff] %v8038_v34  ;;  %v8051_v49 = vld [vmem:[#allocation3 + $0xe2] sm:$0xff] }
 0x383   : > { %9099 = vst [vmem:[#allocation44_spill] sm:$0xff] %v8024_v61 }
 0x384   : > { %v3338_v8 = vpop.f32.mrf.mxu2  ;;  %v8028_v27 = vpop.f32.mrf.mxu1  ;;  %9103 = vst [vmem:[#allocation6_spill] sm:$0xff] %v8051_v49 }
 0x385   : > { %v3584_v58 = vpop.f32.mrf.mxu3  ;;  %v3339_v50 = vadd.f32 %v3338_v8, %v7699_v46 }
 0x387   : > { %v3678_v32 = vadd.f32 %v3584_v58, %v3339_v50  ;;  %v3868_v14 = vpop.f32.mrf.mxu0 }
 0x388   : > { %6049 = vmatmul.msk.f32.gmra.mxu1 %vm225_vm1, %v3988_v7  ;;  %v8047_v7 = vld [vmem:[#allocation3 + $0x31] sm:$0xff] }
 0x389   : > { %5964 = vmatmul.msk.f32.gmra.mxu2 %vm225_vm1, %v7988_v38  ;;  %v8040_v36 = vadd.f32 %v3862_v45, %v3678_v32  ;;  %v8057_v45 = vld [vmem:[#allocation3 + $0x108] sm:$0xff] }
 0x38a   : > { %5998 = vmatmul.msk.f32.gmra.mxu3 %vm225_vm1, %v8032_v48  ;;  %6033 = vmatmul.msk.f32.gmra.mxu0 %vm225_vm1, %v8038_v34  ;;  %9104 = vst [vmem:[#allocation7_spill] sm:$0xff] %v8057_v45 }
 0x38b   : > { %9102 = vst [vmem:[#allocation5_spill] sm:$0xff] %v8040_v36  ;;  %v8066_v36 = vld [vmem:[#allocation3 + $0x39] sm:$0xff] }
 0x38c   : > { %v3341_v46 = vpop.f32.mrf.mxu2  ;;  %v8044_v58 = vpop.f32.mrf.mxu1 }
 0x38d   : > { %v3587_v8 = vpop.f32.mrf.mxu3  ;;  %v3342_v50 = vadd.f32 %v3341_v46, %v7718_v30 }
 0x38f   : > { %v3679_v61 = vadd.f32 %v3587_v8, %v3342_v50  ;;  %v3871_v48 = vpop.f32.mrf.mxu0 }
 0x390   : > { %6050 = vmatmul.msk.f32.gmra.mxu1 %vm225_vm1, %v8047_v7 }
 0x391   : > { %5965 = vmatmul.msk.f32.gmra.mxu2 %vm225_vm1, %v8007_v18  ;;  %v8059_v32 = vadd.f32 %v3865_v28, %v3679_v61  ;;  %v8070_v18 = vld [vmem:[#allocation3 + $0xf2] sm:$0xff] }
 0x392   : > { %5999 = vmatmul.msk.f32.gmra.mxu3 %vm225_vm1, %v8051_v49  ;;  %6034 = vmatmul.msk.f32.gmra.mxu0 %vm225_vm1, %v8057_v45  ;;  %9106 = vst [vmem:[#allocation9_spill] sm:$0xff] %v8070_v18  ;;  %v8076_v28 = vld [vmem:[#allocation3 + $0x110] sm:$0xff] }
 0x393   : > { %9105 = vst [vmem:[#allocation8_spill] sm:$0xff] %v8059_v32  ;;  %v8085_v32 = vld [vmem:[#allocation3 + $0x49] sm:$0xff] }
 0x394   : > { %v3344_v30 = vpop.f32.mrf.mxu2  ;;  %v8063_v8 = vpop.f32.mrf.mxu1  ;;  %9107 = vst [vmem:[#allocation10_spill] sm:$0xff] %v8076_v28 }
 0x395   : > { %v3590_v46 = vpop.f32.mrf.mxu3  ;;  %v3345_v50 = vadd.f32 %v3344_v30, %v7737_v33 }
 0x397   : > { %v3680_v38 = vadd.f32 %v3590_v46, %v3345_v50  ;;  %v3874_v49 = vpop.f32.mrf.mxu0 }
 0x398   : > { %6051 = vmatmul.msk.f32.gmra.mxu1 %vm225_vm1, %v8066_v36 }
 0x399   : > { %5966 = vmatmul.msk.f32.gmra.mxu2 %vm225_vm1, %v8022_v62  ;;  %v8078_v61 = vadd.f32 %v3868_v14, %v3680_v38  ;;  %v8089_v62 = vld [vmem:[#allocation3 + $0xfa] sm:$0xff] }
 0x39a   : > { %6000 = vmatmul.msk.f32.gmra.mxu3 %vm225_vm1, %v8070_v18  ;;  %6035 = vmatmul.msk.f32.gmra.mxu0 %vm225_vm1, %v8076_v28  ;;  %9109 = vst [vmem:[#allocation12_spill] sm:$0xff] %v8089_v62  ;;  %v8095_v38 = vld [vmem:[#allocation3 + $0x120] sm:$0xff] }
 0x39b   : > { %9108 = vst [vmem:[#allocation11_spill] sm:$0xff] %v8078_v61  ;;  %v8104_v61 = vld [vmem:[#allocation3 + $0x51] sm:$0xff] }
 0x39c   : > { %v3347_v33 = vpop.f32.mrf.mxu2  ;;  %v8082_v46 = vpop.f32.mrf.mxu1  ;;  %9110 = vst [vmem:[#allocation15_spill] sm:$0xff] %v8095_v38 }
 0x39d   : > { %v3593_v30 = vpop.f32.mrf.mxu3  ;;  %v3348_v50 = vadd.f32 %v3347_v33, %v7757_v10 }
 0x39f   : > { %v3681_v63 = vadd.f32 %v3593_v30, %v3348_v50  ;;  %v3877_v18 = vpop.f32.mrf.mxu0 }
 0x3a0   : > { %6052 = vmatmul.msk.f32.gmra.mxu1 %vm225_vm1, %v8085_v32 }
 0x3a1   : > { %5967 = vmatmul.msk.f32.gmra.mxu2 %vm225_vm1, %v8038_v34  ;;  %v8097_v14 = vadd.f32 %v3871_v48, %v3681_v63  ;;  %v8108_v34 = vld [vmem:[#allocation3 + $0x10a] sm:$0xff] }
 0x3a2   : > { %6001 = vmatmul.msk.f32.gmra.mxu3 %vm225_vm1, %v8089_v62  ;;  %6036 = vmatmul.msk.f32.gmra.mxu0 %vm225_vm1, %v8095_v38  ;;  %9112 = vst [vmem:[#allocation17_spill] sm:$0xff] %v8108_v34  ;;  %v8114_v48 = vld [vmem:[#allocation3 + $0x128] sm:$0xff] }
 0x3a3   : > { %9111 = vst [vmem:[#allocation42_spill] sm:$0xff] %v8097_v14  ;;  %v8123_v14 = vld [vmem:[#allocation3 + $0x61] sm:$0xff] }
 0x3a4   : > { %v3350_v10 = vpop.f32.mrf.mxu2  ;;  %v8101_v30 = vpop.f32.mrf.mxu1 }
 0x3a5   : > { %v3596_v33 = vpop.f32.mrf.mxu3  ;;  %v3351_v50 = vadd.f32 %v3350_v10, %v7777_v25 }
 0x3a7   : > { %v3682_v6 = vadd.f32 %v3596_v33, %v3351_v50  ;;  %v3880_v62 = vpop.f32.mrf.mxu0 }
 0x3a8   : > { %6053 = vmatmul.msk.f32.gmra.mxu1 %vm225_vm1, %v8104_v61 }
 0x3a9   : > { %5968 = vmatmul.msk.f32.gmra.mxu2 %vm225_vm1, %v8057_v45  ;;  %v8116_v63 = vadd.f32 %v3874_v49, %v3682_v6  ;;  %v8127_v45 = vld [vmem:[#allocation3 + $0x112] sm:$0xff] }
 0x3aa   : > { %6002 = vmatmul.msk.f32.gmra.mxu3 %vm225_vm1, %v8108_v34  ;;  %6037 = vmatmul.msk.f32.gmra.mxu0 %vm225_vm1, %v8114_v48  ;;  %9115 = vst [vmem:[#allocation47_spill] sm:$0xff] %v8127_v45  ;;  %v8133_v6 = vld [vmem:[#allocation3 + $0x138] sm:$0xff] }
 0x3ab   : > { %9113 = vst [vmem:[#allocation45_spill] sm:$0xff] %v8116_v63 }
 0x3ac   : > { %v3353_v25 = vpop.f32.mrf.mxu2  ;;  %v8120_v33 = vpop.f32.mrf.mxu1 }
 0x3ad   : > { %v3599_v10 = vpop.f32.mrf.mxu3  ;;  %9114 = vst [vmem:[#allocation46_spill] sm:$0xff] %v8120_v33  ;;  %v3354_v50 = vadd.f32 %v3353_v25, %v7797_v44  ;;  %v8143_v33 = vld [vmem:[#allocation3 + $0x122] sm:$0xff] }
 0x3ae   : > { %9117 = vst [vmem:[#allocation49_spill] sm:$0xff] %v8143_v33 }
 0x3af   : > { %v3683_v53 = vadd.f32 %v3599_v10, %v3354_v50  ;;  %v3883_v34 = vpop.f32.mrf.mxu0 }
 0x3b0   : > { %6054 = vmatmul.msk.f32.gmra.mxu1 %vm225_vm1, %v8123_v14 }
 0x3b1   : > { %5969 = vmatmul.msk.f32.gmra.mxu2 %vm225_vm1, %v8076_v28  ;;  %v8135_v49 = vadd.f32 %v3877_v18, %v3683_v53  ;;  %v8149_v53 = vld [vmem:[#allocation3 + $0x140] sm:$0xff] }
 0x3b2   : > { %6003 = vmatmul.msk.f32.gmra.mxu3 %vm225_vm1, %v8127_v45  ;;  %6038 = vmatmul.msk.f32.gmra.mxu0 %vm225_vm1, %v8133_v6 }
 0x3b3   : > { %9116 = vst [vmem:[#allocation48_spill] sm:$0xff] %v8135_v49  ;;  %v6235_v49 = vld [vmem:[#allocation3 + $0x79] sm:$0xff] }
 0x3b4   : > { %v3356_v44 = vpop.f32.mrf.mxu2  ;;  %v8139_v10 = vpop.f32.mrf.mxu1 }
 0x3b5   : > { %v3602_v25 = vpop.f32.mrf.mxu3  ;;  %v3357_v50 = vadd.f32 %v3356_v44, %v7817_v24 }
 0x3b7   : > { %v3684_v63 = vadd.f32 %v3602_v25, %v3357_v50  ;;  %v3886_v28 = vpop.f32.mrf.mxu0 }
 0x3b8   : > { %6055 = vmatmul.msk.f32.gmra.mxu1 %vm225_vm1, %v6234_v4 }
 0x3b9   : > { %5970 = vmatmul.msk.f32.gmra.mxu2 %vm225_vm1, %v8095_v38  ;;  %v8151_v18 = vadd.f32 %v3880_v62, %v3684_v63  ;;  %v8159_v38 = vld [vmem:[#allocation3 + $0x12a] sm:$0xff] }
 0x3ba   : > { %6004 = vmatmul.msk.f32.gmra.mxu3 %vm225_vm1, %v8143_v33  ;;  %6039 = vmatmul.msk.f32.gmra.mxu0 %vm225_vm1, %v8149_v53  ;;  %9119 = vst [vmem:[#allocation51_spill] sm:$0xff] %v8159_v38  ;;  %v8165_v62 = vld [vmem:[#allocation3 + $0x150] sm:$0xff]  ;;  %v8176_v33 = vld [vmem:[#allocation3 + $0x13a] sm:$0xff] }
 0x3bb   : > { %9118 = vst [vmem:[#allocation50_spill] sm:$0xff] %v8151_v18 }
 0x3bc   : > { %v3359_v24 = vpop.f32.mrf.mxu2  ;;  %v8155_v25 = vpop.f32.mrf.mxu1  ;;  %9121 = vst [vmem:[#allocation53_spill] sm:$0xff] %v8176_v33 }
 0x3bd   : > { %v3605_v44 = vpop.f32.mrf.mxu3  ;;  %v3360_v4 = vadd.f32 %v3359_v24, %v7837_v5 }
 0x3bf   : > { %v3685_v50 = vadd.f32 %v3605_v44, %v3360_v4  ;;  %v3889_v45 = vpop.f32.mrf.mxu0 }
 0x3c0   : > { %6056 = vmatmul.msk.f32.gmra.mxu1 %vm225_vm1, %v6235_v49 }
 0x3c1   : > { %5971 = vmatmul.msk.f32.gmra.mxu2 %vm225_vm1, %v8114_v48  ;;  %v8167_v63 = vadd.f32 %v3883_v34, %v3685_v50  ;;  %v8182_v34 = vld [vmem:[#allocation3 + $0x158] sm:$0xff] }
 0x3c2   : > { %6005 = vmatmul.msk.f32.gmra.mxu3 %vm225_vm1, %v8159_v38  ;;  %6040 = vmatmul.msk.f32.gmra.mxu0 %vm225_vm1, %v8165_v62  ;;  %v8193_v38 = vld [vmem:[#allocation3 + $0x142] sm:$0xff] }
 0x3c3   : > { %9120 = vst [vmem:[#allocation52_spill] sm:$0xff] %v8167_v63 }
 0x3c4   : > { %v3362_v5 = vpop.f32.mrf.mxu2  ;;  %9123 = vst [vmem:[#allocation55_spill] sm:$0xff] %v8193_v38 }
 0x3c5   : > { %v3608_v24 = vpop.f32.mrf.mxu3  ;;  %v8171_v44 = vpop.f32.mrf.mxu1  ;;  %v3363_v49 = vadd.f32 %v3362_v5, %v7857_v15 }
 0x3c7   : > { %v3686_v4 = vadd.f32 %v3608_v24, %v3363_v49  ;;  %v3892_v18 = vpop.f32.mrf.mxu0 }
 0x3c8   : > { %6057 = vmatmul.msk.f32.gmra.mxu1 %vm225_vm1, %v7617_v31 }
 0x3c9   : > { %5972 = vmatmul.msk.f32.gmra.mxu2 %vm225_vm1, %v8133_v6  ;;  %v8184_v50 = vadd.f32 %v3886_v28, %v3686_v4  ;;  %v8199_v28 = vld [vmem:[#allocation3 + $0x168] sm:$0xff] }
 0x3ca   : > { %6006 = vmatmul.msk.f32.gmra.mxu3 %vm225_vm1, %v8176_v33  ;;  %6041 = vmatmul.msk.f32.gmra.mxu0 %vm225_vm1, %v8182_v34  ;;  %v8210_v33 = vld [vmem:[#allocation3 + $0x152] sm:$0xff] }
 0x3cb   : > { %9122 = vst [vmem:[#allocation54_spill] sm:$0xff] %v8184_v50 }
 0x3cc   : > { %v3365_v15 = vpop.f32.mrf.mxu2  ;;  %9125 = vst [vmem:[#allocation57_spill] sm:$0xff] %v8210_v33 }
 0x3cd   : > { %v3611_v5 = vpop.f32.mrf.mxu3  ;;  %v8188_v24 = vpop.f32.mrf.mxu1  ;;  %v3366_v31 = vadd.f32 %v3365_v15, %v7877_v23 }
 0x3cf   : > { %v3687_v49 = vadd.f32 %v3611_v5, %v3366_v31  ;;  %v3895_v63 = vpop.f32.mrf.mxu0 }
 0x3d0   : > { %6058 = vmatmul.msk.f32.gmra.mxu1 %vm225_vm1, %v7633_v19 }
 0x3d1   : > { %5973 = vmatmul.msk.f32.gmra.mxu2 %vm225_vm1, %v8149_v53  ;;  %v8201_v4 = vadd.f32 %v3889_v45, %v3687_v49  ;;  %v8216_v45 = vld [vmem:[#allocation3 + $0x170] sm:$0xff] }
 0x3d2   : > { %6007 = vmatmul.msk.f32.gmra.mxu3 %vm225_vm1, %v8193_v38  ;;  %6042 = vmatmul.msk.f32.gmra.mxu0 %vm225_vm1, %v8199_v28  ;;  %v8227_v38 = vld [vmem:[#allocation3 + $0x15a] sm:$0xff] }
 0x3d3   : > { %9124 = vst [vmem:[#allocation56_spill] sm:$0xff] %v8201_v4 }
 0x3d4   : > { %v3368_v23 = vpop.f32.mrf.mxu2 }
 0x3d5   : > { %v3614_v15 = vpop.f32.mrf.mxu3  ;;  %v8205_v5 = vpop.f32.mrf.mxu1  ;;  %v3369_v19 = vadd.f32 %v3368_v23, %v7897_v47 }
 0x3d7   : > { %v3688_v31 = vadd.f32 %v3614_v15, %v3369_v19  ;;  %v3898_v50 = vpop.f32.mrf.mxu0 }
 0x3d8   : > { %6059 = vmatmul.msk.f32.gmra.mxu1 %vm225_vm1, %v7646_v42 }
 0x3d9   : > { %5974 = vmatmul.msk.f32.gmra.mxu2 %vm225_vm1, %v8165_v62  ;;  %v8218_v49 = vadd.f32 %v3892_v18, %v3688_v31  ;;  %v8233_v18 = vld [vmem:[#allocation3 + $0x180] sm:$0xff] }
 0x3da   : > { %6008 = vmatmul.msk.f32.gmra.mxu3 %vm225_vm1, %v8210_v33  ;;  %6043 = vmatmul.msk.f32.gmra.mxu0 %vm225_vm1, %v8216_v45  ;;  %9127 = vst [vmem:[#allocation59_spill] sm:$0xff] %v8233_v18  ;;  %v8244_v33 = vld [vmem:[#allocation3 + $0x16a] sm:$0xff] }
 0x3db   : > { %9126 = vst [vmem:[#allocation58_spill] sm:$0xff] %v8218_v49 }
 0x3dc   : > { %v3371_v47 = vpop.f32.mrf.mxu2 }
 0x3dd   : > { %v3617_v23 = vpop.f32.mrf.mxu3  ;;  %v8222_v15 = vpop.f32.mrf.mxu1  ;;  %v3372_v42 = vadd.f32 %v3371_v47, %v7921_v1 }
 0x3df   : > { %v3689_v19 = vadd.f32 %v3617_v23, %v3372_v42  ;;  %v3901_v4 = vpop.f32.mrf.mxu0 }
 0x3e0   : > { %6060 = vmatmul.msk.f32.gmra.mxu1 %vm225_vm1, %v7659_v57 }
 0x3e1   : > { %5975 = vmatmul.msk.f32.gmra.mxu2 %vm225_vm1, %v8182_v34  ;;  %v8235_v31 = vadd.f32 %v3895_v63, %v3689_v19  ;;  %v8250_v63 = vld [vmem:[#allocation3 + $0x188] sm:$0xff] }
 0x3e2   : > { %6009 = vmatmul.msk.f32.gmra.mxu3 %vm225_vm1, %v8227_v38  ;;  %6044 = vmatmul.msk.f32.gmra.mxu0 %vm225_vm1, %v8233_v18  ;;  %v8261_v18 = vld [vmem:[#allocation3 + $0x172] sm:$0xff] }
 0x3e3   : > { %9128 = vst [vmem:[#allocation60_spill] sm:$0xff] %v8235_v31 }
 0x3e4   : > { %v3374_v1 = vpop.f32.mrf.mxu2 }
 0x3e5   : > { %v3620_v47 = vpop.f32.mrf.mxu3  ;;  %v8239_v23 = vpop.f32.mrf.mxu1  ;;  %v3375_v57 = vadd.f32 %v3374_v1, %v7953_v20 }
 0x3e7   : > { %v3690_v42 = vadd.f32 %v3620_v47, %v3375_v57  ;;  %v3904_v49 = vpop.f32.mrf.mxu0 }
 0x3e8   : > { %6061 = vmatmul.msk.f32.gmra.mxu1 %vm225_vm1, %v7672_v26 }
 0x3e9   : > { %5976 = vmatmul.msk.f32.gmra.mxu2 %vm225_vm1, %v8199_v28  ;;  %v8252_v19 = vadd.f32 %v3898_v50, %v3690_v42 }
 0x3ea   : > { %6010 = vmatmul.msk.f32.gmra.mxu3 %vm225_vm1, %v8244_v33  ;;  %6045 = vmatmul.msk.f32.gmra.mxu0 %vm225_vm1, %v8250_v63 }
 0x3ec   : > { %v3377_v20 = vpop.f32.mrf.mxu2 }
 0x3ed   : > { %v3623_v1 = vpop.f32.mrf.mxu3  ;;  %v8256_v47 = vpop.f32.mrf.mxu1  ;;  %v3378_v26 = vadd.f32 %v3377_v20, %v7975_v40 }
 0x3ef   : > { %v3691_v57 = vadd.f32 %v3623_v1, %v3378_v26  ;;  %v3907_v31 = vpop.f32.mrf.mxu0 }
 0x3f0   : > { %6062 = vmatmul.msk.f32.gmra.mxu1 %vm225_vm1, %v7685_v43 }
 0x3f1   : > { %5977 = vmatmul.msk.f32.gmra.mxu2 %vm225_vm1, %v8216_v45  ;;  %v8267_v50 = vadd.f32 %v3901_v4, %v3691_v57 }
 0x3f2   : > { %6011 = vmatmul.msk.f32.gmra.mxu3 %vm225_vm1, %v8261_v18  ;;  %6150 = vmatmul.msk.f32.vlgmr.msra.gmra.mxu0 %vm225_vm1, %v8047_v7 }
 0x3f4   : > { %v3380_v42 = vpop.f32.mrf.mxu2 }
 0x3f5   : > { %v3626_v40 = vpop.f32.mrf.mxu3  ;;  %v8271_v20 = vpop.f32.mrf.mxu1  ;;  %v3381_v43 = vadd.f32 %v3380_v42, %v7994_v56 }
 0x3f7   : > { %v3692_v1 = vadd.f32 %v3626_v40, %v3381_v43  ;;  %v3910_v26 = vpop.f32.mrf.mxu0 }
 0x3f8   : > { %6063 = vmatmul.msk.f32.gmra.mxu1 %vm225_vm1, %v7701_v3 }
 0x3f9   : > { %6082 = vmatmul.msk.f32.vlgmr.msra.gmra.mxu2 %vm225_vm1, %v7706_v16  ;;  %v8280_v4 = vadd.f32 %v3904_v49, %v3692_v1 }
 0x3fa   : > { %6116 = vmatmul.msk.f32.vlgmr.msra.gmra.mxu3 %vm225_vm1, %v7692_v12  ;;  %6151 = vmatmul.msk.f32.gmra.mxu0 %vm225_vm1, %v8066_v36 }
 0x3fc   : > { %v3383_v7 = vpop.f32.mrf.mxu2 }
 0x3fd   : > { %v3629_v57 = vpop.f32.mrf.mxu3  ;;  %v3384_v56 = vadd.f32 %v3383_v7, %v8011_v13  ;;  %v8285_v42 = vpop.f32.mrf.mxu1 }
 0x3ff   : > { %v3693_v40 = vadd.f32 %v3629_v57, %v3384_v56  ;;  %v3913_v3 = vpop.f32.mrf.mxu0 }
 0x400   : > { %6064 = vmatmul.msk.f32.gmra.mxu1 %vm225_vm1, %v7720_v54 }
 0x401   : > { %6083 = vmatmul.msk.f32.gmra.mxu2 %vm225_vm1, %v7725_v60  ;;  %v8293_v12 = vadd.f32 %v3907_v31, %v3693_v40 }
 0x402   : > { %6117 = vmatmul.msk.f32.gmra.mxu3 %vm225_vm1, %v7711_v22  ;;  %6152 = vmatmul.msk.f32.gmra.mxu0 %vm225_vm1, %v8085_v32 }
 0x404   : > { %v3386_v16 = vpop.f32.mrf.mxu2 }
 0x405   : > { %v3632_v13 = vpop.f32.mrf.mxu3  ;;  %v3387_v36 = vadd.f32 %v3386_v16, %v8028_v27  ;;  %v8298_v49 = vpop.f32.mrf.mxu1 }
 0x407   : > { %v3694_v43 = vadd.f32 %v3632_v13, %v3387_v36  ;;  %v3916_v54 = vpop.f32.mrf.mxu0 }
 0x408   : > { %6065 = vmatmul.msk.f32.gmra.mxu1 %vm225_vm1, %v7739_v11 }
 0x409   : > { %6084 = vmatmul.msk.f32.gmra.mxu2 %vm225_vm1, %v7744_v9  ;;  %v8306_v22 = vadd.f32 %v3910_v26, %v3694_v43 }
 0x40a   : > { %6118 = vmatmul.msk.f32.gmra.mxu3 %vm225_vm1, %v7730_v55  ;;  %6153 = vmatmul.msk.f32.gmra.mxu0 %vm225_vm1, %v8104_v61 }
 0x40c   : > { %v3389_v60 = vpop.f32.mrf.mxu2 }
 0x40d   : > { %v3635_v27 = vpop.f32.mrf.mxu3  ;;  %v3390_v32 = vadd.f32 %v3389_v60, %v8044_v58  ;;  %v8311_v31 = vpop.f32.mrf.mxu1 }
 0x40f   : > { %v3695_v1 = vadd.f32 %v3635_v27, %v3390_v32  ;;  %v3919_v11 = vpop.f32.mrf.mxu0 }
 0x410   : > { %6066 = vmatmul.msk.f32.gmra.mxu1 %vm225_vm1, %v7759_v59 }
 0x411   : > { %6085 = vmatmul.msk.f32.gmra.mxu2 %vm225_vm1, %v7764_v21  ;;  %v8319_v55 = vadd.f32 %v3913_v3, %v3695_v1 }
 0x412   : > { %6119 = vmatmul.msk.f32.gmra.mxu3 %vm225_vm1, %v7750_v52  ;;  %6154 = vmatmul.msk.f32.gmra.mxu0 %vm225_vm1, %v8123_v14  ;;  %v4827_v52 = vld [vmem:[#allocation3 + $0x69] sm:$0xff] }
 0x414   : > { %v3392_v9 = vpop.f32.mrf.mxu2 }
 0x415   : > { %v3638_v58 = vpop.f32.mrf.mxu3  ;;  %v3393_v61 = vadd.f32 %v3392_v9, %v8063_v8  ;;  %v8324_v26 = vpop.f32.mrf.mxu1 }
 0x417   : > { %v3696_v7 = vadd.f32 %v3638_v58, %v3393_v61  ;;  %v3922_v59 = vpop.f32.mrf.mxu0 }
 0x418   : > { %6067 = vmatmul.msk.f32.gmra.mxu1 %vm225_vm1, %v7779_v35 }
 0x419   : > { %6086 = vmatmul.msk.f32.gmra.mxu2 %vm225_vm1, %v7784_v2  ;;  %v8332_v21 = vadd.f32 %v3916_v54, %v3696_v7  ;;  %v9129_v54 = vld [vmem:[#allocation46_spill] sm:$0xff] }
 0x41a   : > { %6120 = vmatmul.msk.f32.gmra.mxu3 %vm225_vm1, %v7770_v37  ;;  %6155 = vmatmul.msk.f32.gmra.mxu0 %vm225_vm1, %v4827_v52  ;;  %v4828_v37 = vld [vmem:[#allocation3 + $0x79] sm:$0xff] }
 0x41c   : > { %v3395_v14 = vpop.f32.mrf.mxu2 }
 0x41d   : > { %v3641_v8 = vpop.f32.mrf.mxu3  ;;  %v3396_v57 = vadd.f32 %v3395_v14, %v8082_v46  ;;  %v8336_v56 = vpop.f32.mrf.mxu1  ;;  %v9133_v14 = vld [vmem:[#allocation18_spill] sm:$0xff] }
 0x41f   : > { %v3697_v40 = vadd.f32 %v3641_v8, %v3396_v57  ;;  %v3925_v35 = vpop.f32.mrf.mxu0  ;;  %v9134_v57 = vld [vmem:[#allocation23_spill] sm:$0xff] }
 0x420   : > { %6068 = vmatmul.msk.f32.gmra.mxu1 %vm225_vm1, %v7799_v41 }
 0x421   : > { %6087 = vmatmul.msk.f32.gmra.mxu2 %vm225_vm1, %v7804_v0  ;;  %v8344_v2 = vadd.f32 %v3919_v11, %v3697_v40  ;;  %v4830_v11 = vld [vmem:[#allocation3 + $0x91] sm:$0xff] }
 0x422   : > { %6121 = vmatmul.msk.f32.gmra.mxu3 %vm225_vm1, %v7790_v51  ;;  %6156 = vmatmul.msk.f32.gmra.mxu0 %vm225_vm1, %v4828_v37  ;;  %v4829_v51 = vld [vmem:[#allocation3 + $0x81] sm:$0xff]  ;;  %v9135_v40 = vld [vmem:[#allocation21_spill] sm:$0xff] }
 0x424   : > { %v3398_v3 = vpop.f32.mrf.mxu2 }
 0x425   : > { %v3644_v46 = vpop.f32.mrf.mxu3  ;;  %v3399_v16 = vadd.f32 %v3398_v3, %v8101_v30  ;;  %v8348_v13 = vpop.f32.mrf.mxu1 }
 0x427   : > { %v3698_v36 = vadd.f32 %v3644_v46, %v3399_v16  ;;  %v3928_v41 = vpop.f32.mrf.mxu0 }
 0x428   : > { %6069 = vmatmul.msk.f32.gmra.mxu1 %vm225_vm1, %v7819_v17  ;;  %v9130_v17 = vld [vmem:[#allocation19_spill] sm:$0xff] }
 0x429   : > { %6088 = vmatmul.msk.f32.gmra.mxu2 %vm225_vm1, %v7824_v29  ;;  %v8356_v0 = vadd.f32 %v3922_v59, %v3698_v36  ;;  %v9131_v29 = vld [vmem:[#allocation16_spill] sm:$0xff] }
 0x42a   : > { %6122 = vmatmul.msk.f32.gmra.mxu3 %vm225_vm1, %v7810_v39  ;;  %6157 = vmatmul.msk.f32.gmra.mxu0 %vm225_vm1, %v4829_v51  ;;  %v9132_v39 = vld [vmem:[#allocation14_spill] sm:$0xff]  ;;  %v9136_v51 = vld [vmem:[#allocation25_spill] sm:$0xff] }
 0x42c   : > { %v3401_v43 = vpop.f32.mrf.mxu2 }
 0x42d   : > { %v3647_v30 = vpop.f32.mrf.mxu3  ;;  %v3402_v60 = vadd.f32 %v3401_v43, %v9129_v54  ;;  %v8360_v27 = vpop.f32.mrf.mxu1  ;;  %v9138_v54 = vld [vmem:[#allocation20_spill] sm:$0xff] }
 0x42f   : > { %v3699_v32 = vadd.f32 %v3647_v30, %v3402_v60  ;;  %v3931_v1 = vpop.f32.mrf.mxu0  ;;  %v9137_v30 = vld [vmem:[#allocation22_spill] sm:$0xff] }
 0x430   : > { %6070 = vmatmul.msk.f32.gmra.mxu1 %vm225_vm1, %v9130_v17 }
 0x431   : > { %6089 = vmatmul.msk.f32.gmra.mxu2 %vm225_vm1, %v9131_v29  ;;  %v8368_v9 = vadd.f32 %v3925_v35, %v3699_v32  ;;  %v4831_v35 = vld [vmem:[#allocation3 + $0x99] sm:$0xff] }
 0x432   : > { %6123 = vmatmul.msk.f32.gmra.mxu3 %vm225_vm1, %v9132_v39  ;;  %6158 = vmatmul.msk.f32.gmra.mxu0 %vm225_vm1, %v4830_v11  ;;  %v9139_v11 = vld [vmem:[#allocation24_spill] sm:$0xff] }
 0x434   : > { %v3404_v58 = vpop.f32.mrf.mxu2 }
 0x435   : > { %v3650_v61 = vpop.f32.mrf.mxu3  ;;  %v3405_v7 = vadd.f32 %v3404_v58, %v8139_v10  ;;  %v8372_v59 = vpop.f32.mrf.mxu1 }
 0x437   : > { %v3700_v52 = vadd.f32 %v3650_v61, %v3405_v7  ;;  %v3934_v8 = vpop.f32.mrf.mxu0  ;;  %v9140_v61 = vld [vmem:[#allocation29_spill] sm:$0xff]  ;;  %v9141_v7 = vld [vmem:[#allocation27_spill] sm:$0xff] }
 0x438   : > { %6071 = vmatmul.msk.f32.gmra.mxu1 %vm225_vm1, %v9133_v14 }
 0x439   : > { %6090 = vmatmul.msk.f32.gmra.mxu2 %vm225_vm1, %v9134_v57  ;;  %v8380_v37 = vadd.f32 %v3928_v41, %v3700_v52  ;;  %v4832_v41 = vld [vmem:[#allocation3 + $0xa9] sm:$0xff] }
 0x43a   : > { %6124 = vmatmul.msk.f32.gmra.mxu3 %vm225_vm1, %v9135_v40  ;;  %6159 = vmatmul.msk.f32.gmra.mxu0 %vm225_vm1, %v4831_v35 }
 0x43c   : > { %v3407_v3 = vpop.f32.mrf.mxu2 }
 0x43d   : > { %v3653_v10 = vpop.f32.mrf.mxu3  ;;  %v3408_v46 = vadd.f32 %v3407_v3, %v8155_v25  ;;  %v8384_v16 = vpop.f32.mrf.mxu1  ;;  %v9142_v3 = vld [vmem:[#allocation31_spill] sm:$0xff] }
 0x43f   : > { %v3701_v36 = vadd.f32 %v3653_v10, %v3408_v46  ;;  %v3937_v43 = vpop.f32.mrf.mxu0  ;;  %v9143_v46 = vld [vmem:[#allocation28_spill] sm:$0xff] }
 0x440   : > { %6072 = vmatmul.msk.f32.gmra.mxu1 %vm225_vm1, %v9136_v51 }
 0x441   : > { %6091 = vmatmul.msk.f32.gmra.mxu2 %vm225_vm1, %v9137_v30  ;;  %v8392_v60 = vadd.f32 %v3931_v1, %v3701_v36  ;;  %v4833_v1 = vld [vmem:[#allocation3 + $0xb1] sm:$0xff]  ;;  %v9144_v36 = vld [vmem:[#allocation26_spill] sm:$0xff] }
 0x442   : > { %6125 = vmatmul.msk.f32.gmra.mxu3 %vm225_vm1, %v9138_v54  ;;  %6160 = vmatmul.msk.f32.gmra.mxu0 %vm225_vm1, %v4832_v41 }
 0x444   : > { %v3410_v32 = vpop.f32.mrf.mxu2 }
 0x445   : > { %v3656_v25 = vpop.f32.mrf.mxu3  ;;  %v3411_v17 = vadd.f32 %v3410_v32, %v8171_v44  ;;  %v8396_v29 = vpop.f32.mrf.mxu1 }
 0x447   : > { %v3702_v39 = vadd.f32 %v3656_v25, %v3411_v17  ;;  %v3940_v58 = vpop.f32.mrf.mxu0  ;;  %v9145_v25 = vld [vmem:[#allocation30_spill] sm:$0xff] }
 0x448   : > { %6073 = vmatmul.msk.f32.gmra.mxu1 %vm225_vm1, %v9139_v11  ;;  %v9147_v11 = vld [vmem:[#allocation33_spill] sm:$0xff] }
 0x449   : > { %6092 = vmatmul.msk.f32.gmra.mxu2 %vm225_vm1, %v9140_v61  ;;  %v8404_v52 = vadd.f32 %v3934_v8, %v3702_v39  ;;  %v4834_v8 = vld [vmem:[#allocation3 + $0xc1] sm:$0xff] }
 0x44a   : > { %6126 = vmatmul.msk.f32.gmra.mxu3 %vm225_vm1, %v9141_v7  ;;  %6161 = vmatmul.msk.f32.gmra.mxu0 %vm225_vm1, %v4833_v1  ;;  %v9146_v39 = vld [vmem:[#allocation35_spill] sm:$0xff] }
 0x44c   : > { %v3413_v14 = vpop.f32.mrf.mxu2 }
 0x44d   : > { %v3659_v44 = vpop.f32.mrf.mxu3  ;;  %v3414_v57 = vadd.f32 %v3413_v14, %v8188_v24  ;;  %v8408_v40 = vpop.f32.mrf.mxu1 }
 0x44f   : > { %v3703_v35 = vadd.f32 %v3659_v44, %v3414_v57  ;;  %v3943_v10 = vpop.f32.mrf.mxu0  ;;  %v9149_v57 = vld [vmem:[#allocation37_spill] sm:$0xff] }
 0x450   : > { %6074 = vmatmul.msk.f32.gmra.mxu1 %vm225_vm1, %v9142_v3  ;;  %v9150_v3 = vld [vmem:[#allocation34_spill] sm:$0xff] }
 0x451   : > { %6093 = vmatmul.msk.f32.gmra.mxu2 %vm225_vm1, %v9143_v46  ;;  %v8416_v51 = vadd.f32 %v3937_v43, %v3703_v35  ;;  %v4835_v43 = vld [vmem:[#allocation3 + $0xc9] sm:$0xff] }
 0x452   : > { %6127 = vmatmul.msk.f32.gmra.mxu3 %vm225_vm1, %v9144_v36  ;;  %6162 = vmatmul.msk.f32.gmra.mxu0 %vm225_vm1, %v4834_v8  ;;  %v9151_v46 = vld [vmem:[#allocation32_spill] sm:$0xff] }
 0x454   : > { %v3416_v30 = vpop.f32.mrf.mxu2 }
 0x455   : > { %v3662_v24 = vpop.f32.mrf.mxu3  ;;  %v3417_v54 = vadd.f32 %v3416_v30, %v8205_v5  ;;  %v8420_v41 = vpop.f32.mrf.mxu1 }
 0x457   : > { %v3704_v32 = vadd.f32 %v3662_v24, %v3417_v54  ;;  %v3946_v17 = vpop.f32.mrf.mxu0 }
 0x458   : > { %6075 = vmatmul.msk.f32.gmra.mxu1 %vm225_vm1, %v9145_v25 }
 0x459   : > { %6094 = vmatmul.msk.f32.gmra.mxu2 %vm225_vm1, %v9146_v39  ;;  %v8428_v61 = vadd.f32 %v3940_v58, %v3704_v32  ;;  %v4836_v58 = vld [vmem:[#allocation3 + $0xd9] sm:$0xff]  ;;  %v9153_v32 = vld [vmem:[#allocation36_spill] sm:$0xff] }
 0x45a   : > { %6128 = vmatmul.msk.f32.gmra.mxu3 %vm225_vm1, %v9147_v11  ;;  %6163 = vmatmul.msk.f32.gmra.mxu0 %vm225_vm1, %v4835_v43  ;;  %v9154_v39 = vld [vmem:[#allocation41_spill] sm:$0xff]  ;;  %v9155_v11 = vld [vmem:[#allocation39_spill] sm:$0xff] }
 0x45b   : > { %9148 = vst [vmem:[#allocation46_spill] sm:$0xff] %v8428_v61 }
 0x45c   : > { %v3419_v7 = vpop.f32.mrf.mxu2 }
 0x45d   : > { %v3665_v5 = vpop.f32.mrf.mxu3  ;;  %v3420_v1 = vadd.f32 %v3419_v7, %v8222_v15  ;;  %v8432_v14 = vpop.f32.mrf.mxu1 }
 0x45f   : > { %v3705_v44 = vadd.f32 %v3665_v5, %v3420_v1  ;;  %v3949_v35 = vpop.f32.mrf.mxu0 }
 0x460   : > { %6076 = vmatmul.msk.f32.gmra.mxu1 %vm225_vm1, %v9149_v57 }
 0x461   : > { %6095 = vmatmul.msk.f32.gmra.mxu2 %vm225_vm1, %v9150_v3  ;;  %v8440_v36 = vadd.f32 %v3943_v10, %v3705_v44  ;;  %v4837_v10 = vld [vmem:[#allocation3 + $0xe1] sm:$0xff] }
 0x462   : > { %6129 = vmatmul.msk.f32.gmra.mxu3 %vm225_vm1, %v9151_v46  ;;  %6164 = vmatmul.msk.f32.gmra.mxu0 %vm225_vm1, %v4836_v58  ;;  %v8458_v44 = vld [vmem:[#allocation3 + $0x181] sm:$0xff]  ;;  %v9157_v46 = vld [vmem:[#allocation40_spill] sm:$0xff] }
 0x463   : > { %9152 = vst [vmem:[#allocation19_spill] sm:$0xff] %v8440_v36  ;;  %v4838_v58 = vld [vmem:[#allocation3 + $0xf1] sm:$0xff] }
 0x464   : > { %v3422_v8 = vpop.f32.mrf.mxu2 }
 0x465   : > { %v3668_v15 = vpop.f32.mrf.mxu3  ;;  %v3423_v30 = vadd.f32 %v3422_v8, %v8239_v23  ;;  %v8444_v24 = vpop.f32.mrf.mxu1 }
 0x467   : > { %v3706_v54 = vadd.f32 %v3668_v15, %v3423_v30  ;;  %v3952_v25 = vpop.f32.mrf.mxu0 }
 0x468   : > { %6077 = vmatmul.msk.f32.gmra.mxu1 %vm225_vm1, %v9153_v32  ;;  %v8472_v32 = vld [vmem:[#allocation3 + $0x189] sm:$0xff] }
 0x469   : > { %6096 = vmatmul.msk.f32.gmra.mxu2 %vm225_vm1, %v9154_v39  ;;  %v8452_v43 = vadd.f32 %v3946_v17, %v3706_v54  ;;  %v9158_v17 = vld [vmem:[#allocation38_spill] sm:$0xff] }
 0x46a   : > { %6130 = vmatmul.msk.f32.gmra.mxu3 %vm225_vm1, %v9155_v11  ;;  %6165 = vmatmul.msk.f32.gmra.mxu0 %vm225_vm1, %v4837_v10  ;;  %v9160_v11 = vld [vmem:[#allocation4_spill] sm:$0xff]  ;;  %v9161_v10 = vld [vmem:[#allocation43_spill] sm:$0xff] }
 0x46b   : > { %9156 = vst [vmem:[#allocation16_spill] sm:$0xff] %v8452_v43 }
 0x46c   : > { %v3425_v7 = vpop.f32.mrf.mxu2 }
 0x46d   : > { %v3671_v23 = vpop.f32.mrf.mxu3  ;;  %v3426_v5 = vadd.f32 %v3425_v7, %v8256_v47  ;;  %v8456_v1 = vpop.f32.mrf.mxu1 }
 0x46f   : > { %v3707_v57 = vadd.f32 %v3671_v23, %v3426_v5  ;;  %v4972_v3 = vpop.f32.mrf.mxu0 }
 0x470   : > { %6078 = vmatmul.msk.f32.gmra.mxu1 %vm225_vm1, %v8458_v44 }
 0x471   : > { %6097 = vmatmul.msk.f32.gmra.mxu2 %vm225_vm1, %v9157_v46  ;;  %v8466_v8 = vadd.f32 %v3949_v35, %v3707_v57  ;;  %v4839_v35 = vld [vmem:[#allocation3 + $0xf9] sm:$0xff] }
 0x472   : > { %6131 = vmatmul.msk.f32.gmra.mxu3 %vm225_vm1, %v9158_v17  ;;  %6166 = vmatmul.msk.f32.gmra.mxu0 %vm225_vm1, %v4838_v58 }
 0x473   : > { %9159 = vst [vmem:[#allocation14_spill] sm:$0xff] %v8466_v8  ;;  %v9173_v8 = vld [vmem:[#allocation17_spill] sm:$0xff] }
 0x474   : > { %v3428_v47 = vpop.f32.mrf.mxu2 }
 0x475   : > { %v3674_v15 = vpop.f32.mrf.mxu3  ;;  %v3429_v30 = vadd.f32 %v3428_v47, %v8271_v20  ;;  %v8470_v54 = vpop.f32.mrf.mxu1  ;;  %v9163_v20 = vld [vmem:[#allocation44_spill] sm:$0xff] }
 0x476   : > { %v4233_v23 = vadd.f32 %v8285_v42, %v9163_v20  ;;  %v5100_v47 = vld [vmem:[#allocation3 + $0x32] sm:$0xff] }
 0x477   : > { %v3708_v39 = vadd.f32 %v3674_v15, %v3429_v30  ;;  %v4975_v5 = vpop.f32.mrf.mxu0  ;;  %v9164_v30 = vld [vmem:[#allocation6_spill] sm:$0xff]  ;;  %v9166_v42 = vld [vmem:[#allocation5_spill] sm:$0xff] }
 0x478   : > { %6079 = vmatmul.msk.f32.gmra.mxu1 %vm225_vm1, %v8472_v32 }
 0x479   : > { %6098 = vmatmul.msk.f32.gmra.mxu2 %vm225_vm1, %v9160_v11  ;;  %v8480_v7 = vadd.f32 %v3952_v25, %v3708_v39  ;;  %v9165_v25 = vld [vmem:[#allocation13_spill] sm:$0xff]  ;;  %v4840_v39 = vld [vmem:[#allocation3 + $0x109] sm:$0xff] }
 0x47a   : > { %6132 = vmatmul.msk.f32.gmra.mxu3 %vm225_vm1, %v9161_v10  ;;  %6167 = vmatmul.msk.f32.gmra.mxu0 %vm225_vm1, %v4839_v35  ;;  %v4234_v10 = vadd.f32 %v8298_v49, %v9166_v42  ;;  %v9169_v49 = vld [vmem:[#allocation8_spill] sm:$0xff] }
 0x47b   : > { %9162 = vst [vmem:[#allocation18_spill] sm:$0xff] %v8480_v7 }
 0x47c   : > { %v4415_v57 = vpop.f32.mrf.mxu2 }
 0x47d   : > { %v4694_v46 = vpop.f32.mrf.mxu3  ;;  %v8485_v17 = vpop.f32.mrf.mxu1  ;;  %v4511_v58 = vadd.f32 %v4415_v57, %v4233_v23 }
 0x47f   : > { %v4790_v15 = vadd.f32 %v4694_v46, %v4511_v58  ;;  %v4978_v23 = vpop.f32.mrf.mxu0  ;;  %v5101_v58 = vld [vmem:[#allocation3 + $0x3a] sm:$0xff] }
 0x480   : > { %6184 = vmatmul.msk.f32.vlgmr.msra.gmra.mxu1 %vm225_vm1, %v5100_v47 }
 0x481   : > { %6099 = vmatmul.msk.f32.gmra.mxu2 %vm225_vm1, %v9164_v30  ;;  %v8492_v11 = vadd.f32 %v4972_v3, %v4790_v15  ;;  %v9167_v30 = vld [vmem:[#allocation9_spill] sm:$0xff]  ;;  %v9168_v3 = vld [vmem:[#allocation7_spill] sm:$0xff] }
 0x482   : > { %6133 = vmatmul.msk.f32.gmra.mxu3 %vm225_vm1, %v9165_v25  ;;  %6168 = vmatmul.msk.f32.gmra.mxu0 %vm225_vm1, %v4840_v39  ;;  %v4841_v15 = vld [vmem:[#allocation3 + $0x111] sm:$0xff]  ;;  %v4235_v39 = vadd.f32 %v8311_v31, %v9169_v49  ;;  %v9172_v31 = vld [vmem:[#allocation11_spill] sm:$0xff] }
 0x484   : > { %v4418_v35 = vpop.f32.mrf.mxu2 }
 0x485   : > { %v4697_v20 = vpop.f32.mrf.mxu3  ;;  %v8497_v57 = vpop.f32.mrf.mxu1  ;;  %v4512_v46 = vadd.f32 %v4418_v35, %v4234_v10 }
 0x487   : > { %v4791_v47 = vadd.f32 %v4697_v20, %v4512_v46  ;;  %v5102_v46 = vld [vmem:[#allocation3 + $0x4a] sm:$0xff] }
 0x488   : > { %6185 = vmatmul.msk.f32.gmra.mxu1 %vm225_vm1, %v5101_v58  ;;  %v4981_v58 = vpop.f32.mrf.mxu0 }
 0x489   : > { %6100 = vmatmul.msk.f32.gmra.mxu2 %vm225_vm1, %v9167_v30  ;;  %v8504_v25 = vadd.f32 %v4975_v5, %v4791_v47  ;;  %v9170_v30 = vld [vmem:[#allocation12_spill] sm:$0xff]  ;;  %v9171_v5 = vld [vmem:[#allocation10_spill] sm:$0xff] }
 0x48a   : > { %6134 = vmatmul.msk.f32.gmra.mxu3 %vm225_vm1, %v9168_v3  ;;  %6169 = vmatmul.msk.f32.gmra.mxu0 %vm225_vm1, %v4841_v15  ;;  %v4842_v47 = vld [vmem:[#allocation3 + $0x121] sm:$0xff]  ;;  %v4236_v15 = vadd.f32 %v8324_v26, %v9172_v31 }
 0x48b   : > { %v9175_v26 = vld [vmem:[#allocation42_spill] sm:$0xff] }
 0x48c   : > { %v4421_v42 = vpop.f32.mrf.mxu2 }
 0x48d   : > { %v4700_v10 = vpop.f32.mrf.mxu3  ;;  %v8509_v35 = vpop.f32.mrf.mxu1  ;;  %v4513_v20 = vadd.f32 %v4421_v42, %v4235_v39 }
 0x48f   : > { %v4792_v7 = vadd.f32 %v4700_v10, %v4513_v20  ;;  %v5103_v20 = vld [vmem:[#allocation3 + $0x52] sm:$0xff] }
 0x490   : > { %6186 = vmatmul.msk.f32.gmra.mxu1 %vm225_vm1, %v5102_v46 }
 0x491   : > { %6101 = vmatmul.msk.f32.gmra.mxu2 %vm225_vm1, %v9170_v30  ;;  %v8516_v3 = vadd.f32 %v4978_v23, %v4792_v7  ;;  %v4984_v30 = vpop.f32.mrf.mxu0  ;;  %v9174_v7 = vld [vmem:[#allocation15_spill] sm:$0xff] }
 0x492   : > { %6135 = vmatmul.msk.f32.gmra.mxu3 %vm225_vm1, %v9171_v5  ;;  %6170 = vmatmul.msk.f32.gmra.mxu0 %vm225_vm1, %v4842_v47  ;;  %v4843_v23 = vld [vmem:[#allocation3 + $0x129] sm:$0xff]  ;;  %v4237_v47 = vadd.f32 %v8336_v56, %v9175_v26  ;;  %v9177_v56 = vld [vmem:[#allocation45_spill] sm:$0xff] }
 0x494   : > { %v4424_v49 = vpop.f32.mrf.mxu2 }
 0x495   : > { %v4703_v39 = vpop.f32.mrf.mxu3  ;;  %v8521_v42 = vpop.f32.mrf.mxu1  ;;  %v4514_v10 = vadd.f32 %v4424_v49, %v4236_v15 }
 0x497   : > { %v4793_v46 = vadd.f32 %v4703_v39, %v4514_v10  ;;  %v5104_v10 = vld [vmem:[#allocation3 + $0x62] sm:$0xff] }
 0x498   : > { %6187 = vmatmul.msk.f32.gmra.mxu1 %vm225_vm1, %v5103_v20 }
 0x499   : > { %6102 = vmatmul.msk.f32.gmra.mxu2 %vm225_vm1, %v9173_v8  ;;  %v8528_v5 = vadd.f32 %v4981_v58, %v4793_v46  ;;  %v9176_v8 = vld [vmem:[#allocation47_spill] sm:$0xff]  ;;  %v4844_v58 = vld [vmem:[#allocation3 + $0x139] sm:$0xff] }
 0x49a   : > { %6136 = vmatmul.msk.f32.gmra.mxu3 %vm225_vm1, %v9174_v7  ;;  %6171 = vmatmul.msk.f32.gmra.mxu0 %vm225_vm1, %v4843_v23  ;;  %v4238_v7 = vadd.f32 %v8348_v13, %v9177_v56  ;;  %v4987_v23 = vpop.f32.mrf.mxu0  ;;  %v9179_v13 = vld [vmem:[#allocation48_spill] sm:$0xff] }
 0x49c   : > { %v4427_v31 = vpop.f32.mrf.mxu2 }
 0x49d   : > { %v4706_v15 = vpop.f32.mrf.mxu3  ;;  %v8533_v49 = vpop.f32.mrf.mxu1  ;;  %v4515_v39 = vadd.f32 %v4427_v31, %v4237_v47 }
 0x49f   : > { %v4794_v20 = vadd.f32 %v4706_v15, %v4515_v39  ;;  %v5105_v39 = vld [vmem:[#allocation3 + $0x6a] sm:$0xff] }
 0x4a0   : > { %6188 = vmatmul.msk.f32.gmra.mxu1 %vm225_vm1, %v5104_v10 }
 0x4a1   : > { %6103 = vmatmul.msk.f32.gmra.mxu2 %vm225_vm1, %v9176_v8  ;;  %v8540_v46 = vadd.f32 %v4984_v30, %v4794_v20  ;;  %v9178_v8 = vld [vmem:[#allocation49_spill] sm:$0xff]  ;;  %v4239_v20 = vadd.f32 %v8360_v27, %v9179_v13  ;;  %v9181_v27 = vld [vmem:[#allocation50_spill] sm:$0xff] }
 0x4a2   : > { %6137 = vmatmul.msk.f32.gmra.mxu3 %vm225_vm1, %v8114_v48  ;;  %6172 = vmatmul.msk.f32.gmra.mxu0 %vm225_vm1, %v4844_v58  ;;  %v4845_v48 = vld [vmem:[#allocation3 + $0x141] sm:$0xff] }
 0x4a4   : > { %v4430_v26 = vpop.f32.mrf.mxu2 }
 0x4a5   : > { %v4709_v47 = vpop.f32.mrf.mxu3  ;;  %v8545_v31 = vpop.f32.mrf.mxu1  ;;  %v4516_v15 = vadd.f32 %v4430_v26, %v4238_v7 }
 0x4a7   : > { %v4795_v10 = vadd.f32 %v4709_v47, %v4516_v15  ;;  %v4990_v47 = vpop.f32.mrf.mxu0  ;;  %v5106_v15 = vld [vmem:[#allocation3 + $0x7a] sm:$0xff] }
 0x4a8   : > { %6189 = vmatmul.msk.f32.gmra.mxu1 %vm225_vm1, %v5105_v39 }
 0x4a9   : > { %6104 = vmatmul.msk.f32.gmra.mxu2 %vm225_vm1, %v9178_v8  ;;  %v8552_v30 = vadd.f32 %v4987_v23, %v4795_v10  ;;  %v9180_v8 = vld [vmem:[#allocation51_spill] sm:$0xff]  ;;  %v4240_v10 = vadd.f32 %v8372_v59, %v9181_v27 }
 0x4aa   : > { %6138 = vmatmul.msk.f32.gmra.mxu3 %vm225_vm1, %v8133_v6  ;;  %6173 = vmatmul.msk.f32.gmra.mxu0 %vm225_vm1, %v4845_v48  ;;  %v4846_v6 = vld [vmem:[#allocation3 + $0x151] sm:$0xff]  ;;  %v4848_v27 = vld [vmem:[#allocation3 + $0x169] sm:$0xff] }
 0x4ac   : > { %v4433_v58 = vpop.f32.mrf.mxu2 }
 0x4ad   : > { %v4712_v56 = vpop.f32.mrf.mxu3  ;;  %v8557_v7 = vpop.f32.mrf.mxu1  ;;  %v4517_v26 = vadd.f32 %v4433_v58, %v4239_v20 }
 0x4af   : > { %v4796_v39 = vadd.f32 %v4712_v56, %v4517_v26  ;;  %v5107_v56 = vld [vmem:[#allocation3 + $0x82] sm:$0xff] }
 0x4b0   : > { %6190 = vmatmul.msk.f32.gmra.mxu1 %vm225_vm1, %v5106_v15  ;;  %v4993_v15 = vpop.f32.mrf.mxu0 }
 0x4b1   : > { %6105 = vmatmul.msk.f32.gmra.mxu2 %vm225_vm1, %v9180_v8  ;;  %v8564_v23 = vadd.f32 %v4990_v47, %v4796_v39  ;;  %v9182_v8 = vld [vmem:[#allocation53_spill] sm:$0xff] }
 0x4b2   : > { %6139 = vmatmul.msk.f32.gmra.mxu3 %vm225_vm1, %v8149_v53  ;;  %6174 = vmatmul.msk.f32.gmra.mxu0 %vm225_vm1, %v4846_v6  ;;  %v4847_v53 = vld [vmem:[#allocation3 + $0x159] sm:$0xff]  ;;  %v9183_v6 = vld [vmem:[#allocation55_spill] sm:$0xff] }
 0x4b3   : > { %v5108_v39 = vld [vmem:[#allocation3 + $0x92] sm:$0xff] }
 0x4b4   : > { %v4436_v48 = vpop.f32.mrf.mxu2 }
 0x4b5   : > { %v8569_v13 = vpop.f32.mrf.mxu1  ;;  %v4518_v20 = vadd.f32 %v4436_v48, %v4240_v10  ;;  %v4715_v58 = vpop.f32.mrf.mxu3  ;;  %v5109_v10 = vld [vmem:[#allocation3 + $0x9a] sm:$0xff] }
 0x4b6   : > { %v9184_v48 = vld [vmem:[#allocation57_spill] sm:$0xff] }
 0x4b7   : > { %v4797_v26 = vadd.f32 %v4715_v58, %v4518_v20  ;;  %v4849_v20 = vld [vmem:[#allocation3 + $0x171] sm:$0xff] }
 0x4b8   : > { %6191 = vmatmul.msk.f32.gmra.mxu1 %vm225_vm1, %v5107_v56 }
 0x4b9   : > { %6106 = vmatmul.msk.f32.gmra.mxu2 %vm225_vm1, %v9182_v8  ;;  %v8576_v47 = vadd.f32 %v4993_v15, %v4797_v26  ;;  %v9187_v26 = vld [vmem:[#allocation59_spill] sm:$0xff]  ;;  %v4574_v8 = vld [vmem:[#allocation3 + $0x198] sm:$0xff] }
 0x4ba   : > { %6140 = vmatmul.msk.f32.gmra.mxu3 %vm225_vm1, %v8165_v62  ;;  %6175 = vmatmul.msk.f32.gmra.mxu0 %vm225_vm1, %v4847_v53  ;;  %v5113_v15 = vld [vmem:[#allocation3 + $0xca] sm:$0xff]  ;;  %v8624_v53 = vld [vmem:[#allocation3 + $0x182] sm:$0xff] }
 0x4bd   : > { %v8579_v59 = vpop.f32.mrf.mxu1 }
 0x4c0   : > { %6192 = vmatmul.msk.f32.gmra.mxu1 %vm225_vm1, %v5108_v39  ;;  %v4575_v39 = vld [vmem:[#allocation3 + $0x1a0] sm:$0xff] }
 0x4c1   : > { %6107 = vmatmul.msk.f32.gmra.mxu2 %vm225_vm1, %v9183_v6  ;;  %v8633_v6 = vld [vmem:[#allocation3 + $0x18a] sm:$0xff] }
 0x4c2   : > { %6141 = vmatmul.msk.f32.gmra.mxu3 %vm225_vm1, %v8182_v34  ;;  %6176 = vmatmul.msk.f32.gmra.mxu0 %vm225_vm1, %v4848_v27  ;;  %v5110_v34 = vld [vmem:[#allocation3 + $0xaa] sm:$0xff] }
 0x4c5   : > { %v8587_v62 = vpop.f32.mrf.mxu1 }
 0x4c8   : > { %6193 = vmatmul.msk.f32.gmra.mxu1 %vm225_vm1, %v5109_v10  ;;  %v5115_v10 = vld [vmem:[#allocation3 + $0xe2] sm:$0xff] }
 0x4c9   : > { %6108 = vmatmul.msk.f32.gmra.mxu2 %vm225_vm1, %v9184_v48  ;;  %v8644_v48 = vld [vmem:[%s8896_s4] ss:$0 sm:$0xff] }
 0x4ca   : > { %6142 = vmatmul.msk.f32.gmra.mxu3 %vm225_vm1, %v8199_v28  ;;  %6177 = vmatmul.msk.f32.gmra.mxu0 %vm225_vm1, %v4849_v20  ;;  %v5111_v28 = vld [vmem:[#allocation3 + $0xb2] sm:$0xff] }
 0x4cd   : > { %v8595_v58 = vpop.f32.mrf.mxu1 }
 0x4ce   : > { %9185 = vst [vmem:[#allocation23_spill] sm:$0xff] %v8595_v58 }
 0x4d0   : > { %6194 = vmatmul.msk.f32.gmra.mxu1 %vm225_vm1, %v5110_v34 }
 0x4d1   : > { %6109 = vmatmul.msk.f32.gmra.mxu2 %vm225_vm1, %v8227_v38 }
 0x4d2   : > { %6143 = vmatmul.msk.f32.gmra.mxu3 %vm225_vm1, %v8216_v45  ;;  %6178 = vmatmul.msk.f32.gmra.mxu0 %vm225_vm1, %v8458_v44  ;;  %v5112_v45 = vld [vmem:[#allocation3 + $0xc2] sm:$0xff]  ;;  %v4852_v44 = vld [vmem:[#allocation3 + $0x199] sm:$0xff] }
 0x4d5   : > { %v8604_v56 = vpop.f32.mrf.mxu1 }
 0x4d6   : > { %9186 = vst [vmem:[#allocation21_spill] sm:$0xff] %v8604_v56 }
 0x4d8   : > { %6195 = vmatmul.msk.f32.gmra.mxu1 %vm225_vm1, %v5111_v28  ;;  %v5116_v28 = vld [vmem:[#allocation3 + $0xf2] sm:$0xff] }
 0x4d9   : > { %6110 = vmatmul.msk.f32.gmra.mxu2 %vm225_vm1, %v8244_v33 }
 0x4da   : > { %6144 = vmatmul.msk.f32.gmra.mxu3 %vm225_vm1, %v9187_v26  ;;  %6179 = vmatmul.msk.f32.gmra.mxu0 %vm225_vm1, %v8472_v32  ;;  %v4853_v32 = vld [vmem:[#allocation3 + $0x1a1] sm:$0xff]  ;;  %v5378_v26 = vld [vmem:[#allocation2 + $0x19] sm:$0xff] }
 0x4dd   : > { %v8613_v38 = vpop.f32.mrf.mxu1 }
 0x4de   : > { %9188 = vst [vmem:[#allocation25_spill] sm:$0xff] %v8613_v38 }
 0x4e0   : > { %6196 = vmatmul.msk.f32.gmra.mxu1 %vm225_vm1, %v5112_v45 }
 0x4e1   : > { %6111 = vmatmul.msk.f32.gmra.mxu2 %vm225_vm1, %v8261_v18 }
 0x4e2   : > { %6145 = vmatmul.msk.f32.gmra.mxu3 %vm225_vm1, %v8250_v63  ;;  %6180 = vmatmul.msk.f32.gmra.mxu0 %vm225_vm1, %v4852_v44  ;;  %v5114_v63 = vld [vmem:[#allocation3 + $0xda] sm:$0xff] }
 0x4e5   : > { %v8621_v33 = vpop.f32.mrf.mxu1 }
 0x4e6   : > { %9189 = vst [vmem:[#allocation22_spill] sm:$0xff] %v8621_v33  ;;  %v5120_v33 = vld [vmem:[#allocation3 + $0x122] sm:$0xff] }
 0x4e8   : > { %6197 = vmatmul.msk.f32.gmra.mxu1 %vm225_vm1, %v5113_v15  ;;  %v8649_v15 = vpop.f32.mrf.mxu2 }
 0x4e9   : > { %6112 = vmatmul.msk.f32.gmra.mxu2 %vm225_vm1, %v8624_v53 }
 0x4ea   : > { %6146 = vmatmul.msk.f32.gmra.mxu3 %vm225_vm1, %v4574_v8  ;;  %6181 = vmatmul.msk.f32.gmra.mxu0 %vm225_vm1, %v4853_v32 }
 0x4ed   : > { %v8630_v18 = vpop.f32.mrf.mxu1 }
 0x4ee   : > { %9190 = vst [vmem:[#allocation20_spill] sm:$0xff] %v8630_v18  ;;  %v5119_v18 = vld [vmem:[#allocation3 + $0x112] sm:$0xff] }
 0x4f0   : > { %6198 = vmatmul.msk.f32.gmra.mxu1 %vm225_vm1, %v5114_v63  ;;  %v5117_v63 = vld [vmem:[#allocation3 + $0xfa] sm:$0xff] }
 0x4f1   : > { %6113 = vmatmul.msk.f32.gmra.mxu2 %vm225_vm1, %v8633_v6 }
 0x4f2   : > { %6147 = vmatmul.msk.f32.gmra.mxu3 %vm225_vm1, %v4575_v39  ;;  %v5379_v39 = vld [vmem:[#allocation2 + $0x21] sm:$0xff] }
 0x4f5   : > { %v8638_v27 = vpop.f32.mrf.mxu1 }
 0x4f6   : > { %9191 = vst [vmem:[#allocation24_spill] sm:$0xff] %v8638_v27 }
 0x4f8   : > { %6199 = vmatmul.msk.f32.gmra.mxu1 %vm225_vm1, %v5115_v10 }
 0x4fd   : > { %v5250_v20 = vpop.f32.mrf.mxu1 }
 0x4fe   : > { %v5346_v34 = vadd.f32 %v5250_v20, %v8492_v11  ;;  %v8663_v20 = vpop.f32.mrf.mxu3 }
 0x500   : > { %6200 = vmatmul.msk.f32.gmra.mxu1 %vm225_vm1, %v5116_v28  ;;  %v5414_v45 = vadd.f32 %v8644_v48, %v5346_v34  ;;  %v8665_v28 = vpop.f32.mrf.mxu0 }
 0x502   : > { %v5446_v44 = vadd.f32 %v5414_v45, %v5378_v26  ;;  %v8667_v45 = vpop.f32.mrf.mxu2 }
 0x504   : > { %v5478_v8 = vmax.f32 %v5446_v44, 0.0 }
 0x505   : > { %v5253_v32 = vpop.f32.mrf.mxu1 }
 0x506   : > { %5510 = vst.msk [vmem:[%s8656_s23] sm:$0xff] %vm225_vm1, %v5478_v8  ;;  %v5347_v11 = vadd.f32 %v5253_v32, %v8504_v25  ;;  %v5118_v8 = vld [vmem:[#allocation3 + $0x10a] sm:$0xff]  ;;  %v5380_v32 = vld [vmem:[#allocation2 + $0x31] sm:$0xff] }
 0x508   : > { %6201 = vmatmul.msk.f32.gmra.mxu1 %vm225_vm1, %v5117_v63  ;;  %v5415_v10 = vadd.f32 %v8644_v48, %v5347_v11 }
 0x50a   : > { %v5447_v34 = vadd.f32 %v5415_v10, %v5379_v39  ;;  %v8674_v39 = vpop.f32.mrf.mxu3 }
 0x50c   : > { %v5479_v26 = vmax.f32 %v5447_v34, 0.0  ;;  %v8676_v34 = vpop.f32.mrf.mxu0 }
 0x50d   : > { %v5256_v44 = vpop.f32.mrf.mxu1 }
 0x50e   : > { %5511 = vst.msk [vmem:[%s8656_s23 + $0x8] sm:$0xff] %vm225_vm1, %v5479_v26  ;;  %v5348_v25 = vadd.f32 %v5256_v44, %v8516_v3  ;;  %v8681_v3 = vpop.f32.mrf.mxu2  ;;  %v5381_v44 = vld [vmem:[#allocation2 + $0x39] sm:$0xff] }
 0x510   : > { %6202 = vmatmul.msk.f32.gmra.mxu1 %vm225_vm1, %v5118_v8  ;;  %v5416_v11 = vadd.f32 %v8644_v48, %v5348_v25 }
 0x512   : > { %v5448_v63 = vadd.f32 %v5416_v11, %v5380_v32  ;;  %v8685_v11 = vpop.f32.mrf.mxu3 }
 0x514   : > { %v5480_v10 = vmax.f32 %v5448_v63, 0.0 }
 0x515   : > { %v5259_v27 = vpop.f32.mrf.mxu1 }
 0x516   : > { %5512 = vst.msk [vmem:[%s8656_s23 + $0x10] sm:$0xff] %vm225_vm1, %v5480_v10  ;;  %v5349_v26 = vadd.f32 %v5259_v27, %v8528_v5  ;;  %v5382_v5 = vld [vmem:[#allocation2 + $0x49] sm:$0xff]  ;;  %v8691_v27 = vpop.f32.mrf.mxu0  ;;  %v8694_v43 = vpop.f32.mrf.mxu2 }
 0x518   : > { %6203 = vmatmul.msk.f32.gmra.mxu1 %vm225_vm1, %v5119_v18  ;;  %v5417_v25 = vadd.f32 %v8644_v48, %v5349_v26 }
 0x51a   : > { %v5449_v8 = vadd.f32 %v5417_v25, %v5381_v44 }
 0x51c   : > { %v5481_v32 = vmax.f32 %v5449_v8, 0.0 }
 0x51d   : > { %v5262_v63 = vpop.f32.mrf.mxu1 }
 0x51e   : > { %5513 = vst.msk [vmem:[%s8656_s23 + $0x18] sm:$0xff] %vm225_vm1, %v5481_v32  ;;  %v5350_v10 = vadd.f32 %v5262_v63, %v8540_v46  ;;  %v5121_v32 = vld [vmem:[#allocation3 + $0x12a] sm:$0xff]  ;;  %v8699_v46 = vpop.f32.mrf.mxu3  ;;  %v5383_v63 = vld [vmem:[#allocation2 + $0x51] sm:$0xff]  ;;  %v8703_v38 = vpop.f32.mrf.mxu0 }
 0x51f   : > { %v8705_v36 = vpop.f32.mrf.mxu2 }
 0x520   : > { %6204 = vmatmul.msk.f32.gmra.mxu1 %vm225_vm1, %v5120_v33  ;;  %v5418_v18 = vadd.f32 %v8644_v48, %v5350_v10 }
 0x522   : > { %v5450_v26 = vadd.f32 %v5418_v18, %v5382_v5 }
 0x524   : > { %v5482_v44 = vmax.f32 %v5450_v26, 0.0  ;;  %v5122_v26 = vld [vmem:[#allocation3 + $0x13a] sm:$0xff] }
 0x525   : > { %v5265_v25 = vpop.f32.mrf.mxu1 }
 0x526   : > { %5514 = vst.msk [vmem:[%s8656_s23 + $0x20] sm:$0xff] %vm225_vm1, %v5482_v44  ;;  %v5351_v8 = vadd.f32 %v5265_v25, %v8552_v30  ;;  %v5384_v44 = vld [vmem:[#allocation2 + $0x61] sm:$0xff]  ;;  %v8717_v56 = vpop.f32.mrf.mxu0 }
 0x528   : > { %6205 = vmatmul.msk.f32.gmra.mxu1 %vm225_vm1, %v5121_v32  ;;  %v5419_v33 = vadd.f32 %v8644_v48, %v5351_v8  ;;  %v8712_v32 = vpop.f32.mrf.mxu3  ;;  %v9192_v8 = vld [vmem:[#allocation52_spill] sm:$0xff] }
 0x52a   : > { %v5451_v10 = vadd.f32 %v5419_v33, %v5383_v63  ;;  %v4241_v63 = vadd.f32 %v8384_v16, %v9192_v8 }
 0x52c   : > { %v5483_v5 = vmax.f32 %v5451_v10, 0.0  ;;  %v4519_v10 = vadd.f32 %v8649_v15, %v4241_v63  ;;  %v9193_v15 = vld [vmem:[#allocation54_spill] sm:$0xff] }
 0x52d   : > { %v5268_v18 = vpop.f32.mrf.mxu1 }
 0x52e   : > { %5515 = vst.msk [vmem:[%s8656_s23 + $0x28] sm:$0xff] %vm225_vm1, %v5483_v5  ;;  %v5352_v30 = vadd.f32 %v5268_v18, %v8564_v23  ;;  %v8719_v5 = vpop.f32.mrf.mxu2  ;;  %v4798_v16 = vadd.f32 %v8663_v20, %v4519_v10  ;;  %v5124_v10 = vld [vmem:[#allocation3 + $0x152] sm:$0xff] }
 0x530   : > { %6206 = vmatmul.msk.f32.gmra.mxu1 %vm225_vm1, %v5122_v26  ;;  %v5420_v25 = vadd.f32 %v8644_v48, %v5352_v30  ;;  %v5123_v30 = vld [vmem:[#allocation3 + $0x142] sm:$0xff]  ;;  %v5385_v26 = vld [vmem:[#allocation2 + $0x69] sm:$0xff]  ;;  %v8729_v63 = vpop.f32.mrf.mxu3 }
 0x532   : > { %v5452_v33 = vadd.f32 %v5420_v25, %v5384_v44  ;;  %v4242_v25 = vadd.f32 %v8396_v29, %v9193_v15 }
 0x534   : > { %v5484_v61 = vmax.f32 %v5452_v33, 0.0  ;;  %v4520_v33 = vadd.f32 %v8667_v45, %v4242_v25 }
 0x535   : > { %v5271_v23 = vpop.f32.mrf.mxu1 }
 0x536   : > { %5516 = vst.msk [vmem:[%s8656_s23 + $0x30] sm:$0xff] %vm225_vm1, %v5484_v61  ;;  %v5353_v18 = vadd.f32 %v5271_v23, %v8576_v47  ;;  %v5076_v61 = vadd.f32 %v8665_v28, %v4798_v16  ;;  %v8733_v23 = vpop.f32.mrf.mxu0  ;;  %v4799_v29 = vadd.f32 %v8674_v39, %v4520_v33  ;;  %v5387_v39 = vld [vmem:[#allocation2 + $0x81] sm:$0xff] }
 0x538   : > { %6207 = vmatmul.msk.f32.gmra.mxu1 %vm225_vm1, %v5123_v30  ;;  %v5421_v44 = vadd.f32 %v8644_v48, %v5353_v18  ;;  %v8737_v18 = vpop.f32.mrf.mxu2  ;;  %v5386_v30 = vld [vmem:[#allocation2 + $0x79] sm:$0xff]  ;;  %v8746_v25 = vpop.f32.mrf.mxu3 }
 0x53a   : > { %v5453_v8 = vadd.f32 %v5421_v44, %v5385_v26  ;;  %v9194_v26 = vld [vmem:[#allocation56_spill] sm:$0xff] }
 0x53b   : > { %v4243_v28 = vadd.f32 %v8408_v40, %v9194_v26 }
 0x53c   : > { %v5485_v58 = vmax.f32 %v5453_v8, 0.0 }
 0x53d   : > { %v5274_v47 = vpop.f32.mrf.mxu1  ;;  %v4521_v44 = vadd.f32 %v8681_v3, %v4243_v28 }
 0x53e   : > { %5517 = vst.msk [vmem:[%s8656_s23 + $0x38] sm:$0xff] %vm225_vm1, %v5485_v58  ;;  %v5354_v20 = vadd.f32 %v5274_v47, %v5076_v61  ;;  %v5077_v58 = vadd.f32 %v8676_v34, %v4799_v29  ;;  %v5125_v47 = vld [vmem:[#allocation3 + $0x15a] sm:$0xff]  ;;  %v8752_v40 = vpop.f32.mrf.mxu0 }
 0x53f   : > { %v4800_v33 = vadd.f32 %v8685_v11, %v4521_v44  ;;  %v5126_v11 = vld [vmem:[#allocation3 + $0x16a] sm:$0xff] }
 0x540   : > { %6208 = vmatmul.msk.f32.gmra.mxu1 %vm225_vm1, %v5124_v10  ;;  %v5422_v45 = vadd.f32 %v8644_v48, %v5354_v20  ;;  %v4460_v20 = vpop.f32.mrf.mxu2  ;;  %v9195_v10 = vld [vmem:[#allocation58_spill] sm:$0xff]  ;;  %v4739_v44 = vpop.f32.mrf.mxu3 }
 0x541   : > { %v4244_v34 = vadd.f32 %v8420_v41, %v9195_v10  ;;  %v5078_v26 = vadd.f32 %v8691_v27, %v4800_v33 }
 0x542   : > { %v5454_v16 = vadd.f32 %v5422_v45, %v5386_v30 }
 0x543   : > { %v4522_v29 = vadd.f32 %v8694_v43, %v4244_v34 }
 0x544   : > { %v5486_v15 = vmax.f32 %v5454_v16, 0.0 }
 0x545   : > { %v5277_v8 = vpop.f32.mrf.mxu1 }
 0x546   : > { %5518 = vst.msk [vmem:[%s8656_s23 + $0x40] sm:$0xff] %vm225_vm1, %v5486_v15  ;;  %v5355_v61 = vadd.f32 %v5277_v8, %v5077_v58  ;;  %v5388_v15 = vld [vmem:[#allocation2 + $0x91] sm:$0xff]  ;;  %v4801_v58 = vadd.f32 %v8699_v46, %v4522_v29  ;;  %v9196_v8 = vld [vmem:[#allocation60_spill] sm:$0xff] }
 0x547   : > { %v4245_v43 = vadd.f32 %v8432_v14, %v9196_v8  ;;  %v5127_v46 = vld [vmem:[#allocation3 + $0x172] sm:$0xff] }
 0x548   : > { %6209 = vmatmul.msk.f32.gmra.mxu1 %vm225_vm1, %v5125_v47  ;;  %v5423_v3 = vadd.f32 %v8644_v48, %v5355_v61  ;;  %v8766_v61 = vpop.f32.mrf.mxu0  ;;  %v4463_v47 = vpop.f32.mrf.mxu2 }
 0x54a   : > { %v5455_v30 = vadd.f32 %v5423_v3, %v5387_v39  ;;  %v4523_v39 = vadd.f32 %v8705_v36, %v4245_v43  ;;  %v5079_v3 = vadd.f32 %v8703_v38, %v4801_v58  ;;  %v4246_v36 = vadd.f32 %v8444_v24, %v8252_v19 }
 0x54b   : > { %v4247_v24 = vadd.f32 %v8456_v1, %v8267_v50 }
 0x54c   : > { %v5487_v45 = vmax.f32 %v5455_v30, 0.0  ;;  %v5389_v30 = vld [vmem:[#allocation2 + $0x99] sm:$0xff]  ;;  %v4802_v14 = vadd.f32 %v8712_v32, %v4523_v39  ;;  %v4524_v38 = vadd.f32 %v8719_v5, %v4246_v36  ;;  %v5390_v32 = vld [vmem:[#allocation2 + $0xa9] sm:$0xff] }
 0x54d   : > { %v5280_v28 = vpop.f32.mrf.mxu1 }
 0x54e   : > { %5519 = vst.msk [vmem:[%s8656_s23 + $0x48] sm:$0xff] %vm225_vm1, %v5487_v45  ;;  %v5356_v16 = vadd.f32 %v5280_v28, %v5078_v26  ;;  %v4742_v45 = vpop.f32.mrf.mxu3  ;;  %v4803_v8 = vadd.f32 %v8729_v63, %v4524_v38  ;;  %v5391_v63 = vld [vmem:[#allocation2 + $0xb1] sm:$0xff] }
 0x550   : > { %6210 = vmatmul.msk.f32.gmra.mxu1 %vm225_vm1, %v5126_v11  ;;  %v5424_v41 = vadd.f32 %v8644_v48, %v5356_v16  ;;  %v5020_v28 = vpop.f32.mrf.mxu0  ;;  %v5080_v11 = vadd.f32 %v8717_v56, %v4802_v14  ;;  %v4525_v56 = vadd.f32 %v8737_v18, %v4247_v24  ;;  %v5081_v39 = vadd.f32 %v8733_v23, %v4803_v8  ;;  %v5130_v14 = vld [vmem:[#allocation3 + $0x19a] sm:$0xff] }
 0x551   : > { %v4248_v18 = vadd.f32 %v8470_v54, %v8280_v4  ;;  %v4249_v54 = vadd.f32 %v8485_v17, %v8293_v12  ;;  %v4250_v12 = vadd.f32 %v8497_v57, %v8306_v22 }
 0x552   : > { %v5456_v27 = vadd.f32 %v5424_v41, %v5388_v15  ;;  %v4466_v15 = vpop.f32.mrf.mxu2  ;;  %v4804_v50 = vadd.f32 %v8746_v25, %v4525_v56 }
 0x553   : > { %v4526_v23 = vadd.f32 %v4460_v20, %v4248_v18  ;;  %v4251_v18 = vadd.f32 %v8509_v35, %v8319_v55 }
 0x554   : > { %v5488_v33 = vmax.f32 %v5456_v27, 0.0 }
 0x555   : > { %v5283_v10 = vpop.f32.mrf.mxu1  ;;  %v4805_v25 = vadd.f32 %v4739_v44, %v4526_v23  ;;  %v5393_v44 = vld [vmem:[#allocation2 + $0xc9] sm:$0xff] }
 0x556   : > { %5520 = vst.msk [vmem:[%s8656_s23 + $0x50] sm:$0xff] %vm225_vm1, %v5488_v33  ;;  %v5357_v34 = vadd.f32 %v5283_v10, %v5079_v3  ;;  %v4745_v43 = vpop.f32.mrf.mxu3 }
 0x558   : > { %6211 = vmatmul.msk.f32.gmra.mxu1 %vm225_vm1, %v5127_v46  ;;  %v5425_v29 = vadd.f32 %v8644_v48, %v5357_v34  ;;  %v5023_v3 = vpop.f32.mrf.mxu0 }
 0x55a   : > { %v5457_v26 = vadd.f32 %v5425_v29, %v5389_v30  ;;  %v4469_v10 = vpop.f32.mrf.mxu2  ;;  %v5082_v30 = vadd.f32 %v8752_v40, %v4804_v50  ;;  %v4527_v40 = vadd.f32 %v4463_v47, %v4249_v54 }
 0x55b   : > { %v4529_v57 = vadd.f32 %v4469_v10, %v4251_v18 }
 0x55c   : > { %v5489_v16 = vmax.f32 %v5457_v26, 0.0  ;;  %v4806_v24 = vadd.f32 %v4742_v45, %v4527_v40  ;;  %v5396_v40 = vld [vmem:[#allocation2 + $0xf1] sm:$0xff] }
 0x55d   : > { %v5286_v58 = vpop.f32.mrf.mxu1 }
 0x55e   : > { %5521 = vst.msk [vmem:[%s8656_s23 + $0x58] sm:$0xff] %vm225_vm1, %v5489_v16  ;;  %v5358_v41 = vadd.f32 %v5286_v58, %v5080_v11  ;;  %v4748_v29 = vpop.f32.mrf.mxu3  ;;  %v5083_v58 = vadd.f32 %v8766_v61, %v4805_v25  ;;  %v4528_v61 = vadd.f32 %v4466_v15, %v4250_v12 }
 0x560   : > { %6212 = vmatmul.msk.f32.gmra.mxu1 %vm225_vm1, %v8624_v53  ;;  %v5426_v19 = vadd.f32 %v8644_v48, %v5358_v41  ;;  %v5026_v38 = vpop.f32.mrf.mxu0  ;;  %v5131_v41 = vld [vmem:[#allocation3 + $0x1a2] sm:$0xff]  ;;  %v4807_v50 = vadd.f32 %v4745_v43, %v4528_v61 }
 0x562   : > { %v5458_v5 = vadd.f32 %v5426_v19, %v5390_v32  ;;  %v4472_v4 = vpop.f32.mrf.mxu2  ;;  %v5085_v15 = vadd.f32 %v5023_v3, %v4807_v50  ;;  %v4255_v50 = vadd.f32 %v8557_v7, %v8368_v9 }
 0x564   : > { %v5490_v27 = vmax.f32 %v5458_v5, 0.0 }
 0x565   : > { %v5289_v33 = vpop.f32.mrf.mxu1 }
 0x566   : > { %5522 = vst.msk [vmem:[%s8656_s23 + $0x60] sm:$0xff] %vm225_vm1, %v5490_v27  ;;  %v5359_v53 = vadd.f32 %v5289_v33, %v5081_v39  ;;  %v4751_v19 = vpop.f32.mrf.mxu3  ;;  %v5084_v39 = vadd.f32 %v5020_v28, %v4806_v24 }
 0x568   : > { %6213 = vmatmul.msk.f32.gmra.mxu1 %vm225_vm1, %v8633_v6  ;;  %v5427_v1 = vadd.f32 %v8644_v48, %v5359_v53  ;;  %v5392_v6 = vld [vmem:[#allocation2 + $0xc1] sm:$0xff]  ;;  %v5029_v17 = vpop.f32.mrf.mxu0 }
 0x56a   : > { %v5459_v34 = vadd.f32 %v5427_v1, %v5391_v63  ;;  %v4475_v56 = vpop.f32.mrf.mxu2  ;;  %v5394_v63 = vld [vmem:[#allocation2 + $0xd9] sm:$0xff] }
 0x56c   : > { %v5491_v46 = vmax.f32 %v5459_v34, 0.0 }
 0x56d   : > { %v5292_v36 = vpop.f32.mrf.mxu1 }
 0x56e   : > { %5523 = vst.msk [vmem:[%s8656_s23 + $0x68] sm:$0xff] %vm225_vm1, %v5491_v46  ;;  %v5360_v26 = vadd.f32 %v5292_v36, %v5082_v30  ;;  %v4754_v1 = vpop.f32.mrf.mxu3  ;;  %v4808_v36 = vadd.f32 %v4748_v29, %v4529_v57 }
 0x570   : > { %6214 = vmatmul.msk.f32.gmra.mxu1 %vm225_vm1, %v5130_v14  ;;  %v5428_v16 = vadd.f32 %v8644_v48, %v5360_v26  ;;  %v5032_v34 = vpop.f32.mrf.mxu0  ;;  %v5395_v14 = vld [vmem:[#allocation2 + $0xe1] sm:$0xff]  ;;  %v4252_v26 = vadd.f32 %v8521_v42, %v8332_v21  ;;  %v5086_v25 = vadd.f32 %v5026_v38, %v4808_v36 }
 0x572   : > { %v5460_v20 = vadd.f32 %v5428_v16, %v5392_v6  ;;  %v4478_v28 = vpop.f32.mrf.mxu2  ;;  %v4530_v35 = vadd.f32 %v4472_v4, %v4252_v26 }
 0x574   : > { %v5492_v11 = vmax.f32 %v5460_v20, 0.0 }
 0x575   : > { %v5295_v32 = vpop.f32.mrf.mxu1 }
 0x576   : > { %5524 = vst.msk [vmem:[%s8656_s23 + $0x70] sm:$0xff] %vm225_vm1, %v5492_v11  ;;  %v5361_v8 = vadd.f32 %v5295_v32, %v5083_v58  ;;  %v4757_v55 = vpop.f32.mrf.mxu3  ;;  %v4809_v11 = vadd.f32 %v4751_v19, %v4530_v35  ;;  %v4253_v58 = vadd.f32 %v8533_v49, %v8344_v2  ;;  %v5400_v35 = vld [vmem:[#allocation2 + $0x121] sm:$0xff] }
 0x578   : > { %6215 = vmatmul.msk.f32.gmra.mxu1 %vm225_vm1, %v5131_v41  ;;  %v5429_v5 = vadd.f32 %v8644_v48, %v5361_v8  ;;  %v5035_v16 = vpop.f32.mrf.mxu0  ;;  %v4531_v42 = vadd.f32 %v4475_v56, %v4253_v58  ;;  %v5087_v4 = vadd.f32 %v5029_v17, %v4809_v11 }
 0x57a   : > { %v5461_v47 = vadd.f32 %v5429_v5, %v5393_v44  ;;  %v4481_v20 = vpop.f32.mrf.mxu2  ;;  %v5397_v44 = vld [vmem:[#allocation2 + $0xf9] sm:$0xff]  ;;  %v4810_v24 = vadd.f32 %v4754_v1, %v4531_v42 }
 0x57c   : > { %v5493_v27 = vmax.f32 %v5461_v47, 0.0  ;;  %v4254_v47 = vadd.f32 %v8545_v31, %v8356_v0  ;;  %v5088_v61 = vadd.f32 %v5032_v34, %v4810_v24  ;;  %v4533_v31 = vadd.f32 %v4481_v20, %v4255_v50 }
 0x57d   : > { %v5298_v33 = vpop.f32.mrf.mxu1 }
 0x57e   : > { %5525 = vst.msk [vmem:[%s8656_s23 + $0x78] sm:$0xff] %vm225_vm1, %v5493_v27  ;;  %v5362_v53 = vadd.f32 %v5298_v33, %v5084_v39  ;;  %v4760_v38 = vpop.f32.mrf.mxu3  ;;  %v4532_v49 = vadd.f32 %v4478_v28, %v4254_v47  ;;  %v5398_v33 = vld [vmem:[#allocation2 + $0x109] sm:$0xff] }
 0x580   : > { %v5430_v45 = vadd.f32 %v8644_v48, %v5362_v53  ;;  %v5038_v5 = vpop.f32.mrf.mxu0  ;;  %v4811_v53 = vadd.f32 %v4757_v55, %v4532_v49  ;;  %v9197_v49 = vld [vmem:[#allocation23_spill] sm:$0xff] }
 0x582   : > { %v5462_v22 = vadd.f32 %v5430_v45, %v5394_v63  ;;  %v4484_v12 = vpop.f32.mrf.mxu2 }
 0x584   : > { %v5494_v23 = vmax.f32 %v5462_v22, 0.0  ;;  %v5089_v22 = vadd.f32 %v5035_v16, %v4811_v53  ;;  %v5403_v53 = vld [vmem:[#allocation2 + $0x141] sm:$0xff] }
 0x585   : > { %v5301_v46 = vpop.f32.mrf.mxu1 }
 0x586   : > { %5526 = vst.msk [vmem:[%s8656_s23 + $0x80] sm:$0xff] %vm225_vm1, %v5494_v23  ;;  %v5363_v30 = vadd.f32 %v5301_v46, %v5085_v15  ;;  %v4763_v39 = vpop.f32.mrf.mxu3  ;;  %v5399_v23 = vld [vmem:[#allocation2 + $0x111] sm:$0xff]  ;;  %v4812_v15 = vadd.f32 %v4760_v38, %v4533_v31 }
 0x588   : > { %v5431_v43 = vadd.f32 %v8644_v48, %v5363_v30  ;;  %v5041_v45 = vpop.f32.mrf.mxu0  ;;  %v4256_v30 = vadd.f32 %v8569_v13, %v8380_v37 }
 0x58a   : > { %v5463_v6 = vadd.f32 %v5431_v43, %v5395_v14  ;;  %v4487_v0 = vpop.f32.mrf.mxu2  ;;  %v4534_v14 = vadd.f32 %v4484_v12, %v4256_v30  ;;  %v5090_v43 = vadd.f32 %v5038_v5, %v4812_v15  ;;  %v5402_v5 = vld [vmem:[#allocation2 + $0x139] sm:$0xff] }
 0x58c   : > { %v5495_v10 = vmax.f32 %v5463_v6, 0.0 }
 0x58d   : > { %v5304_v3 = vpop.f32.mrf.mxu1 }
 0x58e   : > { %5527 = vst.msk [vmem:[%s8656_s23 + $0x88] sm:$0xff] %vm225_vm1, %v5495_v10  ;;  %v5364_v54 = vadd.f32 %v5304_v3, %v5086_v25  ;;  %v4766_v46 = vpop.f32.mrf.mxu3  ;;  %v4813_v10 = vadd.f32 %v4763_v39, %v4534_v14  ;;  %v4257_v3 = vadd.f32 %v8579_v59, %v8392_v60  ;;  %v9201_v14 = vld [vmem:[#allocation25_spill] sm:$0xff] }
 0x590   : > { %v5432_v29 = vadd.f32 %v8644_v48, %v5364_v54  ;;  %v5044_v7 = vpop.f32.mrf.mxu0  ;;  %v4535_v13 = vadd.f32 %v4487_v0, %v4257_v3  ;;  %v5091_v20 = vadd.f32 %v5041_v45, %v4813_v10  ;;  %v9198_v45 = vld [vmem:[#allocation46_spill] sm:$0xff] }
 0x592   : > { %v5464_v21 = vadd.f32 %v5432_v29, %v5396_v40  ;;  %v4490_v26 = vpop.f32.mrf.mxu2  ;;  %v4814_v42 = vadd.f32 %v4766_v46, %v4535_v13 }
 0x594   : > { %v5496_v41 = vmax.f32 %v5464_v21, 0.0  ;;  %v5401_v21 = vld [vmem:[#allocation2 + $0x129] sm:$0xff] }
 0x595   : > { %v5307_v32 = vpop.f32.mrf.mxu1 }
 0x596   : > { %5528 = vst.msk [vmem:[%s8656_s23 + $0x90] sm:$0xff] %vm225_vm1, %v5496_v41  ;;  %v5365_v8 = vadd.f32 %v5307_v32, %v5087_v4  ;;  %v4769_v37 = vpop.f32.mrf.mxu3  ;;  %v4258_v4 = vadd.f32 %v8587_v62, %v8404_v52  ;;  %v5092_v32 = vadd.f32 %v5044_v7, %v4814_v42  ;;  %v9200_v7 = vld [vmem:[#allocation19_spill] sm:$0xff] }
 0x598   : > { %v5433_v19 = vadd.f32 %v8644_v48, %v5365_v8  ;;  %v5047_v11 = vpop.f32.mrf.mxu0  ;;  %v4536_v59 = vadd.f32 %v4490_v26, %v4258_v4 }
 0x59a   : > { %v5465_v2 = vadd.f32 %v5433_v19, %v5397_v44  ;;  %v4493_v58 = vpop.f32.mrf.mxu2  ;;  %v4815_v12 = vadd.f32 %v4769_v37, %v4536_v59 }
 0x59c   : > { %v5497_v56 = vmax.f32 %v5465_v2, 0.0 }
 0x59d   : > { %v5310_v17 = vpop.f32.mrf.mxu1 }
 0x59e   : > { %5529 = vst.msk [vmem:[%s8656_s23 + $0x98] sm:$0xff] %vm225_vm1, %v5497_v56  ;;  %v5366_v27 = vadd.f32 %v5310_v17, %v5088_v61  ;;  %v4772_v8 = vpop.f32.mrf.mxu3  ;;  %v4259_v56 = vadd.f32 %v9197_v49, %v8416_v51  ;;  %v5093_v17 = vadd.f32 %v5047_v11, %v4815_v12 }
 0x5a0   : > { %v5434_v63 = vadd.f32 %v8644_v48, %v5366_v27  ;;  %v5050_v19 = vpop.f32.mrf.mxu0  ;;  %v4537_v62 = vadd.f32 %v4493_v58, %v4259_v56 }
 0x5a2   : > { %v5466_v1 = vadd.f32 %v5434_v63, %v5398_v33  ;;  %v4496_v2 = vpop.f32.mrf.mxu2  ;;  %v4816_v63 = vadd.f32 %v4772_v8, %v4537_v62 }
 0x5a4   : > { %v5498_v18 = vmax.f32 %v5466_v1, 0.0  ;;  %v9199_v1 = vld [vmem:[#allocation21_spill] sm:$0xff] }
 0x5a5   : > { %v5313_v57 = vpop.f32.mrf.mxu1  ;;  %v4260_v0 = vadd.f32 %v9199_v1, %v9198_v45 }
 0x5a6   : > { %5530 = vst.msk [vmem:[%s8656_s23 + $0xa0] sm:$0xff] %vm225_vm1, %v5498_v18  ;;  %v5367_v34 = vadd.f32 %v5313_v57, %v5089_v22  ;;  %v4775_v33 = vpop.f32.mrf.mxu3 }
 0x5a7   : > { %v4538_v22 = vadd.f32 %v4496_v2, %v4260_v0 }
 0x5a8   : > { %v5435_v28 = vadd.f32 %v8644_v48, %v5367_v34  ;;  %v5053_v31 = vpop.f32.mrf.mxu0  ;;  %v5094_v34 = vadd.f32 %v5050_v19, %v4816_v63 }
 0x5a9   : > { %v4817_v46 = vadd.f32 %v4775_v33, %v4538_v22  ;;  %v9206_v33 = vld [vmem:[#allocation18_spill] sm:$0xff]  ;;  %v5408_v22 = vld [vmem:[#allocation2 + $0x181] sm:$0xff] }
 0x5aa   : > { %v5467_v9 = vadd.f32 %v5435_v28, %v5399_v23  ;;  %v4499_v51 = vpop.f32.mrf.mxu2  ;;  %v5404_v28 = vld [vmem:[#allocation2 + $0x151] sm:$0xff] }
 0x5ac   : > { %v5499_v36 = vmax.f32 %v5467_v9, 0.0 }
 0x5ad   : > { %v5316_v6 = vpop.f32.mrf.mxu1 }
 0x5ae   : > { %5531 = vst.msk [vmem:[%s8656_s23 + $0xa8] sm:$0xff] %vm225_vm1, %v5499_v36  ;;  %v5368_v55 = vadd.f32 %v5316_v6, %v5090_v43  ;;  %v4778_v9 = vpop.f32.mrf.mxu3  ;;  %v4261_v36 = vadd.f32 %v9201_v14, %v9200_v7  ;;  %v5409_v7 = vld [vmem:[#allocation2 + $0x189] sm:$0xff] }
 0x5b0   : > { %v5436_v25 = vadd.f32 %v8644_v48, %v5368_v55  ;;  %v5056_v26 = vpop.f32.mrf.mxu0  ;;  %v4539_v6 = vadd.f32 %v4499_v51, %v4261_v36 }
 0x5b2   : > { %v5468_v16 = vadd.f32 %v5436_v25, %v5400_v35  ;;  %v5095_v35 = vadd.f32 %v5053_v31, %v4817_v46  ;;  %v4502_v10 = vpop.f32.mrf.mxu2  ;;  %v4818_v37 = vadd.f32 %v4778_v9, %v4539_v6 }
 0x5b4   : > { %v5500_v54 = vmax.f32 %v5468_v16, 0.0  ;;  %v5405_v16 = vld [vmem:[#allocation2 + $0x159] sm:$0xff]  ;;  %v5096_v42 = vadd.f32 %v5056_v26, %v4818_v37 }
 0x5b5   : > { %v5319_v40 = vpop.f32.mrf.mxu1 }
 0x5b6   : > { %5532 = vst.msk [vmem:[%s8656_s23 + $0xb0] sm:$0xff] %vm225_vm1, %v5500_v54  ;;  %v5369_v29 = vadd.f32 %v5319_v40, %v5091_v20  ;;  %v9202_v54 = vld [vmem:[#allocation16_spill] sm:$0xff]  ;;  %v9203_v20 = vld [vmem:[#allocation22_spill] sm:$0xff] }
 0x5b7   : > { %v4262_v40 = vadd.f32 %v9203_v20, %v9202_v54 }
 0x5b8   : > { %v5437_v41 = vadd.f32 %v8644_v48, %v5369_v29  ;;  %v4781_v29 = vpop.f32.mrf.mxu3 }
 0x5b9   : > { %v4540_v58 = vadd.f32 %v4502_v10, %v4262_v40 }
 0x5ba   : > { %v5469_v60 = vadd.f32 %v5437_v41, %v5401_v21  ;;  %v4505_v59 = vpop.f32.mrf.mxu2 }
 0x5bc   : > { %v5501_v38 = vmax.f32 %v5469_v60, 0.0  ;;  %v5059_v60 = vpop.f32.mrf.mxu0 }
 0x5bd   : > { %v5322_v44 = vpop.f32.mrf.mxu1 }
 0x5be   : > { %5533 = vst.msk [vmem:[%s8656_s23 + $0xb8] sm:$0xff] %vm225_vm1, %v5501_v38  ;;  %v5370_v24 = vadd.f32 %v5322_v44, %v5092_v32  ;;  %v5406_v38 = vld [vmem:[#allocation2 + $0x169] sm:$0xff]  ;;  %v4819_v32 = vadd.f32 %v4781_v29, %v4540_v58 }
 0x5bf   : > { %v9204_v44 = vld [vmem:[#allocation14_spill] sm:$0xff] }
 0x5c0   : > { %v5438_v47 = vadd.f32 %v8644_v48, %v5370_v24  ;;  %v9205_v24 = vld [vmem:[#allocation20_spill] sm:$0xff]  ;;  %v4784_v12 = vpop.f32.mrf.mxu3  ;;  %v5097_v49 = vadd.f32 %v5059_v60, %v4819_v32 }
 0x5c2   : > { %v5470_v52 = vadd.f32 %v5438_v47, %v5402_v5  ;;  %v4263_v5 = vadd.f32 %v9205_v24, %v9204_v44 }
 0x5c4   : > { %v5502_v61 = vmax.f32 %v5470_v52, 0.0  ;;  %v4541_v47 = vadd.f32 %v4505_v59, %v4263_v5  ;;  %v5062_v62 = vpop.f32.mrf.mxu0 }
 0x5c5   : > { %v5325_v27 = vpop.f32.mrf.mxu1 }
 0x5c6   : > { %5534 = vst.msk [vmem:[%s8656_s23 + $0xc0] sm:$0xff] %vm225_vm1, %v5502_v61  ;;  %v5371_v39 = vadd.f32 %v5325_v27, %v5093_v17  ;;  %v5407_v61 = vld [vmem:[#allocation2 + $0x171] sm:$0xff]  ;;  %v4820_v17 = vadd.f32 %v4784_v12, %v4541_v47 }
 0x5c8   : > { %v5439_v50 = vadd.f32 %v8644_v48, %v5371_v39  ;;  %v4508_v39 = vpop.f32.mrf.mxu2  ;;  %v5098_v45 = vadd.f32 %v5062_v62, %v4820_v17  ;;  %v4787_v31 = vpop.f32.mrf.mxu3 }
 0x5ca   : > { %v5471_v18 = vadd.f32 %v5439_v50, %v5403_v53  ;;  %v9207_v53 = vld [vmem:[#allocation24_spill] sm:$0xff] }
 0x5cb   : > { %v4264_v63 = vadd.f32 %v9207_v53, %v9206_v33 }
 0x5cc   : > { %v5503_v57 = vmax.f32 %v5471_v18, 0.0 }
 0x5cd   : > { %v5328_v23 = vpop.f32.mrf.mxu1  ;;  %v4542_v1 = vadd.f32 %v4508_v39, %v4264_v63 }
 0x5ce   : > { %5535 = vst.msk [vmem:[%s8656_s23 + $0xc8] sm:$0xff] %vm225_vm1, %v5503_v57  ;;  %v5372_v15 = vadd.f32 %v5328_v23, %v5094_v34  ;;  %v5065_v23 = vpop.f32.mrf.mxu0 }
 0x5cf   : > { %v4821_v57 = vadd.f32 %v4787_v31, %v4542_v1 }
 0x5d0   : > { %v5440_v30 = vadd.f32 %v8644_v48, %v5372_v15 }
 0x5d2   : > { %v5472_v43 = vadd.f32 %v5440_v30, %v5404_v28  ;;  %v5099_v28 = vadd.f32 %v5065_v23, %v4821_v57 }
 0x5d4   : > { %v5504_v55 = vmax.f32 %v5472_v43, 0.0 }
 0x5d5   : > { %v5331_v25 = vpop.f32.mrf.mxu1 }
 0x5d6   : > { %5536 = vst.msk [vmem:[%s8656_s23 + $0xd0] sm:$0xff] %vm225_vm1, %v5504_v55  ;;  %v5373_v3 = vadd.f32 %v5331_v25, %v5095_v35 }
 0x5d8   : > { %v5441_v13 = vadd.f32 %v8644_v48, %v5373_v3 }
 0x5da   : > { %v5473_v11 = vadd.f32 %v5441_v13, %v5405_v16 }
 0x5dc   : > { %v5505_v21 = vmax.f32 %v5473_v11, 0.0 }
 0x5dd   : > { %v5334_v41 = vpop.f32.mrf.mxu1 }
 0x5de   : > { %5537 = vst.msk [vmem:[%s8656_s23 + $0xd8] sm:$0xff] %vm225_vm1, %v5505_v21  ;;  %v5374_v4 = vadd.f32 %v5334_v41, %v5096_v42 }
 0x5e0   : > { %v5442_v8 = vadd.f32 %v8644_v48, %v5374_v4 }
 0x5e2   : > { %v5474_v19 = vadd.f32 %v5442_v8, %v5406_v38 }
 0x5e4   : > { %v5506_v2 = vmax.f32 %v5474_v19, 0.0 }
 0x5e5   : > { %v5337_v56 = vpop.f32.mrf.mxu1 }
 0x5e6   : > { %5538 = vst.msk [vmem:[%s8656_s23 + $0xe0] sm:$0xff] %vm225_vm1, %v5506_v2  ;;  %v5375_v52 = vadd.f32 %v5337_v56, %v5097_v49 }
 0x5e8   : > { %v5443_v27 = vadd.f32 %v8644_v48, %v5375_v52 }
 0x5ea   : > { %v5475_v50 = vadd.f32 %v5443_v27, %v5407_v61 }
 0x5ec   : > { %v5507_v0 = vmax.f32 %v5475_v50, 0.0 }
 0x5ed   : > { %v5340_v18 = vpop.f32.mrf.mxu1 }
 0x5ee   : > { %5539 = vst.msk [vmem:[%s8656_s23 + $0xe8] sm:$0xff] %vm225_vm1, %v5507_v0  ;;  %v5376_v51 = vadd.f32 %v5340_v18, %v5098_v45 }
 0x5f0   : > { %v5444_v34 = vadd.f32 %v8644_v48, %v5376_v51 }
 0x5f2   : > { %v5476_v15 = vadd.f32 %v5444_v34, %v5408_v22 }
 0x5f4   : > { %v5508_v46 = vmax.f32 %v5476_v15, 0.0 }
 0x5f5   : > { %v5343_v30 = vpop.f32.mrf.mxu1 }
 0x5f6   : > { %5540 = vst.msk [vmem:[%s8656_s23 + $0xf0] sm:$0xff] %vm225_vm1, %v5508_v46  ;;  %v5377_v9 = vadd.f32 %v5343_v30, %v5099_v28 }
 0x5f8   : > { %v5445_v14 = vadd.f32 %v8644_v48, %v5377_v9 }
 0x5fa   : > { %v5477_v36 = vadd.f32 %v5445_v14, %v5409_v7 }
 0x5fc   : > { %v5509_v43 = vmax.f32 %v5477_v36, 0.0 }
 0x5fe   : > { %5541 = vst.msk [vmem:[%s8656_s23 + $0xf8] sm:$0xff] %vm225_vm1, %v5509_v43 }
 0x5ff PF: > { %s15_s18 = sadd.s32 1, %s6242_s18  }
 0x600   : > { %p12_p4 = scmp.ge.s32.totalorder %s15_s18, 4  }
 0x602   :  { %14 = sbr.rel (!%p12_p4) target bundleno = 1 (0x1), region = 90 }

</bundles_post_ra>
